<compile_context>
chip_gen: v6e
topology: v6e:2x2x1
jax: 0.10.0
libtpu: 0.0.40
codegen_flags: <defaults>
</compile_context>

<pallas_src>
import functools

import jax
import jax.numpy as jnp
from jax import lax
from jax.experimental import pallas as pl
from jax.experimental.pallas import tpu as pltpu

_LANE = 128
_SUBLANE = 8


def _chip_info():
    """Returns (vmem_capacity_bytes, num_tensorcores) with safe fallbacks."""
    kind = ""
    try:
        kind = jax.devices()[0].device_kind.lower()
    except Exception:
        pass
    is_v7 = "v7" in kind
    num_cores = 2 if is_v7 else 1
    try:
        cap = int(pltpu.get_tpu_info().vmem_capacity_bytes)
    except Exception:
        cap = (64 << 20) if is_v7 else (128 << 20)
    if is_v7:
        cap = min(cap, 64 << 20)  # v7x VMEM is 64 MiB per TensorCore
    return cap, num_cores


def _steepest_descent_kernel(a_ref, b_ref, x_ref, o_ref, *, iteration,
                             batch_in_lanes):
    A = a_ref[...]                 # keep A in its input dtype (no slab copy)
    adt = A.dtype
    b = b_ref[...].astype(jnp.float32)
    x0 = x_ref[...].astype(jnp.float32)

    if batch_in_lanes:
        # A: (N, N, TB) [row, contraction, batch->lanes]; vectors: (N, TB).
        def matvec(v):                                   # (N, TB) -> (N, TB)
            return jnp.sum(A * v[None, :, :].astype(adt), axis=1,
                           dtype=jnp.float32)

        def vdot(u, v):                                  # -> (1, TB)
            return jnp.sum(u * v, axis=0, keepdims=True)
    else:
        # A: (TB, N, N); vectors: (TB, N) (lane axis = N >= 128).
        def matvec(v):                                   # (TB, N) -> (TB, N)
            return jnp.sum(A * v[:, None, :].astype(adt), axis=2,
                           dtype=jnp.float32)

        def vdot(u, v):                                  # -> (TB, 1)
            return jnp.sum(u * v, axis=1, keepdims=True)

    # Residual recurrence: one matvec per iteration instead of two.
    g0 = matvec(x0) - b

    def body(_, carry):
        x, g = carry
        Ag = matvec(g)
        temp1 = vdot(g, g)       # g^T g
        temp2 = vdot(g, Ag)      # g^T A g
        # Plain divide: matches torch.div (no zero-guard) by design.
        alpha = temp1 / temp2
        return (x - alpha * g, g - alpha * Ag)

    unroll = True if iteration <= 64 else 4
    x_final, _ = lax.fori_loop(0, iteration, body, (x0, g0), unroll=unroll)
    o_ref[...] = x_final.astype(o_ref.dtype)


def steepest_descent(A, b, x, iteration):
    """A: (B, N, N), b: (B, N), x: (B, N)  ->  (B, N)."""
    B, N, _ = A.shape
    iteration = int(iteration)
    itemsize = jnp.dtype(A.dtype).itemsize

    cap, ncores = _chip_info()
    # VMEM live set: 2x A tile (double-buffered input, input dtype)
    #              + 1x A tile in f32 (broadcast-multiply temporary)
    #              + a few (TB, N) f32 vectors.
    budget = max(16 << 20, min(int(cap * 0.72), cap - (16 << 20)))
    per_batch = (2 * itemsize + 4) * N * N + 256 * N
    max_tb = max(1, budget // per_batch)

    batch_in_lanes = N < _LANE

    if batch_in_lanes:
        max_tb = max(max_tb, _LANE)  # always affordable when N < 128
        if B <= max_tb and not (ncores > 1 and B >= 2 * _LANE):
            tb, b_pad = B, B
        else:
            tb = min(B, max_tb)
            if ncores > 1:
                tb = min(tb, -(-B // ncores))   # >= ncores grid steps on v7x
            tb = max(_LANE, (tb // _LANE) * _LANE)
            b_pad = -(-B // tb) * tb
        # Re-layout: batch -> lanes.  A -> (N, N, B), vectors -> (N, B).
        A_in = jnp.transpose(A, (1, 2, 0))
        b_in = jnp.transpose(b)
        x_in = jnp.transpose(x)
        if b_pad != B:
            pad = b_pad - B
            A_in = jnp.pad(A_in, ((0, 0), (0, 0), (0, pad)))
            b_in = jnp.pad(b_in, ((0, 0), (0, pad)))
            x_in = jnp.pad(x_in, ((0, 0), (0, pad)))
        in_specs = [
            pl.BlockSpec((N, N, tb), lambda i: (0, 0, i)),
            pl.BlockSpec((N, tb), lambda i: (0, i)),
            pl.BlockSpec((N, tb), lambda i: (0, i)),
        ]
        out_specs = pl.BlockSpec((N, tb), lambda i: (0, i))
        out_shape = jax.ShapeDtypeStruct((N, b_pad), x.dtype)
    else:
        if B <= max_tb and not (ncores > 1 and B >= 2 * _SUBLANE):
            tb, b_pad = B, B
        else:
            tb = min(B, max_tb)
            if ncores > 1:
                tb = min(tb, -(-B // ncores))
            if tb >= _SUBLANE:
                tb = (tb // _SUBLANE) * _SUBLANE
            tb = max(1, tb)
            b_pad = -(-B // tb) * tb
        A_in, b_in, x_in = A, b, x
        if b_pad != B:
            pad = b_pad - B
            A_in = jnp.pad(A_in, ((0, pad), (0, 0), (0, 0)))
            b_in = jnp.pad(b_in, ((0, pad), (0, 0)))
            x_in = jnp.pad(x_in, ((0, pad), (0, 0)))
        in_specs = [
            pl.BlockSpec((tb, N, N), lambda i: (i, 0, 0)),
            pl.BlockSpec((tb, N), lambda i: (i, 0)),
            pl.BlockSpec((tb, N), lambda i: (i, 0)),
        ]
        out_specs = pl.BlockSpec((tb, N), lambda i: (i, 0))
        out_shape = jax.ShapeDtypeStruct((b_pad, N), x.dtype)

    grid = (b_pad // tb,)

    usage = (2 * itemsize + 4) * tb * N * N + 64 * tb * N * 4 + (2 << 20)
    vmem_limit = int(min(cap - (8 << 20), max(16 << 20, usage + (4 << 20))))

    kernel = functools.partial(_steepest_descent_kernel, iteration=iteration,
                               batch_in_lanes=batch_in_lanes)
    out = pl.pallas_call(
        kernel,
        out_shape=out_shape,
        grid_spec=pltpu.PrefetchScalarGridSpec(
            num_scalar_prefetch=0,
            grid=grid,
            in_specs=in_specs,
            out_specs=out_specs,
        ),
        compiler_params=pltpu.CompilerParams(
            dimension_semantics=("parallel",),
            vmem_limit_bytes=vmem_limit,
        ),
    )(A_in, b_in, x_in)

    if batch_in_lanes:
        out = jnp.transpose(out)
    return out[:B]


def steepest_descent_ref(A, b, x, iteration):
    """Pure-JAX reference mirroring the PyTorch forward (exact recompute)."""
    hi = lax.Precision.HIGHEST
    b_col = b[..., None]
    x_col = x[..., None]
    for _ in range(iteration):
        g = jnp.einsum("bij,bjk->bik", A, x_col, precision=hi) - b_col
        temp1 = jnp.einsum("bki,bkj->bij", g, g, precision=hi)
        Ag = jnp.einsum("bij,bjk->bik", A, g, precision=hi)
        temp2 = jnp.einsum("bki,bkj->bij", g, Ag, precision=hi)
        step = temp1 / temp2
        x_col = x_col - step * g
    return x_col[..., 0]


def _spd(key, B, N):
    M = jax.random.normal(key, (B, N, N), dtype=jnp.float32)
    return jnp.einsum("bij,bkj->bik", M, M) + N * jnp.eye(N, dtype=jnp.float32)[None]


if __name__ == "__main__":
    key = jax.random.PRNGKey(0)
    k1, k2, k3, k4, k5, k6 = jax.random.split(key, 6)
    iteration = 8

    # --- Small-N path (batch mapped to lanes): B=2, N=16 ---
    B, N = 2, 16
    A = _spd(k1, B, N)
    b = jax.random.normal(k2, (B, N), dtype=jnp.float32)
    x = jax.random.normal(k3, (B, N), dtype=jnp.float32)
    out = jax.block_until_ready(steepest_descent(A, b, x, iteration))
    ref = steepest_descent_ref(A, b, x, iteration)
    assert out.shape == (B, N)
    assert jnp.allclose(out, ref, rtol=1e-4, atol=1e-4), (
        f"small-N mismatch: max abs diff {jnp.max(jnp.abs(out - ref))}")

    # --- Large-N path (lane axis = N): B=2, N=128 ---
    B2, N2 = 2, 128
    A2 = _spd(k4, B2, N2)
    b2 = jax.random.normal(k5, (B2, N2), dtype=jnp.float32)
    x2 = jax.random.normal(k6, (B2, N2), dtype=jnp.float32)
    out2 = jax.block_until_ready(steepest_descent(A2, b2, x2, iteration))
    ref2 = steepest_descent_ref(A2, b2, x2, iteration)
    assert out2.shape == (B2, N2)
    assert jnp.allclose(out2, ref2, rtol=1e-4, atol=1e-4), (
        f"large-N mismatch: max abs diff {jnp.max(jnp.abs(out2 - ref2))}")

    print("KERNEL_OK")
</pallas_src>

<mosaic_0001>
module attributes {stable_mosaic.version = 11 : i64} {
  func.func @_steepest_descent_kernel(%arg0: i32, %arg1: memref<16x16x2xf32, #tpu.memory_space<vmem>>, %arg2: memref<16x2xf32, #tpu.memory_space<vmem>>, %arg3: memref<16x2xf32, #tpu.memory_space<vmem>>, %arg4: memref<16x2xf32, #tpu.memory_space<vmem>>) attributes {dimension_semantics = [#tpu.dimension_semantics<parallel>], iteration_bounds = array<i64: 1>, scalar_prefetch = 0 : i64, scratch_operands = 0 : i64, tpu.core_type = #tpu.core_type<tc>, window_params = [{transform_indices = @transform_0, window_bounds = array<i64: 16, 16, 2>}, {transform_indices = @transform_1, window_bounds = array<i64: 16, 2>}, {transform_indices = @transform_2, window_bounds = array<i64: 16, 2>}, {transform_indices = @transform_3, window_bounds = array<i64: 16, 2>}]} {
    %c0 = arith.constant 0 : index
    %c0_0 = arith.constant 0 : index
    %c0_1 = arith.constant 0 : index
    %0 = vector.load %arg1[%c0, %c0_0, %c0_1] : memref<16x16x2xf32, #tpu.memory_space<vmem>>, vector<16x16x2xf32>
    %c0_2 = arith.constant 0 : index
    %c0_3 = arith.constant 0 : index
    %1 = vector.load %arg2[%c0_2, %c0_3] : memref<16x2xf32, #tpu.memory_space<vmem>>, vector<16x2xf32>
    %c0_4 = arith.constant 0 : index
    %c0_5 = arith.constant 0 : index
    %2 = vector.load %arg3[%c0_4, %c0_5] : memref<16x2xf32, #tpu.memory_space<vmem>>, vector<16x2xf32>
    %3 = vector.shape_cast %2 : vector<16x2xf32> to vector<1x16x2xf32>
    %4 = vector.broadcast %3 : vector<1x16x2xf32> to vector<16x16x2xf32>
    %5 = arith.mulf %0, %4 : vector<16x16x2xf32>
    %cst = arith.constant dense<0.000000e+00> : vector<16x2xf32>
    %6 = vector.multi_reduction <add>, %5, %cst [1] : vector<16x16x2xf32> to vector<16x2xf32>
    %7 = arith.subf %6, %1 : vector<16x2xf32>
    %c0_i32 = arith.constant 0 : i32
    %8 = vector.shape_cast %7 : vector<16x2xf32> to vector<1x16x2xf32>
    %9 = vector.broadcast %8 : vector<1x16x2xf32> to vector<16x16x2xf32>
    %10 = arith.mulf %0, %9 : vector<16x16x2xf32>
    %cst_6 = arith.constant dense<0.000000e+00> : vector<16x2xf32>
    %11 = vector.multi_reduction <add>, %10, %cst_6 [1] : vector<16x16x2xf32> to vector<16x2xf32>
    %12 = arith.mulf %7, %7 : vector<16x2xf32>
    %cst_7 = arith.constant dense<0.000000e+00> : vector<2xf32>
    %13 = vector.multi_reduction <add>, %12, %cst_7 [0] : vector<16x2xf32> to vector<2xf32>
    %14 = vector.shape_cast %13 : vector<2xf32> to vector<1x2xf32>
    %15 = arith.mulf %7, %11 : vector<16x2xf32>
    %cst_8 = arith.constant dense<0.000000e+00> : vector<2xf32>
    %16 = vector.multi_reduction <add>, %15, %cst_8 [0] : vector<16x2xf32> to vector<2xf32>
    %17 = vector.shape_cast %16 : vector<2xf32> to vector<1x2xf32>
    %18 = arith.divf %14, %17 : vector<1x2xf32>
    %19 = vector.broadcast %18 : vector<1x2xf32> to vector<16x2xf32>
    %20 = arith.mulf %19, %7 : vector<16x2xf32>
    %21 = arith.subf %2, %20 : vector<16x2xf32>
    %22 = vector.broadcast %18 : vector<1x2xf32> to vector<16x2xf32>
    %23 = arith.mulf %22, %11 : vector<16x2xf32>
    %24 = arith.subf %7, %23 : vector<16x2xf32>
    %c1_i32 = arith.constant 1 : i32
    %25 = vector.shape_cast %24 : vector<16x2xf32> to vector<1x16x2xf32>
    %26 = vector.broadcast %25 : vector<1x16x2xf32> to vector<16x16x2xf32>
    %27 = arith.mulf %0, %26 : vector<16x16x2xf32>
    %cst_9 = arith.constant dense<0.000000e+00> : vector<16x2xf32>
    %28 = vector.multi_reduction <add>, %27, %cst_9 [1] : vector<16x16x2xf32> to vector<16x2xf32>
    %29 = arith.mulf %24, %24 : vector<16x2xf32>
    %cst_10 = arith.constant dense<0.000000e+00> : vector<2xf32>
    %30 = vector.multi_reduction <add>, %29, %cst_10 [0] : vector<16x2xf32> to vector<2xf32>
    %31 = vector.shape_cast %30 : vector<2xf32> to vector<1x2xf32>
    %32 = arith.mulf %24, %28 : vector<16x2xf32>
    %cst_11 = arith.constant dense<0.000000e+00> : vector<2xf32>
    %33 = vector.multi_reduction <add>, %32, %cst_11 [0] : vector<16x2xf32> to vector<2xf32>
    %34 = vector.shape_cast %33 : vector<2xf32> to vector<1x2xf32>
    %35 = arith.divf %31, %34 : vector<1x2xf32>
    %36 = vector.broadcast %35 : vector<1x2xf32> to vector<16x2xf32>
    %37 = arith.mulf %36, %24 : vector<16x2xf32>
    %38 = arith.subf %21, %37 : vector<16x2xf32>
    %39 = vector.broadcast %35 : vector<1x2xf32> to vector<16x2xf32>
    %40 = arith.mulf %39, %28 : vector<16x2xf32>
    %41 = arith.subf %24, %40 : vector<16x2xf32>
    %c2_i32 = arith.constant 2 : i32
    %42 = vector.shape_cast %41 : vector<16x2xf32> to vector<1x16x2xf32>
    %43 = vector.broadcast %42 : vector<1x16x2xf32> to vector<16x16x2xf32>
    %44 = arith.mulf %0, %43 : vector<16x16x2xf32>
    %cst_12 = arith.constant dense<0.000000e+00> : vector<16x2xf32>
    %45 = vector.multi_reduction <add>, %44, %cst_12 [1] : vector<16x16x2xf32> to vector<16x2xf32>
    %46 = arith.mulf %41, %41 : vector<16x2xf32>
    %cst_13 = arith.constant dense<0.000000e+00> : vector<2xf32>
    %47 = vector.multi_reduction <add>, %46, %cst_13 [0] : vector<16x2xf32> to vector<2xf32>
    %48 = vector.shape_cast %47 : vector<2xf32> to vector<1x2xf32>
    %49 = arith.mulf %41, %45 : vector<16x2xf32>
    %cst_14 = arith.constant dense<0.000000e+00> : vector<2xf32>
    %50 = vector.multi_reduction <add>, %49, %cst_14 [0] : vector<16x2xf32> to vector<2xf32>
    %51 = vector.shape_cast %50 : vector<2xf32> to vector<1x2xf32>
    %52 = arith.divf %48, %51 : vector<1x2xf32>
    %53 = vector.broadcast %52 : vector<1x2xf32> to vector<16x2xf32>
    %54 = arith.mulf %53, %41 : vector<16x2xf32>
    %55 = arith.subf %38, %54 : vector<16x2xf32>
    %56 = vector.broadcast %52 : vector<1x2xf32> to vector<16x2xf32>
    %57 = arith.mulf %56, %45 : vector<16x2xf32>
    %58 = arith.subf %41, %57 : vector<16x2xf32>
    %c3_i32 = arith.constant 3 : i32
    %59 = vector.shape_cast %58 : vector<16x2xf32> to vector<1x16x2xf32>
    %60 = vector.broadcast %59 : vector<1x16x2xf32> to vector<16x16x2xf32>
    %61 = arith.mulf %0, %60 : vector<16x16x2xf32>
    %cst_15 = arith.constant dense<0.000000e+00> : vector<16x2xf32>
    %62 = vector.multi_reduction <add>, %61, %cst_15 [1] : vector<16x16x2xf32> to vector<16x2xf32>
    %63 = arith.mulf %58, %58 : vector<16x2xf32>
    %cst_16 = arith.constant dense<0.000000e+00> : vector<2xf32>
    %64 = vector.multi_reduction <add>, %63, %cst_16 [0] : vector<16x2xf32> to vector<2xf32>
    %65 = vector.shape_cast %64 : vector<2xf32> to vector<1x2xf32>
    %66 = arith.mulf %58, %62 : vector<16x2xf32>
    %cst_17 = arith.constant dense<0.000000e+00> : vector<2xf32>
    %67 = vector.multi_reduction <add>, %66, %cst_17 [0] : vector<16x2xf32> to vector<2xf32>
    %68 = vector.shape_cast %67 : vector<2xf32> to vector<1x2xf32>
    %69 = arith.divf %65, %68 : vector<1x2xf32>
    %70 = vector.broadcast %69 : vector<1x2xf32> to vector<16x2xf32>
    %71 = arith.mulf %70, %58 : vector<16x2xf32>
    %72 = arith.subf %55, %71 : vector<16x2xf32>
    %73 = vector.broadcast %69 : vector<1x2xf32> to vector<16x2xf32>
    %74 = arith.mulf %73, %62 : vector<16x2xf32>
    %75 = arith.subf %58, %74 : vector<16x2xf32>
    %c4_i32 = arith.constant 4 : i32
    %76 = vector.shape_cast %75 : vector<16x2xf32> to vector<1x16x2xf32>
    %77 = vector.broadcast %76 : vector<1x16x2xf32> to vector<16x16x2xf32>
    %78 = arith.mulf %0, %77 : vector<16x16x2xf32>
    %cst_18 = arith.constant dense<0.000000e+00> : vector<16x2xf32>
    %79 = vector.multi_reduction <add>, %78, %cst_18 [1] : vector<16x16x2xf32> to vector<16x2xf32>
    %80 = arith.mulf %75, %75 : vector<16x2xf32>
    %cst_19 = arith.constant dense<0.000000e+00> : vector<2xf32>
    %81 = vector.multi_reduction <add>, %80, %cst_19 [0] : vector<16x2xf32> to vector<2xf32>
    %82 = vector.shape_cast %81 : vector<2xf32> to vector<1x2xf32>
    %83 = arith.mulf %75, %79 : vector<16x2xf32>
    %cst_20 = arith.constant dense<0.000000e+00> : vector<2xf32>
    %84 = vector.multi_reduction <add>, %83, %cst_20 [0] : vector<16x2xf32> to vector<2xf32>
    %85 = vector.shape_cast %84 : vector<2xf32> to vector<1x2xf32>
    %86 = arith.divf %82, %85 : vector<1x2xf32>
    %87 = vector.broadcast %86 : vector<1x2xf32> to vector<16x2xf32>
    %88 = arith.mulf %87, %75 : vector<16x2xf32>
    %89 = arith.subf %72, %88 : vector<16x2xf32>
    %90 = vector.broadcast %86 : vector<1x2xf32> to vector<16x2xf32>
    %91 = arith.mulf %90, %79 : vector<16x2xf32>
    %92 = arith.subf %75, %91 : vector<16x2xf32>
    %c5_i32 = arith.constant 5 : i32
    %93 = vector.shape_cast %92 : vector<16x2xf32> to vector<1x16x2xf32>
    %94 = vector.broadcast %93 : vector<1x16x2xf32> to vector<16x16x2xf32>
    %95 = arith.mulf %0, %94 : vector<16x16x2xf32>
    %cst_21 = arith.constant dense<0.000000e+00> : vector<16x2xf32>
    %96 = vector.multi_reduction <add>, %95, %cst_21 [1] : vector<16x16x2xf32> to vector<16x2xf32>
    %97 = arith.mulf %92, %92 : vector<16x2xf32>
    %cst_22 = arith.constant dense<0.000000e+00> : vector<2xf32>
    %98 = vector.multi_reduction <add>, %97, %cst_22 [0] : vector<16x2xf32> to vector<2xf32>
    %99 = vector.shape_cast %98 : vector<2xf32> to vector<1x2xf32>
    %100 = arith.mulf %92, %96 : vector<16x2xf32>
    %cst_23 = arith.constant dense<0.000000e+00> : vector<2xf32>
    %101 = vector.multi_reduction <add>, %100, %cst_23 [0] : vector<16x2xf32> to vector<2xf32>
    %102 = vector.shape_cast %101 : vector<2xf32> to vector<1x2xf32>
    %103 = arith.divf %99, %102 : vector<1x2xf32>
    %104 = vector.broadcast %103 : vector<1x2xf32> to vector<16x2xf32>
    %105 = arith.mulf %104, %92 : vector<16x2xf32>
    %106 = arith.subf %89, %105 : vector<16x2xf32>
    %107 = vector.broadcast %103 : vector<1x2xf32> to vector<16x2xf32>
    %108 = arith.mulf %107, %96 : vector<16x2xf32>
    %109 = arith.subf %92, %108 : vector<16x2xf32>
    %c6_i32 = arith.constant 6 : i32
    %110 = vector.shape_cast %109 : vector<16x2xf32> to vector<1x16x2xf32>
    %111 = vector.broadcast %110 : vector<1x16x2xf32> to vector<16x16x2xf32>
    %112 = arith.mulf %0, %111 : vector<16x16x2xf32>
    %cst_24 = arith.constant dense<0.000000e+00> : vector<16x2xf32>
    %113 = vector.multi_reduction <add>, %112, %cst_24 [1] : vector<16x16x2xf32> to vector<16x2xf32>
    %114 = arith.mulf %109, %109 : vector<16x2xf32>
    %cst_25 = arith.constant dense<0.000000e+00> : vector<2xf32>
    %115 = vector.multi_reduction <add>, %114, %cst_25 [0] : vector<16x2xf32> to vector<2xf32>
    %116 = vector.shape_cast %115 : vector<2xf32> to vector<1x2xf32>
    %117 = arith.mulf %109, %113 : vector<16x2xf32>
    %cst_26 = arith.constant dense<0.000000e+00> : vector<2xf32>
    %118 = vector.multi_reduction <add>, %117, %cst_26 [0] : vector<16x2xf32> to vector<2xf32>
    %119 = vector.shape_cast %118 : vector<2xf32> to vector<1x2xf32>
    %120 = arith.divf %116, %119 : vector<1x2xf32>
    %121 = vector.broadcast %120 : vector<1x2xf32> to vector<16x2xf32>
    %122 = arith.mulf %121, %109 : vector<16x2xf32>
    %123 = arith.subf %106, %122 : vector<16x2xf32>
    %124 = vector.broadcast %120 : vector<1x2xf32> to vector<16x2xf32>
    %125 = arith.mulf %124, %113 : vector<16x2xf32>
    %126 = arith.subf %109, %125 : vector<16x2xf32>
    %c7_i32 = arith.constant 7 : i32
    %127 = vector.shape_cast %126 : vector<16x2xf32> to vector<1x16x2xf32>
    %128 = vector.broadcast %127 : vector<1x16x2xf32> to vector<16x16x2xf32>
    %129 = arith.mulf %0, %128 : vector<16x16x2xf32>
    %cst_27 = arith.constant dense<0.000000e+00> : vector<16x2xf32>
    %130 = vector.multi_reduction <add>, %129, %cst_27 [1] : vector<16x16x2xf32> to vector<16x2xf32>
    %131 = arith.mulf %126, %126 : vector<16x2xf32>
    %cst_28 = arith.constant dense<0.000000e+00> : vector<2xf32>
    %132 = vector.multi_reduction <add>, %131, %cst_28 [0] : vector<16x2xf32> to vector<2xf32>
    %133 = vector.shape_cast %132 : vector<2xf32> to vector<1x2xf32>
    %134 = arith.mulf %126, %130 : vector<16x2xf32>
    %cst_29 = arith.constant dense<0.000000e+00> : vector<2xf32>
    %135 = vector.multi_reduction <add>, %134, %cst_29 [0] : vector<16x2xf32> to vector<2xf32>
    %136 = vector.shape_cast %135 : vector<2xf32> to vector<1x2xf32>
    %137 = arith.divf %133, %136 : vector<1x2xf32>
    %138 = vector.broadcast %137 : vector<1x2xf32> to vector<16x2xf32>
    %139 = arith.mulf %138, %126 : vector<16x2xf32>
    %140 = arith.subf %123, %139 : vector<16x2xf32>
    %141 = vector.broadcast %137 : vector<1x2xf32> to vector<16x2xf32>
    %142 = arith.mulf %141, %130 : vector<16x2xf32>
    %143 = arith.subf %126, %142 : vector<16x2xf32>
    %c0_30 = arith.constant 0 : index
    %c0_31 = arith.constant 0 : index
    %144 = vector.load %arg4[%c0_30, %c0_31] : memref<16x2xf32, #tpu.memory_space<vmem>>, vector<16x2xf32>
    tpu.vector_store %arg4[%c0_30, %c0_31], %140 {strides = array<i32>} : memref<16x2xf32, #tpu.memory_space<vmem>>, vector<16x2xf32>,
    return
  }
  func.func @transform_0(%arg0: i32) -> (i32, i32, i32) {
    %c0_i32 = arith.constant 0 : i32
    %c0_i32_0 = arith.constant 0 : i32
    %c0_i32_1 = arith.constant 0 : i32
    return %c0_i32, %c0_i32_0, %arg0 : i32, i32, i32
  }
  func.func @transform_1(%arg0: i32) -> (i32, i32) {
    %c0_i32 = arith.constant 0 : i32
    %c0_i32_0 = arith.constant 0 : i32
    return %c0_i32, %arg0 : i32, i32
  }
  func.func @transform_2(%arg0: i32) -> (i32, i32) {
    %c0_i32 = arith.constant 0 : i32
    %c0_i32_0 = arith.constant 0 : i32
    return %c0_i32, %arg0 : i32, i32
  }
  func.func @transform_3(%arg0: i32) -> (i32, i32) {
    %c0_i32 = arith.constant 0 : i32
    %c0_i32_0 = arith.constant 0 : i32
    return %c0_i32, %arg0 : i32, i32
  }
}

</mosaic_0001>

<bundles_post_ra>
// kernel: tpu_custom_call.1
= control target key start
LH: loop header
LB: loop body
LE: loop exit
PB: predicated region body
PF: predicated region fallthrough
CT: control target
= control target key end

     0   :  { %vm82_vm0 = vcmask 15360   ;;  %vm292_vm1 = vcmask 1041409   ;;  %vm295_vm2 = vcmask 1042434   ;;  %vm298_vm3 = vcmask 1043459   ;;  %s8119_s0 = inlined_call_operand.vmem [shape: f32[16,16,2], index: 0, kind: input, shape index: {}]   ;;  %s8120_s1 = inlined_call_operand.vmem [shape: f32[16,2], index: 1, kind: input, shape index: {}]   ;;  %s8121_s2 = inlined_call_operand.vmem [shape: f32[16,2], index: 2, kind: input, shape index: {}]   ;;  %s8122_s3 = inlined_call_operand.vmem [shape: f32[16,2], index: 3, kind: output, shape index: {}]  }
   0x1   :  { %v4023_v0 = vld [vmem:[%s8119_s0] sm:$0xff]  ;;  %v4028_v1 = vld [vmem:[%s8119_s0 + $0x8] sm:$0xff]  ;;  %v4033_v2 = vld [vmem:[%s8119_s0 + $0x10] sm:$0xff]  ;;  %vm301_vm4 = vcmask 1044484   ;;  %vm304_vm5 = vcmask 1045509   ;;  %vm307_vm6 = vcmask 1046534  }
   0x2   :  { %v4038_v3 = vld [vmem:[%s8119_s0 + $0x18] sm:$0xff]  ;;  %v4043_v4 = vld [vmem:[%s8119_s0 + $0x20] sm:$0xff]  ;;  %v4048_v5 = vld [vmem:[%s8119_s0 + $0x28] sm:$0xff]  ;;  %vm310_vm7 = vcmask 1047559  }
   0x3   :  { %v4053_v6 = vld [vmem:[%s8119_s0 + $0x30] sm:$0xff]  ;;  %v4058_v7 = vld [vmem:[%s8119_s0 + $0x38] sm:$0xff]  ;;  %v4063_v8 = vld [vmem:[%s8119_s0 + $0x40] sm:$0xff] }
   0x4   :  { %v4068_v9 = vld [vmem:[%s8119_s0 + $0x48] sm:$0xff]  ;;  %v4073_v10 = vld [vmem:[%s8119_s0 + $0x50] sm:$0xff]  ;;  %v4078_v11 = vld [vmem:[%s8119_s0 + $0x58] sm:$0xff] }
   0x5   :  { %v4083_v12 = vld [vmem:[%s8119_s0 + $0x60] sm:$0xff]  ;;  %v4088_v13 = vld [vmem:[%s8119_s0 + $0x68] sm:$0xff]  ;;  %v4093_v14 = vld [vmem:[%s8119_s0 + $0x70] sm:$0xff] }
   0x6   :  { %v4098_v15 = vld [vmem:[%s8120_s1] sm:$0xff]  ;;  %v4103_v16 = vld [vmem:[%s8119_s0 + $0x78] sm:$0xff]  ;;  %v4111_v18 = vld [vmem:[%s8121_s2 + $0x8] sm:$0xff] }
   0x7   :  { %v48_v17 = vld [vmem:[%s8121_s2] sm:$0xff]  ;;  %v4123_v22 = vld [vmem:[%s8119_s0 + $0x88] sm:$0xff]  ;;  %v4128_v23 = vld [vmem:[%s8119_s0 + $0x90] sm:$0xff]  ;;  %v51_v25 = vmul.f32 %v4111_v18, %v4028_v1  ;;  %v53_v31 = vmul.f32 %v4111_v18, %v4038_v3  ;;  %v55_v33 = vmul.f32 %v4111_v18, %v4048_v5  ;;  %v57_v38 = vmul.f32 %v4111_v18, %v4058_v7 }
   0x8   :  { %v4118_v21 = vld [vmem:[%s8119_s0 + $0x80] sm:$0xff]  ;;  %8365 = vst [vmem:[#allocation3_spill] sm:$0xff] %v4123_v22  ;;  %8366 = vst [vmem:[#allocation4_spill] sm:$0xff] %v4128_v23  ;;  %v50_v24 = vmul.f32 %v48_v17, %v4023_v0  ;;  %v52_v26 = vmul.f32 %v48_v17, %v4033_v2  ;;  %v4138_v28 = vld [vmem:[%s8119_s0 + $0x98] sm:$0xff]  ;;  %v54_v32 = vmul.f32 %v48_v17, %v4043_v4 }
   0x9   :  { %8364 = vst [vmem:[#allocation2_spill] sm:$0xff] %v4118_v21  ;;  %8367 = vst [vmem:[#allocation5_spill] sm:$0xff] %v4138_v28  ;;  %v4143_v29 = vld [vmem:[%s8119_s0 + $0xa0] sm:$0xff]  ;;  %v4148_v30 = vld [vmem:[%s8119_s0 + $0xa8] sm:$0xff]  ;;  %v56_v34 = vmul.f32 %v48_v17, %v4053_v6  ;;  %v58_v39 = vmul.f32 %v48_v17, %v4063_v8  ;;  %v59_v40 = vmul.f32 %v4111_v18, %v4068_v9 }
   0xa   :  { %8368 = vst [vmem:[#allocation6_spill] sm:$0xff] %v4143_v29  ;;  %8369 = vst [vmem:[#allocation7_spill] sm:$0xff] %v4148_v30  ;;  %v4159_v35 = vld [vmem:[%s8119_s0 + $0xb0] sm:$0xff]  ;;  %v4164_v36 = vld [vmem:[%s8119_s0 + $0xb8] sm:$0xff]  ;;  %v60_v41 = vmul.f32 %v48_v17, %v4073_v10  ;;  %v61_v45 = vmul.f32 %v4111_v18, %v4078_v11  ;;  %v62_v46 = vmul.f32 %v48_v17, %v4083_v12 }
   0xb   :  { %8370 = vst [vmem:[#allocation8_spill] sm:$0xff] %v4159_v35  ;;  %8371 = vst [vmem:[#allocation9_spill] sm:$0xff] %v4164_v36  ;;  %v4169_v37 = vld [vmem:[%s8119_s0 + $0xc0] sm:$0xff]  ;;  %v4180_v42 = vld [vmem:[%s8119_s0 + $0xc8] sm:$0xff]  ;;  %v63_v47 = vmul.f32 %v4111_v18, %v4088_v13  ;;  %v64_v48 = vmul.f32 %v48_v17, %v4093_v14  ;;  %v65_v52 = vmul.f32 %v4111_v18, %v4103_v16 }
   0xc   :  { %8372 = vst [vmem:[#allocation10_spill] sm:$0xff] %v4169_v37  ;;  %8373 = vst [vmem:[#allocation11_spill] sm:$0xff] %v4180_v42  ;;  %v4185_v43 = vld [vmem:[%s8119_s0 + $0xd0] sm:$0xff]  ;;  %v4190_v44 = vld [vmem:[%s8119_s0 + $0xd8] sm:$0xff]  ;;  %v4216_v53 = vmul.f32 %v48_v17, %v4118_v21  ;;  %v4220_v54 = vmul.f32 %v4111_v18, %v4123_v22  ;;  %v4223_v55 = vmul.f32 %v48_v17, %v4128_v23 }
   0xd   :  { %8374 = vst [vmem:[#allocation12_spill] sm:$0xff] %v4185_v43  ;;  %8375 = vst [vmem:[#allocation13_spill] sm:$0xff] %v4190_v44  ;;  %v4201_v49 = vld [vmem:[%s8119_s0 + $0xe0] sm:$0xff]  ;;  %v4206_v50 = vld [vmem:[%s8119_s0 + $0xe8] sm:$0xff]  ;;  %v4227_v56 = vmul.f32 %v4111_v18, %v4138_v28  ;;  %v4230_v57 = vmul.f32 %v48_v17, %v4143_v29  ;;  %v4234_v58 = vmul.f32 %v4111_v18, %v4148_v30  ;;  %v102_v29 = vsel %vm82_vm0, %v55_v33, 0.0 }
   0xe   :  { %8376 = vst [vmem:[#allocation14_spill] sm:$0xff] %v4201_v49  ;;  %8377 = vst [vmem:[#allocation15_spill] sm:$0xff] %v4206_v50  ;;  %v4211_v51 = vld [vmem:[%s8119_s0 + $0xf0] sm:$0xff]  ;;  %v4237_v59 = vmul.f32 %v48_v17, %v4159_v35  ;;  %v4241_v60 = vmul.f32 %v4111_v18, %v4164_v36  ;;  %v4244_v61 = vmul.f32 %v48_v17, %v4169_v37  ;;  %v84_v36 = vsel %vm82_vm0, %v51_v25, 0.0 }
   0xf   :  { %8378 = vst [vmem:[#allocation16_spill] sm:$0xff] %v4211_v51  ;;  %v4248_v62 = vmul.f32 %v4111_v18, %v4180_v42  ;;  %v4251_v63 = vmul.f32 %v48_v17, %v4185_v43  ;;  %v4255_v27 = vmul.f32 %v4111_v18, %v4190_v44  ;;  %v4258_v20 = vmul.f32 %v48_v17, %v4201_v49 }
  0x10   :  { %v4262_v19 = vmul.f32 %v4111_v18, %v4206_v50  ;;  %v4265_v37 = vmul.f32 %v48_v17, %v4211_v51  ;;  %v83_v42 = vsel %vm82_vm0, %v50_v24, 0.0  ;;  %v92_v43 = vsel %vm82_vm0, %v52_v26, 0.0 }
  0x11   :  { %v93_v35 = vsel %vm82_vm0, %v53_v31, 0.0  ;;  %v85_v44 = vadd.f32 %v84_v36, %v83_v42  ;;  %v101_v49 = vsel %vm82_vm0, %v54_v32, 0.0  ;;  %v110_v50 = vsel %vm82_vm0, %v56_v34, 0.0 }
  0x12   :  { %v94_v30 = vadd.f32 %v93_v35, %v92_v43  ;;  %v103_v28 = vadd.f32 %v102_v29, %v101_v49  ;;  %v111_v17 = vsel %vm82_vm0, %v57_v38, 0.0  ;;  %v119_v51 = vsel %vm82_vm0, %v58_v39, 0.0 }
  0x13   :  { %v86_v24 = vrot.slane %v85_v44, 4  ;;  %v112_v25 = vadd.f32 %v111_v17, %v110_v50  ;;  %v120_v26 = vsel %vm82_vm0, %v59_v40, 0.0  ;;  %v128_v35 = vsel %vm82_vm0, %v60_v41, 0.0 }
  0x14   :  { %v95_v23 = vrot.slane %v94_v30, 4  ;;  %v104_v22 = vrot.slane %v103_v28, 4  ;;  %v121_v31 = vadd.f32 %v120_v26, %v119_v51  ;;  %v129_v32 = vsel %vm82_vm0, %v61_v45, 0.0 }
  0x15   :  { %v87_v36 = vadd.f32 %v86_v24, %v85_v44  ;;  %v113_v29 = vrot.slane %v112_v25, 4  ;;  %v130_v42 = vadd.f32 %v129_v32, %v128_v35  ;;  %v137_v38 = vsel %vm82_vm0, %v62_v46, 0.0 }
  0x16   :  { %v96_v33 = vadd.f32 %v95_v23, %v94_v30  ;;  %v105_v34 = vadd.f32 %v104_v22, %v103_v28  ;;  %v122_v43 = vrot.slane %v121_v31, 4  ;;  %v138_v39 = vsel %vm82_vm0, %v63_v47, 0.0  ;;  %v4285_v22 = vld [vmem:[%s8119_s0 + $0xf8] sm:$0xff] }
  0x17   :  { %v88_v49 = vrot.slane %v87_v36, 2  ;;  %v114_v17 = vadd.f32 %v113_v29, %v112_v25  ;;  %v131_v40 = vrot.slane %v130_v42, 4  ;;  %v139_v26 = vadd.f32 %v138_v39, %v137_v38 }
  0x18   :  { %v97_v50 = vrot.slane %v96_v33, 2  ;;  %v106_v21 = vrot.slane %v105_v34, 2  ;;  %v123_v51 = vadd.f32 %v122_v43, %v121_v31  ;;  %v146_v41 = vsel %vm82_vm0, %v64_v48, 0.0 }
  0x19   :  { %v89_v45 = vadd.f32 %v88_v49, %v87_v36  ;;  %v115_v23 = vrot.slane %v114_v17, 2  ;;  %v132_v30 = vadd.f32 %v131_v40, %v130_v42  ;;  %v140_v47 = vrot.slane %v139_v26, 4 }
  0x1a   :  { %v98_v44 = vadd.f32 %v97_v50, %v96_v33  ;;  %v107_v28 = vadd.f32 %v106_v21, %v105_v34  ;;  %v124_v46 = vrot.slane %v123_v51, 2  ;;  %v147_v24 = vsel %vm82_vm0, %v65_v52, 0.0 }
  0x1b   :  { %v90_v25 = vrot.slane %v89_v45, 1  ;;  %v116_v31 = vadd.f32 %v115_v23, %v114_v17  ;;  %v133_v32 = vrot.slane %v132_v30, 2  ;;  %v141_v36 = vadd.f32 %v140_v47, %v139_v26 }
  0x1c   :  { %v99_v35 = vrot.slane %v98_v44, 1  ;;  %v108_v29 = vrot.slane %v107_v28, 1  ;;  %v125_v48 = vadd.f32 %v124_v46, %v123_v51  ;;  %v148_v33 = vadd.f32 %v147_v24, %v146_v41 }
  0x1d   :  { %v4290_v42 = vmul.f32 %v4111_v18, %v4285_v22  ;;  %v4292_v43 = vadd.f32 %v90_v25, %v89_v45  ;;  %v117_v38 = vrot.slane %v116_v31, 1  ;;  %v134_v21 = vadd.f32 %v133_v32, %v132_v30 }
  0x1e   :  { %v4294_v34 = vadd.f32 %v99_v35, %v98_v44  ;;  %v126_v39 = vrot.slane %v125_v48, 1  ;;  %v142_v52 = vrot.slane %v141_v36, 2  ;;  %v149_v49 = vrot.slane %v148_v33, 4 }
  0x1f   :  { %v4296_v50 = vadd.f32 %v108_v29, %v107_v28  ;;  %v4298_v17 = vadd.f32 %v117_v38, %v116_v31  ;;  %v155_v40 = vsel %vm82_vm0, %v4216_v53, 0.0  ;;  %v156_v18 = vsel %vm82_vm0, %v4220_v54, 0.0 }
  0x20   :  { %v135_v51 = vrot.slane %v134_v21, 1  ;;  %v143_v26 = vadd.f32 %v142_v52, %v141_v36  ;;  %v150_v41 = vadd.f32 %v149_v49, %v148_v33  ;;  %v157_v45 = vadd.f32 %v156_v18, %v155_v40 }
  0x21   :  { %v4304_v23 = vadd.f32 %v126_v39, %v125_v48  ;;  %v164_v44 = vsel %vm82_vm0, %v4223_v55, 0.0  ;;  %v165_v30 = vsel %vm82_vm0, %v4227_v56, 0.0  ;;  %v173_v28 = vsel %vm82_vm0, %v4230_v57, 0.0 }
  0x22   :  { %v144_v46 = vrot.slane %v143_v26, 1  ;;  %v151_v53 = vrot.slane %v150_v41, 2  ;;  %v158_v47 = vrot.slane %v157_v45, 4  ;;  %v166_v24 = vadd.f32 %v165_v30, %v164_v44 }
  0x23   :  { %v174_v54 = vsel %vm82_vm0, %v4234_v58, 0.0  ;;  %v182_v25 = vsel %vm82_vm0, %v4237_v59, 0.0  ;;  %v183_v35 = vsel %vm82_vm0, %v4241_v60, 0.0  ;;  %v191_v55 = vsel %vm82_vm0, %v4244_v61, 0.0 }
  0x24   :  { %v4320_v56 = vadd.f32 %v135_v51, %v134_v21  ;;  %v152_v31 = vadd.f32 %v151_v53, %v150_v41  ;;  %v159_v57 = vadd.f32 %v158_v47, %v157_v45  ;;  %v167_v32 = vrot.slane %v166_v24, 4 }
  0x25   :  { %v4322_v29 = vadd.f32 %v144_v46, %v143_v26  ;;  %v175_v48 = vadd.f32 %v174_v54, %v173_v28  ;;  %v184_v36 = vadd.f32 %v183_v35, %v182_v25  ;;  %v192_v58 = vsel %vm82_vm0, %v4248_v62, 0.0 }
  0x26   :  { %v160_v33 = vrot.slane %v159_v57, 2  ;;  %v168_v59 = vadd.f32 %v167_v32, %v166_v24  ;;  %v193_v38 = vadd.f32 %v192_v58, %v191_v55  ;;  %v200_v60 = vsel %vm82_vm0, %v4251_v63, 0.0 }
  0x27   :  { %v176_v39 = vrot.slane %v175_v48, 4  ;;  %v185_v61 = vrot.slane %v184_v36, 4  ;;  %v201_v21 = vsel %vm82_vm0, %v4255_v27, 0.0  ;;  %v209_v52 = vsel %vm82_vm0, %v4258_v20, 0.0 }
  0x28   :  { %v153_v49 = vrot.slane %v152_v31, 1  ;;  %v161_v40 = vadd.f32 %v160_v33, %v159_v57  ;;  %v169_v18 = vrot.slane %v168_v59, 2  ;;  %v194_v51 = vrot.slane %v193_v38, 4 }
  0x29   :  { %v177_v26 = vadd.f32 %v176_v39, %v175_v48  ;;  %v186_v62 = vadd.f32 %v185_v61, %v184_v36  ;;  %v202_v41 = vadd.f32 %v201_v21, %v200_v60  ;;  %v210_v45 = vsel %vm82_vm0, %v4262_v19, 0.0 }
  0x2a   :  { %v162_v44 = vrot.slane %v161_v40, 1  ;;  %v170_v63 = vadd.f32 %v169_v18, %v168_v59  ;;  %v195_v30 = vadd.f32 %v194_v51, %v193_v38  ;;  %v211_v28 = vadd.f32 %v210_v45, %v209_v52 }
  0x2b   :  { %v178_v46 = vrot.slane %v177_v26, 2  ;;  %v187_v53 = vrot.slane %v186_v62, 2  ;;  %v203_v27 = vrot.slane %v202_v41, 4  ;;  %v218_v20 = vsel %vm82_vm0, %v4265_v37, 0.0  ;;  %v47_v37 = vld [vmem:[%s8120_s1 + $0x8] sm:$0xff] }
  0x2c   :  { %v154_v47 = vadd.f32 %v153_v49, %v152_v31  ;;  %v171_v24 = vrot.slane %v170_v63, 1  ;;  %v196_v54 = vrot.slane %v195_v30, 2  ;;  %v212_v25 = vrot.slane %v211_v28, 4 }
  0x2d   :  { %v179_v35 = vadd.f32 %v178_v46, %v177_v26  ;;  %v188_v55 = vadd.f32 %v187_v53, %v186_v62  ;;  %v204_v57 = vadd.f32 %v203_v27, %v202_v41  ;;  %v219_v19 = vsel %vm82_vm0, %v4290_v42, 0.0 }
  0x2e   :  { %v163_v32 = vadd.f32 %v162_v44, %v161_v40  ;;  %v197_v48 = vadd.f32 %v196_v54, %v195_v30  ;;  %v213_v36 = vadd.f32 %v212_v25, %v211_v28  ;;  %v220_v58 = vadd.f32 %v219_v19, %v218_v20 }
  0x2f   :  { %v172_v33 = vadd.f32 %v171_v24, %v170_v63  ;;  %v180_v59 = vrot.slane %v179_v35, 1  ;;  %v189_v38 = vrot.slane %v188_v55, 1  ;;  %v205_v60 = vrot.slane %v204_v57, 2 }
  0x30   :  { %v198_v31 = vrot.slane %v197_v48, 1  ;;  %v214_v39 = vrot.slane %v213_v36, 2  ;;  %v221_v61 = vrot.slane %v220_v58, 4  ;;  %v232_v21 = vrot.slane %v4098_v15, 4 }
  0x31   :  { %v181_v52 = vadd.f32 %v180_v59, %v179_v35  ;;  %v190_v49 = vadd.f32 %v189_v38, %v188_v55  ;;  %v206_v42 = vadd.f32 %v205_v60, %v204_v57  ;;  %v233_v40 = vrot.slane %v4098_v15, 5 }
  0x32   :  { %v199_v18 = vadd.f32 %v198_v31, %v197_v48  ;;  %v215_v51 = vadd.f32 %v214_v39, %v213_v36  ;;  %v222_v26 = vadd.f32 %v221_v61, %v220_v58  ;;  %v234_v62 = vrot.slane %v4098_v15, 6 }
  0x33   :  { %v207_v41 = vrot.slane %v206_v42, 1  ;;  %v235_v45 = vrot.slane %v4098_v15, 7  ;;  %v236_v44 = vrot.slane %v47_v37, 1  ;;  %v237_v63 = vrot.slane %v47_v37, 2 }
  0x34   :  { %v216_v30 = vrot.slane %v215_v51, 1  ;;  %v223_v28 = vrot.slane %v222_v26, 2  ;;  %v238_v46 = vrot.slane %v47_v37, 3  ;;  %v239_v53 = vrot.slane %v47_v37, 4 }
  0x35   :  { %v208_v27 = vadd.f32 %v207_v41, %v206_v42  ;;  %v240_v20 = vrot.slane %v47_v37, 5  ;;  %v241_v24 = vrot.slane %v47_v37, 6  ;;  %v242_v54 = vrot.slane %v47_v37, 7 }
  0x36   :  { %v224_v25 = vadd.f32 %v223_v28, %v222_v26  ;;  %v4347_v35 = vsub.f32 %v4292_v43, %v4098_v15  ;;  %v8379_v55 = vrot.slane %v4098_v15, 1  ;;  %v8380_v19 = vrot.slane %v4098_v15, 2 }
  0x37   :  { %v217_v36 = vadd.f32 %v216_v30, %v215_v51  ;;  %v8381_v58 = vrot.slane %v4098_v15, 3  ;;  %v4365_v43 = vsub.f32 %v4304_v23, %v232_v21  ;;  %v4368_v38 = vsub.f32 %v4320_v56, %v233_v40 }
  0x38   :  { %v4352_v57 = vsub.f32 %v4294_v34, %v8379_v55  ;;  %v4357_v48 = vsub.f32 %v4296_v50, %v8380_v19  ;;  %v225_v34 = vrot.slane %v224_v25, 1  ;;  %v4371_v60 = vsub.f32 %v4322_v29, %v234_v62 }
  0x39   :  { %v4362_v59 = vsub.f32 %v4298_v17, %v8381_v58  ;;  %8382 = vst [vmem:[#allocation17_spill] sm:$0xff] %v4365_v43  ;;  %8383 = vst [vmem:[#allocation18_spill] sm:$0xff] %v4368_v38  ;;  %v4373_v31 = vsub.f32 %v154_v47, %v235_v45  ;;  %v4375_v50 = vsub.f32 %v172_v33, %v236_v44  ;;  %v303_v33 = vrot.slane %v4368_v38, 3 }
  0x3a   :  { %8384 = vst [vmem:[#allocation19_spill] sm:$0xff] %v4371_v60  ;;  %v4377_v39 = vsub.f32 %v163_v32, %v47_v37  ;;  %v4379_v15 = vsub.f32 %v181_v52, %v237_v63  ;;  %v4381_v17 = vsub.f32 %v190_v49, %v238_v46  ;;  %v4383_v61 = vsub.f32 %v199_v18, %v239_v53 }
  0x3b   :  { %v226_v23 = vadd.f32 %v225_v34, %v224_v25  ;;  %v4385_v21 = vsub.f32 %v208_v27, %v240_v20  ;;  %v291_v56 = vrot.slane %v4352_v57, 7  ;;  %v294_v29 = vrot.slane %v4357_v48, 6 }
  0x3c   :  { %v4389_v42 = vsub.f32 %v217_v36, %v241_v24  ;;  %v297_v47 = vrot.slane %v4362_v59, 5  ;;  %v300_v32 = vrot.slane %v4365_v43, 4  ;;  %v306_v49 = vrot.slane %v4371_v60, 2 }
  0x3d   :  { %8385 = vst [vmem:[#allocation20_spill] sm:$0xff] %v4385_v21  ;;  %v4394_v37 = vsub.f32 %v226_v23, %v242_v54  ;;  %v293_v52 = vsel %vm292_vm1, %v291_v56, %v4347_v35  ;;  %v312_v40 = vrot.slane %v4375_v50, 7  ;;  %v314_v51 = vrot.slane %v4379_v15, 6 }
  0x3e   :  { %8386 = vst [vmem:[#allocation21_spill] sm:$0xff] %v4389_v42  ;;  %v296_v18 = vsel %vm295_vm2, %v294_v29, %v293_v52  ;;  %v316_v26 = vrot.slane %v4381_v17, 5  ;;  %v318_v62 = vrot.slane %v4383_v61, 4  ;;  %v309_v45 = vrot.slane %v4373_v31, 1 }
  0x3f   :  { %8387 = vst [vmem:[#allocation22_spill] sm:$0xff] %v4394_v37  ;;  %v299_v41 = vsel %vm298_vm3, %v297_v47, %v296_v18  ;;  %v313_v44 = vsel %vm292_vm1, %v312_v40, %v4377_v39  ;;  %v320_v63 = vrot.slane %v4385_v21, 3  ;;  %v322_v46 = vrot.slane %v4389_v42, 2 }
  0x40   :  { %v302_v30 = vsel %vm301_vm4, %v300_v32, %v299_v41  ;;  %v315_v28 = vsel %vm295_vm2, %v314_v51, %v313_v44  ;;  %v324_v20 = vrot.slane %v4394_v37, 1  ;;  %v4424_v36 = vmul.f32 %v4347_v35, %v4347_v35 }
  0x41   :  { %v305_v53 = vsel %vm304_vm5, %v303_v33, %v302_v30  ;;  %v317_v27 = vsel %vm298_vm3, %v316_v26, %v315_v28  ;;  %v4428_v58 = vmul.f32 %v4352_v57, %v4352_v57  ;;  %v4432_v34 = vmul.f32 %v4357_v48, %v4357_v48  ;;  %v8396_v30 = vld [vmem:[#allocation8_spill] sm:$0xff] }
  0x42   :  { %v308_v24 = vsel %vm307_vm6, %v306_v49, %v305_v53  ;;  %v319_v54 = vsel %vm301_vm4, %v318_v62, %v317_v27  ;;  %v4439_v56 = vmul.f32 %v4362_v59, %v4362_v59  ;;  %v4443_v29 = vmul.f32 %v4365_v43, %v4365_v43  ;;  %v8390_v62 = vld [vmem:[#allocation2_spill] sm:$0xff] }
  0x43   :  { %v4418_v25 = vsel %vm310_vm7, %v309_v45, %v308_v24  ;;  %v321_v55 = vsel %vm304_vm5, %v320_v63, %v319_v54  ;;  %v4447_v47 = vmul.f32 %v4368_v38, %v4368_v38  ;;  %v4457_v49 = vmul.f32 %v4371_v60, %v4371_v60  ;;  %v8393_v45 = vld [vmem:[#allocation5_spill] sm:$0xff]  ;;  %v8398_v27 = vld [vmem:[#allocation10_spill] sm:$0xff] }
  0x44   :  { %8388 = vst [vmem:[#allocation23_spill] sm:$0xff] %v4418_v25  ;;  %v323_v19 = vsel %vm307_vm6, %v322_v46, %v321_v55  ;;  %v328_v32 = vmul.f32 %v4418_v25, %v4023_v0  ;;  %v330_v33 = vmul.f32 %v4418_v25, %v4033_v2  ;;  %v332_v52 = vmul.f32 %v4418_v25, %v4043_v4  ;;  %v8397_v46 = vld [vmem:[#allocation9_spill] sm:$0xff] }
  0x45   :  { %v4435_v23 = vsel %vm310_vm7, %v324_v20, %v323_v19  ;;  %v334_v18 = vmul.f32 %v4418_v25, %v4053_v6  ;;  %v336_v51 = vmul.f32 %v4418_v25, %v4063_v8  ;;  %v338_v0 = vmul.f32 %v4418_v25, %v4073_v10 }
  0x46   :  { %8389 = vst [vmem:[#allocation24_spill] sm:$0xff] %v4435_v23  ;;  %v329_v40 = vmul.f32 %v4435_v23, %v4028_v1  ;;  %v331_v2 = vmul.f32 %v4435_v23, %v4038_v3  ;;  %v333_v4 = vmul.f32 %v4435_v23, %v4048_v5  ;;  %v335_v26 = vmul.f32 %v4435_v23, %v4058_v7 }
  0x47   :  { %v337_v1 = vmul.f32 %v4435_v23, %v4068_v9  ;;  %v339_v6 = vmul.f32 %v4435_v23, %v4078_v11  ;;  %v340_v8 = vmul.f32 %v4418_v25, %v4083_v12  ;;  %v341_v10 = vmul.f32 %v4435_v23, %v4088_v13  ;;  %v8391_v9 = vld [vmem:[#allocation3_spill] sm:$0xff]  ;;  %v8392_v11 = vld [vmem:[#allocation4_spill] sm:$0xff] }
  0x48   :  { %v342_v3 = vmul.f32 %v4418_v25, %v4093_v14  ;;  %v343_v5 = vmul.f32 %v4435_v23, %v4103_v16  ;;  %v4487_v7 = vmul.f32 %v4418_v25, %v8390_v62  ;;  %v4491_v41 = vmul.f32 %v4435_v23, %v8391_v9  ;;  %v8394_v14 = vld [vmem:[#allocation6_spill] sm:$0xff]  ;;  %v8395_v16 = vld [vmem:[#allocation7_spill] sm:$0xff] }
  0x49   :  { %v4495_v12 = vmul.f32 %v4418_v25, %v8392_v11  ;;  %v4499_v13 = vmul.f32 %v4435_v23, %v8393_v45  ;;  %v4503_v44 = vmul.f32 %v4418_v25, %v8394_v14  ;;  %v4507_v63 = vmul.f32 %v4435_v23, %v8395_v16 }
  0x4a   :  { %v4511_v28 = vmul.f32 %v4418_v25, %v8396_v30  ;;  %v4515_v53 = vmul.f32 %v4435_v23, %v8397_v46  ;;  %v4519_v20 = vmul.f32 %v4418_v25, %v8398_v27  ;;  %v360_v24 = vsel %vm82_vm0, %v328_v32, 0.0 }
  0x4b   :  { %v361_v54 = vsel %vm82_vm0, %v329_v40, 0.0  ;;  %v369_v19 = vsel %vm82_vm0, %v330_v33, 0.0  ;;  %v370_v62 = vsel %vm82_vm0, %v331_v2, 0.0  ;;  %v378_v9 = vsel %vm82_vm0, %v332_v52, 0.0 }
  0x4c   :  { %v362_v55 = vadd.f32 %v361_v54, %v360_v24  ;;  %v371_v11 = vadd.f32 %v370_v62, %v369_v19  ;;  %v379_v45 = vsel %vm82_vm0, %v333_v4, 0.0  ;;  %v387_v14 = vsel %vm82_vm0, %v334_v18, 0.0 }
  0x4d   :  { %v388_v16 = vsel %vm82_vm0, %v335_v26, 0.0  ;;  %v380_v46 = vadd.f32 %v379_v45, %v378_v9  ;;  %v396_v32 = vsel %vm82_vm0, %v336_v51, 0.0  ;;  %v397_v24 = vsel %vm82_vm0, %v337_v1, 0.0 }
  0x4e   :  { %v363_v30 = vrot.slane %v362_v55, 4  ;;  %v389_v27 = vadd.f32 %v388_v16, %v387_v14  ;;  %v372_v40 = vrot.slane %v371_v11, 4  ;;  %v405_v33 = vsel %vm82_vm0, %v338_v0, 0.0 }
  0x4f   :  { %v406_v2 = vsel %vm82_vm0, %v339_v6, 0.0  ;;  %v381_v54 = vrot.slane %v380_v46, 4  ;;  %v398_v4 = vadd.f32 %v397_v24, %v396_v32  ;;  %v414_v26 = vsel %vm82_vm0, %v340_v8, 0.0  ;;  %v8399_v24 = vld [vmem:[#allocation11_spill] sm:$0xff] }
  0x50   :  { %v364_v52 = vadd.f32 %v363_v30, %v362_v55  ;;  %v390_v19 = vrot.slane %v389_v27, 4  ;;  %v373_v62 = vadd.f32 %v372_v40, %v371_v11  ;;  %v407_v18 = vadd.f32 %v406_v2, %v405_v33  ;;  %v8400_v2 = vld [vmem:[#allocation12_spill] sm:$0xff] }
  0x51   :  { %v415_v9 = vsel %vm82_vm0, %v341_v10, 0.0  ;;  %v382_v14 = vadd.f32 %v381_v54, %v380_v46  ;;  %v399_v16 = vrot.slane %v398_v4, 4  ;;  %v423_v0 = vsel %vm82_vm0, %v342_v3, 0.0 }
  0x52   :  { %v365_v45 = vrot.slane %v364_v52, 2  ;;  %v391_v51 = vadd.f32 %v390_v19, %v389_v27  ;;  %v374_v60 = vrot.slane %v373_v62, 2  ;;  %v408_v1 = vrot.slane %v407_v18, 4 }
  0x53   :  { %v416_v38 = vadd.f32 %v415_v9, %v414_v26  ;;  %v383_v55 = vrot.slane %v382_v14, 2  ;;  %v400_v43 = vadd.f32 %v399_v16, %v398_v4  ;;  %v424_v8 = vsel %vm82_vm0, %v343_v5, 0.0  ;;  %v8401_v26 = vld [vmem:[#allocation13_spill] sm:$0xff]  ;;  %v8402_v4 = vld [vmem:[#allocation14_spill] sm:$0xff]  ;;  %v8403_v5 = vld [vmem:[#allocation15_spill] sm:$0xff] }
  0x54   :  { %v366_v6 = vadd.f32 %v365_v45, %v364_v52  ;;  %v392_v30 = vrot.slane %v391_v51, 2  ;;  %v375_v32 = vadd.f32 %v374_v60, %v373_v62  ;;  %v409_v11 = vadd.f32 %v408_v1, %v407_v18 }
  0x55   :  { %v417_v40 = vrot.slane %v416_v38, 4  ;;  %v353_v10 = vmul.f32 %v4435_v23, %v8399_v24  ;;  %v384_v27 = vadd.f32 %v383_v55, %v382_v14  ;;  %v401_v33 = vrot.slane %v400_v43, 2  ;;  %v8404_v55 = vld [vmem:[#allocation16_spill] sm:$0xff] }
  0x56   :  { %v367_v46 = vrot.slane %v366_v6, 1  ;;  %v354_v54 = vmul.f32 %v4418_v25, %v8400_v2  ;;  %v4541_v19 = vadd.f32 %v392_v30, %v391_v51  ;;  %v410_v3 = vrot.slane %v409_v11, 2 }
  0x57   :  { %v425_v52 = vadd.f32 %v424_v8, %v423_v0  ;;  %v355_v60 = vmul.f32 %v4435_v23, %v8401_v26  ;;  %v356_v62 = vmul.f32 %v4418_v25, %v8402_v4  ;;  %v357_v18 = vmul.f32 %v4435_v23, %v8403_v5 }
  0x58   :  { %v376_v9 = vrot.slane %v375_v32, 1  ;;  %v385_v45 = vrot.slane %v384_v27, 1  ;;  %v4549_v14 = vadd.f32 %v401_v33, %v400_v43  ;;  %v418_v16 = vadd.f32 %v417_v40, %v416_v38 }
  0x59   :  { %v426_v1 = vrot.slane %v425_v52, 4  ;;  %v358_v51 = vmul.f32 %v4418_v25, %v8404_v55  ;;  %v359_v0 = vmul.f32 %v4435_v23, %v4285_v22  ;;  %v4555_v30 = vadd.f32 %v367_v46, %v366_v6 }
  0x5a   :  { %v432_v8 = vsel %vm82_vm0, %v4487_v7, 0.0  ;;  %v394_v24 = vrot.slane %v4541_v19, 1  ;;  %v4560_v2 = vadd.f32 %v410_v3, %v409_v11  ;;  %v433_v43 = vsel %vm82_vm0, %v4491_v41, 0.0 }
  0x5b   :  { %v427_v26 = vadd.f32 %v426_v1, %v425_v52  ;;  %v4564_v38 = vadd.f32 %v376_v9, %v375_v32  ;;  %v434_v40 = vadd.f32 %v433_v43, %v432_v8  ;;  %v441_v33 = vsel %vm82_vm0, %v4495_v12, 0.0 }
  0x5c   :  { %v442_v22 = vsel %vm82_vm0, %v4499_v13, 0.0  ;;  %v4570_v6 = vadd.f32 %v385_v45, %v384_v27  ;;  %v403_v7 = vrot.slane %v4549_v14, 1  ;;  %v419_v46 = vrot.slane %v418_v16, 2 }
  0x5d   :  { %v443_v11 = vadd.f32 %v442_v22, %v441_v33  ;;  %v435_v3 = vrot.slane %v434_v40, 4  ;;  %v450_v52 = vsel %vm82_vm0, %v4503_v44, 0.0  ;;  %v451_v41 = vsel %vm82_vm0, %v4507_v63, 0.0 }
  0x5e   :  { %v459_v32 = vsel %vm82_vm0, %v4511_v28, 0.0  ;;  %v412_v12 = vrot.slane %v4560_v2, 1  ;;  %v428_v4 = vrot.slane %v427_v26, 2  ;;  %v452_v27 = vadd.f32 %v451_v41, %v450_v52 }
  0x5f   :  { %v444_v13 = vrot.slane %v443_v11, 4  ;;  %v436_v5 = vadd.f32 %v435_v3, %v434_v40  ;;  %v460_v9 = vsel %vm82_vm0, %v4515_v53, 0.0  ;;  %v468_v45 = vsel %vm82_vm0, %v4519_v20, 0.0 }
  0x60   :  { %v469_v44 = vsel %vm82_vm0, %v353_v10, 0.0  ;;  %v420_v1 = vadd.f32 %v419_v46, %v418_v16  ;;  %v453_v63 = vrot.slane %v452_v27, 4  ;;  %v461_v8 = vadd.f32 %v460_v9, %v459_v32 }
  0x61   :  { %v445_v55 = vadd.f32 %v444_v13, %v443_v11  ;;  %v437_v43 = vrot.slane %v436_v5, 2  ;;  %v470_v28 = vadd.f32 %v469_v44, %v468_v45  ;;  %v477_v33 = vsel %vm82_vm0, %v354_v54, 0.0 }
  0x62   :  { %v478_v22 = vsel %vm82_vm0, %v355_v60, 0.0  ;;  %v429_v52 = vadd.f32 %v428_v4, %v427_v26  ;;  %v454_v3 = vadd.f32 %v453_v63, %v452_v27  ;;  %v462_v41 = vrot.slane %v461_v8, 4 }
  0x63   :  { %v446_v40 = vrot.slane %v445_v55, 2  ;;  %v438_v53 = vadd.f32 %v437_v43, %v436_v5  ;;  %v471_v23 = vrot.slane %v470_v28, 4  ;;  %v479_v25 = vadd.f32 %v478_v22, %v477_v33 }
  0x64   :  { %v486_v20 = vsel %vm82_vm0, %v356_v62, 0.0  ;;  %v455_v16 = vrot.slane %v454_v3, 2  ;;  %v463_v46 = vadd.f32 %v462_v41, %v461_v8  ;;  %v487_v11 = vsel %vm82_vm0, %v357_v18, 0.0 }
  0x65   :  { %v447_v10 = vadd.f32 %v446_v40, %v445_v55  ;;  %v421_v32 = vrot.slane %v420_v1, 1  ;;  %v472_v13 = vadd.f32 %v471_v23, %v470_v28  ;;  %v480_v9 = vrot.slane %v479_v25, 4 }
  0x66   :  { %v488_v54 = vadd.f32 %v487_v11, %v486_v20  ;;  %v430_v45 = vrot.slane %v429_v52, 1  ;;  %v456_v60 = vadd.f32 %v455_v16, %v454_v3  ;;  %v464_v26 = vrot.slane %v463_v46, 2 }
  0x67   :  { %v495_v4 = vsel %vm82_vm0, %v358_v51, 0.0  ;;  %v439_v27 = vrot.slane %v438_v53, 1  ;;  %v473_v5 = vrot.slane %v472_v13, 2  ;;  %v481_v44 = vadd.f32 %v480_v9, %v479_v25 }
  0x68   :  { %v489_v63 = vrot.slane %v488_v54, 4  ;;  %v448_v43 = vrot.slane %v447_v10, 1  ;;  %v457_v62 = vrot.slane %v456_v60, 1  ;;  %v465_v55 = vadd.f32 %v464_v26, %v463_v46 }
  0x69   :  { %v496_v8 = vsel %vm82_vm0, %v359_v0, 0.0  ;;  %v4592_v18 = vadd.f32 %v394_v24, %v4541_v19  ;;  %v482_v23 = vrot.slane %v481_v44, 2  ;;  %v4595_v22 = vadd.f32 %v403_v7, %v4549_v14 }
  0x6a   :  { %v490_v28 = vadd.f32 %v489_v63, %v488_v54  ;;  %v497_v33 = vadd.f32 %v496_v8, %v495_v4  ;;  %v4598_v51 = vadd.f32 %v412_v12, %v4560_v2  ;;  %v4600_v40 = vadd.f32 %v421_v32, %v420_v1 }
  0x6b   :  { %v474_v25 = vadd.f32 %v473_v5, %v472_v13  ;;  %v4602_v3 = vadd.f32 %v430_v45, %v429_v52  ;;  %v483_v41 = vadd.f32 %v482_v23, %v481_v44  ;;  %v4604_v16 = vadd.f32 %v439_v27, %v438_v53 }
  0x6c   :  { %v491_v20 = vrot.slane %v490_v28, 2  ;;  %v498_v0 = vrot.slane %v497_v33, 4  ;;  %v4606_v19 = vadd.f32 %v448_v43, %v447_v10  ;;  %v4608_v24 = vadd.f32 %v457_v62, %v456_v60 }
  0x6d   :  { %v466_v46 = vrot.slane %v465_v55, 1  ;;  %v4612_v2 = vmul.f32 %v4373_v31, %v4373_v31  ;;  %v512_v12 = vmul.f32 %v4377_v39, %v4377_v39  ;;  %v475_v1 = vrot.slane %v474_v25, 1 }
  0x6e   :  { %v492_v14 = vadd.f32 %v491_v20, %v490_v28  ;;  %v499_v7 = vadd.f32 %v498_v0, %v497_v33  ;;  %v513_v52 = vmul.f32 %v4375_v50, %v4375_v50  ;;  %v514_v53 = vmul.f32 %v4379_v15, %v4379_v15 }
  0x6f   :  { %v515_v10 = vmul.f32 %v4381_v17, %v4381_v17  ;;  %v484_v11 = vrot.slane %v483_v41, 1  ;;  %v516_v13 = vmul.f32 %v4383_v61, %v4383_v61  ;;  %v536_v9 = vrot.slane %v4428_v58, 7 }
  0x70   :  { %v500_v32 = vrot.slane %v499_v7, 2  ;;  %v517_v54 = vmul.f32 %v4385_v21, %v4385_v21  ;;  %v538_v45 = vrot.slane %v4432_v34, 6  ;;  %v540_v60 = vrot.slane %v4439_v56, 5 }
  0x71   :  { %v542_v26 = vrot.slane %v4443_v29, 4  ;;  %v493_v4 = vrot.slane %v492_v14, 1  ;;  %v518_v5 = vmul.f32 %v4389_v42, %v4389_v42  ;;  %v537_v44 = vsel %vm292_vm1, %v536_v9, %v4424_v36 }
  0x72   :  { %v501_v27 = vadd.f32 %v500_v32, %v499_v7  ;;  %v539_v63 = vsel %vm295_vm2, %v538_v45, %v537_v44  ;;  %v544_v58 = vrot.slane %v4447_v47, 3  ;;  %v550_v43 = vrot.slane %v513_v52, 7 }
  0x73   :  { %v552_v62 = vrot.slane %v514_v53, 6  ;;  %v541_v34 = vsel %vm298_vm3, %v540_v60, %v539_v63  ;;  %v554_v56 = vrot.slane %v515_v10, 5  ;;  %v556_v23 = vrot.slane %v516_v13, 4  ;;  %v8406_v60 = vld [vmem:[#allocation18_spill] sm:$0xff] }
  0x74   :  { %v502_v8 = vrot.slane %v501_v27, 1  ;;  %v519_v29 = vmul.f32 %v4394_v37, %v4394_v37  ;;  %v543_v28 = vsel %vm301_vm4, %v542_v26, %v541_v34  ;;  %v551_v33 = vsel %vm292_vm1, %v550_v43, %v512_v12 }
  0x75   :  { %v558_v20 = vrot.slane %v517_v54, 3  ;;  %v4641_v36 = vadd.f32 %v466_v46, %v465_v55  ;;  %v4643_v0 = vadd.f32 %v475_v1, %v474_v25  ;;  %v546_v47 = vrot.slane %v4457_v49, 2 }
  0x76   :  { %v553_v7 = vsel %vm295_vm2, %v552_v62, %v551_v33  ;;  %v4647_v52 = vadd.f32 %v484_v11, %v483_v41  ;;  %v545_v53 = vsel %vm304_vm5, %v544_v58, %v543_v28  ;;  %v560_v32 = vrot.slane %v518_v5, 2 }
  0x77   :  { %v555_v10 = vsel %vm298_vm3, %v554_v56, %v553_v7  ;;  %v4651_v13 = vadd.f32 %v493_v4, %v492_v14  ;;  %v4653_v9 = vadd.f32 %v502_v8, %v501_v27  ;;  %v548_v55 = vrot.slane %v4612_v2, 1  ;;  %v8405_v2 = vld [vmem:[#allocation17_spill] sm:$0xff]  ;;  %v8407_v4 = vld [vmem:[#allocation19_spill] sm:$0xff] }
  0x78   :  { %v557_v25 = vsel %vm301_vm4, %v556_v23, %v555_v10  ;;  %v562_v49 = vrot.slane %v519_v29, 1  ;;  %v576_v41 = vmul.f32 %v4564_v38, %v4352_v57  ;;  %v577_v12 = vmul.f32 %v4570_v6, %v4357_v48 }
  0x79   :  { %v559_v46 = vsel %vm304_vm5, %v558_v20, %v557_v25  ;;  %v547_v1 = vsel %vm307_vm6, %v546_v47, %v545_v53  ;;  %v575_v14 = vmul.f32 %v4555_v30, %v4347_v35  ;;  %v578_v11 = vmul.f32 %v4592_v18, %v4362_v59 }
  0x7a   :  { %v579_v54 = vmul.f32 %v4595_v22, %v8405_v2  ;;  %v561_v45 = vsel %vm307_vm6, %v560_v32, %v559_v46  ;;  %v580_v26 = vmul.f32 %v4598_v51, %v8406_v60  ;;  %v581_v27 = vmul.f32 %v4600_v40, %v8407_v4 }
  0x7b   :  { %v584_v5 = vmul.f32 %v4606_v19, %v4375_v50  ;;  %v582_v44 = vmul.f32 %v4602_v3, %v4373_v31  ;;  %v585_v63 = vmul.f32 %v4608_v24, %v4379_v15  ;;  %v586_v58 = vmul.f32 %v4641_v36, %v4381_v17 }
  0x7c   :  { %v587_v43 = vmul.f32 %v4643_v0, %v4383_v61  ;;  %v583_v62 = vmul.f32 %v4604_v16, %v4377_v39  ;;  %v588_v8 = vmul.f32 %v4647_v52, %v4385_v21  ;;  %v607_v34 = vrot.slane %v576_v41, 7 }
  0x7d   :  { %v609_v56 = vrot.slane %v577_v12, 6  ;;  %v589_v23 = vmul.f32 %v4651_v13, %v4389_v42  ;;  %v590_v29 = vmul.f32 %v4653_v9, %v4394_v37  ;;  %v611_v28 = vrot.slane %v578_v11, 5 }
  0x7e   :  { %v613_v33 = vrot.slane %v579_v54, 4  ;;  %v608_v20 = vsel %vm292_vm1, %v607_v34, %v575_v14  ;;  %v615_v47 = vrot.slane %v580_v26, 3  ;;  %v617_v7 = vrot.slane %v581_v27, 2 }
  0x7f   :  { %v621_v53 = vrot.slane %v584_v5, 7  ;;  %v610_v10 = vsel %vm295_vm2, %v609_v56, %v608_v20  ;;  %v623_v32 = vrot.slane %v585_v63, 6  ;;  %v625_v25 = vrot.slane %v586_v58, 5 }
  0x80   :  { %v627_v46 = vrot.slane %v587_v43, 4  ;;  %v612_v41 = vsel %vm298_vm3, %v611_v28, %v610_v10  ;;  %v619_v12 = vrot.slane %v582_v44, 1  ;;  %v629_v21 = vrot.slane %v588_v8, 3 }
  0x81   :  { %v622_v42 = vsel %vm292_vm1, %v621_v53, %v583_v62  ;;  %v549_v37 = vsel %vm310_vm7, %v548_v55, %v547_v1  ;;  %v614_v11 = vsel %vm301_vm4, %v613_v33, %v612_v41  ;;  %v631_v54 = vrot.slane %v589_v23, 2 }
  0x82   :  { %v624_v14 = vsel %vm295_vm2, %v623_v32, %v622_v42  ;;  %v563_v26 = vsel %vm310_vm7, %v562_v49, %v561_v45  ;;  %v616_v27 = vsel %vm304_vm5, %v615_v47, %v614_v11  ;;  %v633_v63 = vrot.slane %v590_v29, 1 }
  0x83   :  { %v626_v5 = vsel %vm298_vm3, %v625_v25, %v624_v14  ;;  %v618_v58 = vsel %vm307_vm6, %v617_v7, %v616_v27  ;;  %v566_v1 = vsel %vm82_vm0, %v549_v37, 0.0  ;;  %v567_v42 = vsel %vm82_vm0, %v563_v26, 0.0 }
  0x84   :  { %v628_v44 = vsel %vm301_vm4, %v627_v46, %v626_v5  ;;  %v620_v43 = vsel %vm310_vm7, %v619_v12, %v618_v58  ;;  %v568_v34 = vadd.f32 %v567_v42, %v566_v1  ;;  %v672_v37 = vsel %vm292_vm1, %v4564_v38, %v4555_v30 }
  0x85   :  { %v630_v55 = vsel %vm304_vm5, %v629_v21, %v628_v44  ;;  %v637_v49 = vsel %vm82_vm0, %v620_v43, 0.0  ;;  %v679_v7 = vsel %vm292_vm1, %v4606_v19, %v4604_v16  ;;  %v673_v32 = vsel %vm295_vm2, %v4570_v6, %v672_v37 }
  0x86   :  { %v632_v62 = vsel %vm307_vm6, %v631_v54, %v630_v55  ;;  %v569_v29 = vrot.slane %v568_v34, 4  ;;  %v680_v25 = vsel %vm295_vm2, %v4608_v24, %v679_v7  ;;  %v674_v41 = vsel %vm298_vm3, %v4592_v18, %v673_v32 }
  0x87   :  { %v634_v45 = vsel %vm310_vm7, %v633_v63, %v632_v62  ;;  %v681_v30 = vsel %vm298_vm3, %v4641_v36, %v680_v25  ;;  %v648_v38 = vlaneseq  ;;  %v675_v16 = vsel %vm301_vm4, %v4595_v22, %v674_v41 }
  0x88   :  { %v638_v8 = vsel %vm82_vm0, %v634_v45, 0.0  ;;  %v570_v20 = vadd.f32 %v569_v29, %v568_v34  ;;  %v682_v19 = vsel %vm301_vm4, %v4643_v0, %v681_v30  ;;  %v676_v6 = vsel %vm304_vm5, %v4598_v51, %v675_v16 }
  0x89   :  { %v639_v56 = vadd.f32 %v638_v8, %v637_v49  ;;  %v649_v11 = vshrl.u32 %v648_v38, 7  ;;  %v683_v24 = vsel %vm304_vm5, %v4647_v52, %v682_v19  ;;  %v677_v36 = vsel %vm307_vm6, %v4600_v40, %v676_v6 }
  0x8a   :  { %v571_v53 = vrot.slane %v570_v20, 2  ;;  %v684_v54 = vsel %vm307_vm6, %v4651_v13, %v683_v24  ;;  %v678_v0 = vsel %vm310_vm7, %v4602_v3, %v677_v36 }
  0x8b   :  { %v640_v23 = vrot.slane %v639_v56, 4  ;;  %v4734_v18 = vsub.s32 0, %v649_v11  ;;  %v685_v51 = vsel %vm310_vm7, %v4653_v9, %v684_v54 }
  0x8c   :  { %v572_v46 = vadd.f32 %v571_v53, %v570_v20 }
  0x8d   :  { %v641_v28 = vadd.f32 %v640_v23, %v639_v56  ;;  %8408 = vst [vmem:[#allocation2_spill] sm:$0xff] %v4734_v18 }
  0x8e   :  { %v573_v12 = vrot.slane %v572_v46, 1 }
  0x8f   :  { %v642_v33 = vrot.slane %v641_v28, 2 }
  0x90   :  { %v574_v14 = vadd.f32 %v573_v12, %v572_v46 }
  0x91   :  { %v643_v21 = vadd.f32 %v642_v33, %v641_v28 }
  0x93   :  { %v644_v47 = vrot.slane %v643_v21, 1 }
  0x95   :  { %v645_v10 = vadd.f32 %v644_v47, %v643_v21 }
  0x97   :  { %3854 = vrcp.f32 %v645_v10 }
  0xa4   :  { %v3855_v22 = vpop.eup %3854 }
  0xa5   :  { %v647_v26 = vmul.f32 %v3855_v22, %v574_v14 }
  0xa7   :  { %v4745_v27 = vrot.slane %v647_v26, %v4734_v18 }
  0xa9   :  { %8409 = vst [vmem:[#allocation3_spill] sm:$0xff] %v4745_v27  ;;  %v688_v52 = vmul.f32 %v678_v0, %v4745_v27  ;;  %v689_v5 = vmul.f32 %v685_v51, %v4745_v27 }
  0xab   :  { %v692_v63 = vrot.slane %v688_v52, 1  ;;  %v693_v40 = vrot.slane %v688_v52, 2  ;;  %v694_v58 = vrot.slane %v688_v52, 3  ;;  %v695_v44 = vrot.slane %v688_v52, 4 }
  0xac   :  { %v696_v13 = vrot.slane %v688_v52, 5  ;;  %v697_v43 = vrot.slane %v688_v52, 6  ;;  %v699_v55 = vrot.slane %v689_v5, 1  ;;  %v700_v1 = vrot.slane %v689_v5, 2 }
  0xad   :  { %v701_v42 = vrot.slane %v689_v5, 3  ;;  %v698_v3 = vrot.slane %v688_v52, 7  ;;  %v702_v62 = vrot.slane %v689_v5, 4  ;;  %v703_v49 = vrot.slane %v689_v5, 5 }
  0xae   :  { %v704_v9 = vrot.slane %v689_v5, 6  ;;  %v4750_v45 = vsub.f32 %v4352_v57, %v692_v63  ;;  %v4753_v8 = vsub.f32 %v4357_v48, %v693_v40  ;;  %v4756_v34 = vsub.f32 %v4362_v59, %v694_v58 }
  0xaf   :  { %v705_v56 = vrot.slane %v689_v5, 7  ;;  %v4759_v23 = vsub.f32 %v4347_v35, %v688_v52  ;;  %v4762_v29 = vsub.f32 %v8405_v2, %v695_v44  ;;  %v4765_v28 = vsub.f32 %v8406_v60, %v696_v13 }
  0xb0   :  { %v4768_v33 = vsub.f32 %v8407_v4, %v697_v43  ;;  %v4771_v57 = vsub.f32 %v4375_v50, %v699_v55  ;;  %v4774_v48 = vsub.f32 %v4379_v15, %v700_v1  ;;  %v4777_v59 = vsub.f32 %v4381_v17, %v701_v42  ;;  %v8415_v4 = vld [vmem:[#allocation20_spill] sm:$0xff]  ;;  %v8417_v50 = vld [vmem:[#allocation21_spill] sm:$0xff]  ;;  %v4866_v1 = vld [vmem:[%s8119_s0] sm:$0xff] }
  0xb1   :  { %8410 = vst [vmem:[#allocation4_spill] sm:$0xff] %v4759_v23  ;;  %8411 = vst [vmem:[#allocation5_spill] sm:$0xff] %v4765_v28  ;;  %v4780_v35 = vsub.f32 %v4373_v31, %v698_v3  ;;  %v4783_v2 = vsub.f32 %v4377_v39, %v689_v5  ;;  %v4786_v60 = vsub.f32 %v4383_v61, %v702_v62  ;;  %v754_v15 = vrot.slane %v4750_v45, 7  ;;  %v8419_v31 = vld [vmem:[#allocation22_spill] sm:$0xff]  ;;  %v4873_v3 = vld [vmem:[%s8119_s0 + $0x10] sm:$0xff] }
  0xb2   :  { %8412 = vst [vmem:[#allocation6_spill] sm:$0xff] %v4768_v33  ;;  %v4789_v20 = vsub.f32 %v8415_v4, %v703_v49  ;;  %v4792_v21 = vsub.f32 %v8417_v50, %v704_v9  ;;  %v756_v17 = vrot.slane %v4753_v8, 6  ;;  %v758_v47 = vrot.slane %v4756_v34, 5  ;;  %8423 = vst [vmem:[#allocation14_spill] sm:$0xff] %v4866_v1  ;;  %v4880_v49 = vld [vmem:[%s8119_s0 + $0x20] sm:$0xff]  ;;  %v4891_v4 = vld [vmem:[%s8119_s0 + $0x8] sm:$0xff] }
  0xb3   :  { %8413 = vst [vmem:[#allocation7_spill] sm:$0xff] %v4780_v35  ;;  %8414 = vst [vmem:[#allocation8_spill] sm:$0xff] %v4783_v2  ;;  %v4798_v37 = vsub.f32 %v8419_v31, %v705_v56  ;;  %v760_v39 = vrot.slane %v4762_v29, 4  ;;  %v762_v61 = vrot.slane %v4765_v28, 3  ;;  %v768_v7 = vrot.slane %v4771_v57, 7 }
  0xb4   :  { %8416 = vst [vmem:[#allocation9_spill] sm:$0xff] %v4789_v20  ;;  %8418 = vst [vmem:[#allocation10_spill] sm:$0xff] %v4792_v21  ;;  %v755_v53 = vsel %vm292_vm1, %v754_v15, %v4759_v23  ;;  %v770_v10 = vrot.slane %v4774_v48, 6  ;;  %v772_v32 = vrot.slane %v4777_v59, 5  ;;  %v774_v25 = vrot.slane %v4786_v60, 4  ;;  %v4898_v15 = vld [vmem:[%s8119_s0 + $0x18] sm:$0xff] }
  0xb5   :  { %8420 = vst [vmem:[#allocation11_spill] sm:$0xff] %v4798_v37  ;;  %v757_v46 = vsel %vm295_vm2, %v756_v17, %v755_v53  ;;  %v764_v41 = vrot.slane %v4768_v33, 2  ;;  %v769_v30 = vsel %vm292_vm1, %v768_v7, %v4783_v2  ;;  %v776_v38 = vrot.slane %v4789_v20, 3  ;;  %8424 = vst [vmem:[#allocation15_spill] sm:$0xff] %v4873_v3  ;;  %v4919_v7 = vld [vmem:[%s8119_s0 + $0x38] sm:$0xff] }
  0xb6   :  { %v759_v12 = vsel %vm298_vm3, %v758_v47, %v757_v46  ;;  %v766_v16 = vrot.slane %v4780_v35, 1  ;;  %v771_v19 = vsel %vm295_vm2, %v770_v10, %v769_v30  ;;  %v778_v11 = vrot.slane %v4792_v21, 2  ;;  %8425 = vst [vmem:[#allocation16_spill] sm:$0xff] %v4880_v49  ;;  %8426 = vst [vmem:[#allocation17_spill] sm:$0xff] %v4891_v4  ;;  %v4905_v47 = vld [vmem:[%s8119_s0 + $0x28] sm:$0xff]  ;;  %v4926_v10 = vld [vmem:[%s8119_s0 + $0x40] sm:$0xff] }
  0xb7   :  { %v761_v6 = vsel %vm301_vm4, %v760_v39, %v759_v12  ;;  %v773_v24 = vsel %vm298_vm3, %v772_v32, %v771_v19  ;;  %v780_v14 = vrot.slane %v4798_v37, 1  ;;  %v4830_v52 = vmul.f32 %v4759_v23, %v4759_v23  ;;  %8427 = vst [vmem:[#allocation18_spill] sm:$0xff] %v4898_v15  ;;  %8428 = vst [vmem:[#allocation19_spill] sm:$0xff] %v4905_v47  ;;  %v4912_v39 = vld [vmem:[%s8119_s0 + $0x30] sm:$0xff] }
  0xb8   :  { %v763_v36 = vsel %vm304_vm5, %v762_v61, %v761_v6  ;;  %v775_v54 = vsel %vm301_vm4, %v774_v25, %v773_v24  ;;  %v4837_v63 = vmul.f32 %v4750_v45, %v4750_v45  ;;  %v4841_v40 = vmul.f32 %v4753_v8, %v4753_v8  ;;  %8429 = vst [vmem:[#allocation20_spill] sm:$0xff] %v4912_v39  ;;  %v4933_v25 = vld [vmem:[%s8119_s0 + $0x48] sm:$0xff]  ;;  %v4968_v24 = vld [vmem:[%s8119_s0 + $0x70] sm:$0xff] }
  0xb9   :  { %v765_v22 = vsel %vm307_vm6, %v764_v41, %v763_v36  ;;  %v777_v26 = vsel %vm304_vm5, %v776_v38, %v775_v54  ;;  %v4845_v58 = vmul.f32 %v4756_v34, %v4756_v34  ;;  %v4849_v44 = vmul.f32 %v4762_v29, %v4762_v29  ;;  %8430 = vst [vmem:[#allocation21_spill] sm:$0xff] %v4919_v7  ;;  %v4940_v41 = vld [vmem:[%s8119_s0 + $0x50] sm:$0xff]  ;;  %v4947_v38 = vld [vmem:[%s8119_s0 + $0x58] sm:$0xff] }
  0xba   :  { %v4825_v0 = vsel %vm310_vm7, %v766_v16, %v765_v22  ;;  %v779_v51 = vsel %vm307_vm6, %v778_v11, %v777_v26  ;;  %v4853_v13 = vmul.f32 %v4765_v28, %v4765_v28  ;;  %v4857_v43 = vmul.f32 %v4768_v33, %v4768_v33  ;;  %8431 = vst [vmem:[#allocation22_spill] sm:$0xff] %v4926_v10  ;;  %v4954_v16 = vld [vmem:[%s8119_s0 + $0x60] sm:$0xff]  ;;  %v4961_v11 = vld [vmem:[%s8119_s0 + $0x68] sm:$0xff]  ;;  %v4975_v36 = vld [vmem:[%s8119_s0 + $0x78] sm:$0xff] }
  0xbb   :  { %8421 = vst [vmem:[#allocation12_spill] sm:$0xff] %v4825_v0  ;;  %v4833_v5 = vsel %vm310_vm7, %v780_v14, %v779_v51  ;;  %v4861_v55 = vmul.f32 %v4780_v35, %v4780_v35  ;;  %v784_v42 = vmul.f32 %v4866_v1, %v4825_v0  ;;  %v786_v62 = vmul.f32 %v4873_v3, %v4825_v0  ;;  %v4982_v22 = vld [vmem:[%s8119_s0 + $0x80] sm:$0xff]  ;;  %v4991_v51 = vld [vmem:[%s8119_s0 + $0x88] sm:$0xff] }
  0xbc   :  { %8422 = vst [vmem:[#allocation13_spill] sm:$0xff] %v4833_v5  ;;  %v788_v9 = vmul.f32 %v4880_v49, %v4825_v0  ;;  %v4886_v56 = vmul.f32 %v4783_v2, %v4783_v2  ;;  %v785_v50 = vmul.f32 %v4891_v4, %v4833_v5  ;;  %v787_v17 = vmul.f32 %v4898_v15, %v4833_v5 }
  0xbd   :  { %v789_v31 = vmul.f32 %v4905_v47, %v4833_v5  ;;  %v790_v61 = vmul.f32 %v4912_v39, %v4825_v0  ;;  %v791_v53 = vmul.f32 %v4919_v7, %v4833_v5  ;;  %v792_v32 = vmul.f32 %v4926_v10, %v4825_v0  ;;  %8432 = vst [vmem:[#allocation25_spill] sm:$0xff] %v4933_v25 }
  0xbe   :  { %v793_v46 = vmul.f32 %v4933_v25, %v4833_v5  ;;  %8433 = vst [vmem:[#allocation26_spill] sm:$0xff] %v4940_v41  ;;  %v794_v30 = vmul.f32 %v4940_v41, %v4825_v0  ;;  %8434 = vst [vmem:[#allocation27_spill] sm:$0xff] %v4947_v38  ;;  %v795_v12 = vmul.f32 %v4947_v38, %v4833_v5  ;;  %v817_v7 = vsel %vm82_vm0, %v785_v50, 0.0 }
  0xbf   :  { %8435 = vst [vmem:[#allocation28_spill] sm:$0xff] %v4954_v16  ;;  %v796_v19 = vmul.f32 %v4954_v16, %v4825_v0  ;;  %8436 = vst [vmem:[#allocation29_spill] sm:$0xff] %v4961_v11  ;;  %v797_v6 = vmul.f32 %v4961_v11, %v4833_v5  ;;  %v798_v14 = vmul.f32 %v4968_v24, %v4825_v0  ;;  %v825_v39 = vsel %vm82_vm0, %v786_v62, 0.0 }
  0xc0   :  { %8437 = vst [vmem:[#allocation30_spill] sm:$0xff] %v4968_v24  ;;  %8438 = vst [vmem:[#allocation31_spill] sm:$0xff] %v4975_v36  ;;  %v799_v54 = vmul.f32 %v4975_v36, %v4833_v5  ;;  %v4986_v26 = vmul.f32 %v4982_v22, %v4825_v0  ;;  %v4995_v24 = vmul.f32 %v4991_v51, %v4833_v5  ;;  %v5000_v36 = vld [vmem:[%s8119_s0 + $0x90] sm:$0xff]  ;;  %v826_v15 = vsel %vm82_vm0, %v787_v17, 0.0 }
  0xc1   :  { %8439 = vst [vmem:[#allocation32_spill] sm:$0xff] %v4982_v22  ;;  %8440 = vst [vmem:[#allocation33_spill] sm:$0xff] %v4991_v51  ;;  %v5004_v11 = vmul.f32 %v5000_v36, %v4825_v0  ;;  %v5009_v22 = vld [vmem:[%s8119_s0 + $0x98] sm:$0xff]  ;;  %v5018_v51 = vld [vmem:[%s8119_s0 + $0xa0] sm:$0xff]  ;;  %v835_v4 = vsel %vm82_vm0, %v789_v31, 0.0  ;;  %v827_v49 = vadd.f32 %v826_v15, %v825_v39  ;;  %v843_v1 = vsel %vm82_vm0, %v790_v61, 0.0 }
  0xc2   :  { %8441 = vst [vmem:[#allocation34_spill] sm:$0xff] %v5000_v36  ;;  %8442 = vst [vmem:[#allocation35_spill] sm:$0xff] %v5009_v22  ;;  %v5013_v16 = vmul.f32 %v5009_v22, %v4833_v5  ;;  %v5022_v38 = vmul.f32 %v5018_v51, %v4825_v0  ;;  %v5027_v36 = vld [vmem:[%s8119_s0 + $0xa8] sm:$0xff]  ;;  %v5036_v22 = vld [vmem:[%s8119_s0 + $0xb0] sm:$0xff]  ;;  %v853_v50 = vsel %vm82_vm0, %v793_v46, 0.0  ;;  %v861_v17 = vsel %vm82_vm0, %v794_v30, 0.0 }
  0xc3   :  { %8443 = vst [vmem:[#allocation36_spill] sm:$0xff] %v5018_v51  ;;  %8444 = vst [vmem:[#allocation37_spill] sm:$0xff] %v5027_v36  ;;  %v5031_v41 = vmul.f32 %v5027_v36, %v4833_v5  ;;  %v5040_v25 = vmul.f32 %v5036_v22, %v4825_v0  ;;  %v5045_v51 = vld [vmem:[%s8119_s0 + $0xb8] sm:$0xff]  ;;  %v816_v36 = vsel %vm82_vm0, %v784_v42, 0.0  ;;  %v852_v42 = vsel %vm82_vm0, %v792_v32, 0.0 }
  0xc4   :  { %8445 = vst [vmem:[#allocation38_spill] sm:$0xff] %v5036_v22  ;;  %8446 = vst [vmem:[#allocation39_spill] sm:$0xff] %v5045_v51  ;;  %v5049_v10 = vmul.f32 %v5045_v51, %v4833_v5  ;;  %v818_v47 = vadd.f32 %v817_v7, %v816_v36  ;;  %v834_v22 = vsel %vm82_vm0, %v788_v9, 0.0  ;;  %v844_v51 = vsel %vm82_vm0, %v791_v53, 0.0 }
  0xc5   :  { %v836_v3 = vadd.f32 %v835_v4, %v834_v22  ;;  %v845_v27 = vadd.f32 %v844_v51, %v843_v1  ;;  %v828_v62 = vrot.slane %v827_v49, 4  ;;  %v854_v36 = vadd.f32 %v853_v50, %v852_v42 }
  0xc6   :  { %v819_v18 = vrot.slane %v818_v47, 4  ;;  %v862_v15 = vsel %vm82_vm0, %v795_v12, 0.0  ;;  %v870_v4 = vsel %vm82_vm0, %v796_v19, 0.0  ;;  %v871_v32 = vsel %vm82_vm0, %v797_v6, 0.0 }
  0xc7   :  { %v837_v7 = vrot.slane %v836_v3, 4  ;;  %v846_v2 = vrot.slane %v845_v27, 4  ;;  %v829_v31 = vadd.f32 %v828_v62, %v827_v49  ;;  %v855_v61 = vrot.slane %v854_v36, 4 }
  0xc8   :  { %v820_v9 = vadd.f32 %v819_v18, %v818_v47  ;;  %v863_v53 = vadd.f32 %v862_v15, %v861_v17  ;;  %v879_v46 = vsel %vm82_vm0, %v798_v14, 0.0  ;;  %v872_v35 = vadd.f32 %v871_v32, %v870_v4 }
  0xc9   :  { %v838_v39 = vadd.f32 %v837_v7, %v836_v3  ;;  %v847_v22 = vadd.f32 %v846_v2, %v845_v27  ;;  %v830_v51 = vrot.slane %v829_v31, 2  ;;  %v856_v50 = vadd.f32 %v855_v61, %v854_v36  ;;  %v5070_v3 = vld [vmem:[%s8119_s0 + $0xc0] sm:$0xff]  ;;  %v5077_v2 = vld [vmem:[%s8119_s0 + $0xc8] sm:$0xff]  ;;  %v5086_v36 = vld [vmem:[%s8119_s0 + $0xd0] sm:$0xff] }
  0xca   :  { %v821_v1 = vrot.slane %v820_v9, 2  ;;  %v864_v30 = vrot.slane %v863_v53, 4  ;;  %v880_v12 = vsel %vm82_vm0, %v799_v54, 0.0  ;;  %8447 = vst [vmem:[#allocation40_spill] sm:$0xff] %v5070_v3  ;;  %v808_v27 = vmul.f32 %v5070_v3, %v4825_v0  ;;  %8448 = vst [vmem:[#allocation41_spill] sm:$0xff] %v5077_v2 }
  0xcb   :  { %v839_v42 = vrot.slane %v838_v39, 2  ;;  %v848_v47 = vrot.slane %v847_v22, 2  ;;  %v809_v49 = vmul.f32 %v5077_v2, %v4833_v5  ;;  %v831_v19 = vadd.f32 %v830_v51, %v829_v31  ;;  %8449 = vst [vmem:[#allocation42_spill] sm:$0xff] %v5086_v36  ;;  %v5116_v51 = vld [vmem:[%s8119_s0 + $0xf0] sm:$0xff] }
  0xcc   :  { %v822_v18 = vadd.f32 %v821_v1, %v820_v9  ;;  %v865_v6 = vadd.f32 %v864_v30, %v863_v53  ;;  %v857_v54 = vrot.slane %v856_v50, 2  ;;  %v873_v62 = vrot.slane %v872_v35, 4  ;;  %v5093_v9 = vld [vmem:[%s8119_s0 + $0xd8] sm:$0xff]  ;;  %8453 = vst [vmem:[#allocation46_spill] sm:$0xff] %v5116_v51 }
  0xcd   :  { %v5081_v14 = vadd.f32 %v839_v42, %v838_v39  ;;  %v881_v7 = vadd.f32 %v880_v12, %v879_v46  ;;  %v810_v17 = vmul.f32 %v5086_v36, %v4825_v0  ;;  %8450 = vst [vmem:[#allocation43_spill] sm:$0xff] %v5093_v9  ;;  %v811_v15 = vmul.f32 %v5093_v9, %v4833_v5  ;;  %v5102_v39 = vld [vmem:[%s8119_s0 + $0xe0] sm:$0xff]  ;;  %v5109_v46 = vld [vmem:[%s8119_s0 + $0xe8] sm:$0xff] }
  0xce   :  { %v823_v4 = vrot.slane %v822_v18, 1  ;;  %v5097_v31 = vadd.f32 %v848_v47, %v847_v22  ;;  %8451 = vst [vmem:[#allocation44_spill] sm:$0xff] %v5102_v39  ;;  %v812_v61 = vmul.f32 %v5102_v39, %v4825_v0  ;;  %v866_v53 = vrot.slane %v865_v6, 2  ;;  %8452 = vst [vmem:[#allocation45_spill] sm:$0xff] %v5109_v46 }
  0xcf   :  { %v874_v1 = vadd.f32 %v873_v62, %v872_v35  ;;  %v882_v32 = vrot.slane %v881_v7, 4  ;;  %v813_v22 = vmul.f32 %v5109_v46, %v4833_v5  ;;  %v814_v42 = vmul.f32 %v5116_v51, %v4825_v0  ;;  %v5123_v35 = vld [vmem:[%s8119_s0 + $0xf8] sm:$0xff] }
  0xd0   :  { %8454 = vst [vmem:[#allocation47_spill] sm:$0xff] %v5123_v35  ;;  %v815_v30 = vmul.f32 %v5123_v35, %v4833_v5  ;;  %v832_v47 = vrot.slane %v831_v19, 1  ;;  %v841_v12 = vrot.slane %v5081_v14, 1  ;;  %v5128_v62 = vadd.f32 %v857_v54, %v856_v50 }
  0xd1   :  { %v883_v46 = vadd.f32 %v882_v32, %v881_v7  ;;  %v888_v39 = vsel %vm82_vm0, %v4986_v26, 0.0  ;;  %v5132_v9 = vadd.f32 %v823_v4, %v822_v18  ;;  %v850_v51 = vrot.slane %v5097_v31, 1 }
  0xd2   :  { %v889_v36 = vsel %vm82_vm0, %v4995_v24, 0.0  ;;  %v897_v2 = vsel %vm82_vm0, %v5004_v11, 0.0  ;;  %v867_v35 = vadd.f32 %v866_v53, %v865_v6  ;;  %v875_v3 = vrot.slane %v874_v1, 2 }
  0xd3   :  { %8455 = vst [vmem:[#allocation48_spill] sm:$0xff] %v5132_v9  ;;  %v890_v5 = vadd.f32 %v889_v36, %v888_v39  ;;  %v898_v50 = vsel %vm82_vm0, %v5013_v16, 0.0  ;;  %v5141_v54 = vadd.f32 %v832_v47, %v831_v19  ;;  %v906_v26 = vsel %vm82_vm0, %v5022_v38, 0.0 }
  0xd4   :  { %v899_v7 = vadd.f32 %v898_v50, %v897_v2  ;;  %v907_v18 = vsel %vm82_vm0, %v5031_v41, 0.0  ;;  %v859_v24 = vrot.slane %v5128_v62, 1  ;;  %v884_v4 = vrot.slane %v883_v46, 2 }
  0xd5   :  { %v891_v32 = vrot.slane %v890_v5, 4  ;;  %v908_v11 = vadd.f32 %v907_v18, %v906_v26  ;;  %v915_v36 = vsel %vm82_vm0, %v5040_v25, 0.0  ;;  %v916_v16 = vsel %vm82_vm0, %v5049_v10, 0.0 }
  0xd6   :  { %v900_v6 = vrot.slane %v899_v7, 4  ;;  %v924_v2 = vsel %vm82_vm0, %v808_v27, 0.0  ;;  %v868_v19 = vrot.slane %v867_v35, 1  ;;  %v876_v39 = vadd.f32 %v875_v3, %v874_v1 }
  0xd7   :  { %v892_v38 = vadd.f32 %v891_v32, %v890_v5  ;;  %v909_v53 = vrot.slane %v908_v11, 4  ;;  %v917_v41 = vadd.f32 %v916_v16, %v915_v36  ;;  %v925_v50 = vsel %vm82_vm0, %v809_v49, 0.0 }
  0xd8   :  { %v901_v47 = vadd.f32 %v900_v6, %v899_v7  ;;  %v933_v0 = vsel %vm82_vm0, %v810_v17, 0.0  ;;  %v885_v26 = vadd.f32 %v884_v4, %v883_v46  ;;  %v926_v28 = vadd.f32 %v925_v50, %v924_v2 }
  0xd9   :  { %v893_v18 = vrot.slane %v892_v38, 2  ;;  %v910_v33 = vadd.f32 %v909_v53, %v908_v11  ;;  %v918_v9 = vrot.slane %v917_v41, 4  ;;  %v934_v10 = vsel %vm82_vm0, %v811_v15, 0.0 }
  0xda   :  { %v902_v25 = vrot.slane %v901_v47, 2  ;;  %v942_v27 = vsel %vm82_vm0, %v812_v61, 0.0  ;;  %v927_v5 = vrot.slane %v926_v28, 4  ;;  %v935_v1 = vadd.f32 %v934_v10, %v933_v0 }
  0xdb   :  { %v894_v23 = vadd.f32 %v893_v18, %v892_v38  ;;  %v911_v3 = vrot.slane %v910_v33, 2  ;;  %v877_v7 = vrot.slane %v876_v39, 1  ;;  %v919_v6 = vadd.f32 %v918_v9, %v917_v41 }
  0xdc   :  { %v903_v32 = vadd.f32 %v902_v25, %v901_v47  ;;  %v943_v49 = vsel %vm82_vm0, %v813_v22, 0.0  ;;  %v886_v17 = vrot.slane %v885_v26, 1  ;;  %v928_v46 = vadd.f32 %v927_v5, %v926_v28 }
  0xdd   :  { %v936_v4 = vrot.slane %v935_v1, 4  ;;  %v951_v11 = vsel %vm82_vm0, %v814_v42, 0.0  ;;  %v895_v36 = vrot.slane %v894_v23, 1  ;;  %v920_v16 = vrot.slane %v919_v6, 2 }
  0xde   :  { %v944_v2 = vadd.f32 %v943_v49, %v942_v27  ;;  %v952_v15 = vsel %vm82_vm0, %v815_v30, 0.0  ;;  %v904_v61 = vrot.slane %v903_v32, 1  ;;  %v912_v38 = vadd.f32 %v911_v3, %v910_v33 }
  0xdf   :  { %v929_v53 = vrot.slane %v928_v46, 2  ;;  %v937_v50 = vadd.f32 %v936_v4, %v935_v1  ;;  %v5161_v0 = vadd.f32 %v841_v12, %v5081_v14  ;;  %v5164_v9 = vadd.f32 %v850_v51, %v5097_v31 }
  0xe0   :  { %v945_v22 = vrot.slane %v944_v2, 4  ;;  %v953_v28 = vadd.f32 %v952_v15, %v951_v11  ;;  %v5167_v47 = vadd.f32 %v859_v24, %v5128_v62  ;;  %v921_v42 = vadd.f32 %v920_v16, %v919_v6 }
  0xe1   :  { %v930_v41 = vadd.f32 %v929_v53, %v928_v46  ;;  %v938_v18 = vrot.slane %v937_v50, 2  ;;  %v5169_v25 = vadd.f32 %v868_v19, %v867_v35  ;;  %v5171_v30 = vadd.f32 %v877_v7, %v876_v39 }
  0xe2   :  { %v946_v33 = vadd.f32 %v945_v22, %v944_v2  ;;  %v954_v10 = vrot.slane %v953_v28, 4  ;;  %v5173_v27 = vadd.f32 %v886_v17, %v885_v26  ;;  %v5175_v14 = vadd.f32 %v895_v36, %v894_v23 }
  0xe3   :  { %v5177_v31 = vadd.f32 %v904_v61, %v903_v32  ;;  %v913_v51 = vrot.slane %v912_v38, 1  ;;  %v939_v12 = vadd.f32 %v938_v18, %v937_v50  ;;  %v969_v24 = vmul.f32 %v4771_v57, %v4771_v57 }
  0xe4   :  { %v947_v3 = vrot.slane %v946_v33, 2  ;;  %v955_v62 = vadd.f32 %v954_v10, %v953_v28  ;;  %v922_v5 = vrot.slane %v921_v42, 1  ;;  %v931_v35 = vrot.slane %v930_v41, 1 }
  0xe5   :  { %v970_v19 = vmul.f32 %v4774_v48, %v4774_v48  ;;  %v971_v39 = vmul.f32 %v4777_v59, %v4777_v59  ;;  %v992_v1 = vrot.slane %v4837_v63, 7  ;;  %v994_v7 = vrot.slane %v4841_v40, 6 }
  0xe6   :  { %v948_v26 = vadd.f32 %v947_v3, %v946_v33  ;;  %v956_v23 = vrot.slane %v955_v62, 2  ;;  %v972_v32 = vmul.f32 %v4786_v60, %v4786_v60  ;;  %v973_v6 = vmul.f32 %v4789_v20, %v4789_v20 }
  0xe7   :  { %v996_v49 = vrot.slane %v4845_v58, 5  ;;  %v998_v17 = vrot.slane %v4849_v44, 4  ;;  %v940_v46 = vrot.slane %v939_v12, 1  ;;  %v993_v11 = vsel %vm292_vm1, %v992_v1, %v4830_v52  ;;  %v8457_v1 = vld [vmem:[#allocation48_spill] sm:$0xff] }
  0xe8   :  { %v957_v4 = vadd.f32 %v956_v23, %v955_v62  ;;  %v1000_v36 = vrot.slane %v4853_v13, 3  ;;  %v974_v63 = vmul.f32 %v4792_v21, %v4792_v21  ;;  %v995_v40 = vsel %vm295_vm2, %v994_v7, %v993_v11 }
  0xe9   :  { %v1006_v16 = vrot.slane %v969_v24, 7  ;;  %v1008_v2 = vrot.slane %v970_v19, 6  ;;  %v949_v15 = vrot.slane %v948_v26, 1  ;;  %v997_v61 = vsel %vm298_vm3, %v996_v49, %v995_v40  ;;  %v8459_v49 = vld [vmem:[#allocation6_spill] sm:$0xff]  ;;  %v8461_v40 = vld [vmem:[#allocation8_spill] sm:$0xff] }
  0xea   :  { %v1002_v58 = vrot.slane %v4857_v43, 2  ;;  %v1010_v44 = vrot.slane %v971_v39, 5  ;;  %v958_v53 = vrot.slane %v957_v4, 1  ;;  %v999_v50 = vsel %vm301_vm4, %v998_v17, %v997_v61 }
  0xeb   :  { %v1007_v52 = vsel %vm292_vm1, %v1006_v16, %v4886_v56  ;;  %v1012_v13 = vrot.slane %v972_v32, 4  ;;  %v5204_v22 = vadd.f32 %v913_v51, %v912_v38  ;;  %v975_v28 = vmul.f32 %v4798_v37, %v4798_v37  ;;  %v8458_v32 = vld [vmem:[#allocation5_spill] sm:$0xff] }
  0xec   :  { %v1001_v18 = vsel %vm304_vm5, %v1000_v36, %v999_v50  ;;  %v1009_v33 = vsel %vm295_vm2, %v1008_v2, %v1007_v52  ;;  %v5210_v10 = vadd.f32 %v922_v5, %v921_v42  ;;  %v5212_v43 = vadd.f32 %v931_v35, %v930_v41 }
  0xed   :  { %v1011_v3 = vsel %vm298_vm3, %v1010_v44, %v1009_v33  ;;  %v1014_v62 = vrot.slane %v973_v6, 3  ;;  %v5215_v24 = vadd.f32 %v940_v46, %v939_v12  ;;  %v5217_v56 = vadd.f32 %v949_v15, %v948_v26  ;;  %v8456_v26 = vld [vmem:[#allocation4_spill] sm:$0xff]  ;;  %v8460_v46 = vld [vmem:[#allocation7_spill] sm:$0xff] }
  0xee   :  { %v1004_v38 = vrot.slane %v4861_v55, 1  ;;  %v1013_v51 = vsel %vm301_vm4, %v1012_v13, %v1011_v3  ;;  %v5221_v19 = vadd.f32 %v958_v53, %v957_v4  ;;  %v1003_v39 = vsel %vm307_vm6, %v1002_v58, %v1001_v18 }
  0xef   :  { %v1016_v23 = vrot.slane %v974_v63, 2  ;;  %v1032_v42 = vmul.f32 %v5141_v54, %v4750_v45  ;;  %v1018_v41 = vrot.slane %v975_v28, 1  ;;  %v1033_v5 = vmul.f32 %v5161_v0, %v4753_v8 }
  0xf0   :  { %v1034_v12 = vmul.f32 %v5164_v9, %v4756_v34  ;;  %v1035_v55 = vmul.f32 %v5167_v47, %v4762_v29  ;;  %v1015_v35 = vsel %vm304_vm5, %v1014_v62, %v1013_v51  ;;  %v1031_v7 = vmul.f32 %v8457_v1, %v8456_v26 }
  0xf1   :  { %v1036_v6 = vmul.f32 %v5169_v25, %v8458_v32  ;;  %v1037_v17 = vmul.f32 %v5171_v30, %v8459_v49  ;;  %v1038_v4 = vmul.f32 %v5173_v27, %v8460_v46  ;;  %v1040_v11 = vmul.f32 %v5177_v31, %v4771_v57 }
  0xf2   :  { %v1041_v36 = vmul.f32 %v5204_v22, %v4774_v48  ;;  %v1042_v63 = vmul.f32 %v5210_v10, %v4777_v59  ;;  %v1039_v16 = vmul.f32 %v5175_v14, %v8461_v40  ;;  %v1043_v2 = vmul.f32 %v5212_v43, %v4786_v60 }
  0xf3   :  { %v1044_v15 = vmul.f32 %v5215_v24, %v4789_v20  ;;  %v1063_v61 = vrot.slane %v1032_v42, 7  ;;  %v1045_v58 = vmul.f32 %v5217_v56, %v4792_v21  ;;  %v1065_v44 = vrot.slane %v1033_v5, 6 }
  0xf4   :  { %v1067_v53 = vrot.slane %v1034_v12, 5  ;;  %v1069_v50 = vrot.slane %v1035_v55, 4  ;;  %v1046_v52 = vmul.f32 %v5221_v19, %v4798_v37  ;;  %v1071_v28 = vrot.slane %v1036_v6, 3 }
  0xf5   :  { %v1064_v13 = vsel %vm292_vm1, %v1063_v61, %v1031_v7  ;;  %v1073_v18 = vrot.slane %v1037_v17, 2  ;;  %v1077_v3 = vrot.slane %v1040_v11, 7  ;;  %v1079_v62 = vrot.slane %v1041_v36, 6 }
  0xf6   :  { %v1066_v33 = vsel %vm295_vm2, %v1065_v44, %v1064_v13  ;;  %v1081_v51 = vrot.slane %v1042_v63, 5  ;;  %v1017_v42 = vsel %vm307_vm6, %v1016_v23, %v1015_v35  ;;  %v1075_v21 = vrot.slane %v1038_v4, 1 }
  0xf7   :  { %v1068_v20 = vsel %vm298_vm3, %v1067_v53, %v1066_v33  ;;  %v1083_v5 = vrot.slane %v1043_v2, 4  ;;  %v1078_v55 = vsel %vm292_vm1, %v1077_v3, %v1039_v16  ;;  %v1085_v37 = vrot.slane %v1044_v15, 3 }
  0xf8   :  { %v1070_v12 = vsel %vm301_vm4, %v1069_v50, %v1068_v20  ;;  %v1005_v7 = vsel %vm310_vm7, %v1004_v38, %v1003_v39  ;;  %v1080_v17 = vsel %vm295_vm2, %v1079_v62, %v1078_v55  ;;  %v1087_v11 = vrot.slane %v1045_v58, 2 }
  0xf9   :  { %v1072_v6 = vsel %vm304_vm5, %v1071_v28, %v1070_v12  ;;  %v1019_v36 = vsel %vm310_vm7, %v1018_v41, %v1017_v42  ;;  %v1082_v35 = vsel %vm298_vm3, %v1081_v51, %v1080_v17  ;;  %v1089_v4 = vrot.slane %v1046_v52, 1  ;;  %v8464_v17 = vld [vmem:[#allocation24_spill] sm:$0xff] }
  0xfa   :  { %v1074_v23 = vsel %vm307_vm6, %v1073_v18, %v1072_v6  ;;  %v1084_v20 = vsel %vm301_vm4, %v1083_v5, %v1082_v35  ;;  %v1022_v38 = vsel %vm82_vm0, %v1005_v7, 0.0  ;;  %v1023_v39 = vsel %vm82_vm0, %v1019_v36, 0.0  ;;  %v8462_v7 = vld [vmem:[#allocation23_spill] sm:$0xff] }
  0xfb   :  { %v1076_v63 = vsel %vm310_vm7, %v1075_v21, %v1074_v23  ;;  %v1086_v16 = vsel %vm304_vm5, %v1085_v37, %v1084_v20  ;;  %v1024_v58 = vadd.f32 %v1023_v39, %v1022_v38  ;;  %v1128_v18 = vsel %vm292_vm1, %v5141_v54, %v8457_v1  ;;  %v8463_v6 = vld [vmem:[#allocation3_spill] sm:$0xff]  ;;  %v3902_v23 = vld [vmem:[%s8121_s2] sm:$0xff]  ;;  %v8466_v20 = vld [vmem:[#allocation12_spill] sm:$0xff] }
  0xfc   :  { %v1088_v2 = vsel %vm307_vm6, %v1087_v11, %v1086_v16  ;;  %v1093_v15 = vsel %vm82_vm0, %v1076_v63, 0.0  ;;  %v1135_v33 = vsel %vm292_vm1, %v5177_v31, %v5175_v14  ;;  %v1129_v51 = vsel %vm295_vm2, %v5161_v0, %v1128_v18  ;;  %v8465_v63 = vld [vmem:[#allocation2_spill] sm:$0xff]  ;;  %v8467_v38 = vld [vmem:[#allocation13_spill] sm:$0xff] }
  0xfd   :  { %v1090_v41 = vsel %vm310_vm7, %v1089_v4, %v1088_v2  ;;  %v1025_v21 = vrot.slane %v1024_v58, 4  ;;  %v1136_v42 = vsel %vm295_vm2, %v5204_v22, %v1135_v33  ;;  %v1130_v12 = vsel %vm298_vm3, %v5164_v9, %v1129_v51 }
  0xfe   :  { %v1094_v61 = vsel %vm82_vm0, %v1090_v41, 0.0  ;;  %v1137_v54 = vsel %vm298_vm3, %v5210_v10, %v1136_v42  ;;  %v1131_v14 = vsel %vm301_vm4, %v5167_v47, %v1130_v12  ;;  %v652_v9 = vmul.f32 %v8463_v6, %v8462_v7 }
  0xff   :  { %v1095_v44 = vadd.f32 %v1094_v61, %v1093_v15  ;;  %v1026_v13 = vadd.f32 %v1025_v21, %v1024_v58  ;;  %v1138_v31 = vsel %vm301_vm4, %v5212_v43, %v1137_v54  ;;  %v1132_v0 = vsel %vm304_vm5, %v5169_v25, %v1131_v14 }
 0x100   :  { %v1139_v22 = vsel %vm304_vm5, %v5215_v24, %v1138_v31  ;;  %v653_v10 = vmul.f32 %v8463_v6, %v8464_v17  ;;  %v1133_v11 = vsel %vm307_vm6, %v5171_v30, %v1132_v0  ;;  %v654_v35 = vsub.f32 %v3902_v23, %v652_v9  ;;  %v3903_v30 = vld [vmem:[%s8121_s2 + $0x8] sm:$0xff] }
 0x101   :  { %v1096_v53 = vrot.slane %v1095_v44, 4  ;;  %v1027_v3 = vrot.slane %v1026_v13, 2  ;;  %v1140_v47 = vsel %vm307_vm6, %v5217_v56, %v1139_v22  ;;  %v1134_v25 = vsel %vm310_vm7, %v5173_v27, %v1133_v11 }
 0x102   :  { %v1141_v24 = vsel %vm310_vm7, %v5221_v19, %v1140_v47  ;;  %v655_v4 = vsub.f32 %v3903_v30, %v653_v10 }
 0x103   :  { %v1097_v50 = vadd.f32 %v1096_v53, %v1095_v44  ;;  %v1028_v5 = vadd.f32 %v1027_v3, %v1026_v13 }
 0x105   :  { %v1098_v52 = vrot.slane %v1097_v50, 2  ;;  %v1029_v1 = vrot.slane %v1028_v5, 1 }
 0x107   :  { %v1099_v37 = vadd.f32 %v1098_v52, %v1097_v50  ;;  %v1030_v55 = vadd.f32 %v1029_v1, %v1028_v5 }
 0x109   :  { %v1100_v28 = vrot.slane %v1099_v37, 1 }
 0x10b   :  { %v1101_v62 = vadd.f32 %v1100_v28, %v1099_v37 }
 0x10d   :  { %3856 = vrcp.f32 %v1101_v62 }
 0x11a   :  { %v3857_v43 = vpop.eup %3856 }
 0x11b   :  { %v1103_v36 = vmul.f32 %v3857_v43, %v1030_v55 }
 0x11d   :  { %v1107_v56 = vrot.slane %v1103_v36, %v8465_v63 }
 0x11f   :  { %v1108_v16 = vmul.f32 %v1107_v56, %v8466_v20  ;;  %v1109_v39 = vmul.f32 %v1107_v56, %v8467_v38  ;;  %v1144_v27 = vmul.f32 %v1134_v25, %v1107_v56  ;;  %v1145_v2 = vmul.f32 %v1141_v24, %v1107_v56 }
 0x121   :  { %v5321_v15 = vsub.f32 %v654_v35, %v1108_v16  ;;  %v5323_v19 = vsub.f32 %v655_v4, %v1109_v39  ;;  %v1148_v41 = vrot.slane %v1144_v27, 1  ;;  %v1149_v61 = vrot.slane %v1144_v27, 2 }
 0x122   :  { %v1150_v58 = vrot.slane %v1144_v27, 3  ;;  %v1151_v44 = vrot.slane %v1144_v27, 4  ;;  %v1152_v53 = vrot.slane %v1144_v27, 5  ;;  %v1153_v21 = vrot.slane %v1144_v27, 6 }
 0x123   :  { %8468 = vst [vmem:[#allocation4_spill] sm:$0xff] %v5321_v15  ;;  %8469 = vst [vmem:[#allocation48_spill] sm:$0xff] %v5323_v19  ;;  %v1155_v50 = vrot.slane %v1145_v2, 1  ;;  %v1156_v52 = vrot.slane %v1145_v2, 2  ;;  %v1157_v13 = vrot.slane %v1145_v2, 3  ;;  %v1154_v37 = vrot.slane %v1144_v27, 7 }
 0x124   :  { %v1158_v28 = vrot.slane %v1145_v2, 4  ;;  %v1159_v18 = vrot.slane %v1145_v2, 5  ;;  %v1160_v33 = vrot.slane %v1145_v2, 6  ;;  %v5326_v3 = vsub.f32 %v4750_v45, %v1148_v41 }
 0x125   :  { %v5329_v62 = vsub.f32 %v4753_v8, %v1149_v61  ;;  %v5332_v51 = vsub.f32 %v4756_v34, %v1150_v58  ;;  %v1161_v42 = vrot.slane %v1145_v2, 7  ;;  %v5335_v5 = vsub.f32 %v8456_v26, %v1144_v27 }
 0x126   :  { %v5338_v12 = vsub.f32 %v4762_v29, %v1151_v44  ;;  %v5341_v54 = vsub.f32 %v8458_v32, %v1152_v53  ;;  %v5344_v1 = vsub.f32 %v8459_v49, %v1153_v21  ;;  %v5347_v45 = vsub.f32 %v4771_v57, %v1155_v50  ;;  %v8475_v49 = vld [vmem:[#allocation9_spill] sm:$0xff]  ;;  %v8477_v57 = vld [vmem:[#allocation10_spill] sm:$0xff] }
 0x127   :  { %8470 = vst [vmem:[#allocation5_spill] sm:$0xff] %v5335_v5  ;;  %v5350_v8 = vsub.f32 %v4774_v48, %v1156_v52  ;;  %v5353_v34 = vsub.f32 %v4777_v59, %v1157_v13  ;;  %v5356_v26 = vsub.f32 %v8460_v46, %v1154_v37  ;;  %v5359_v29 = vsub.f32 %v8461_v40, %v1145_v2  ;;  %v8479_v46 = vld [vmem:[#allocation11_spill] sm:$0xff]  ;;  %v8483_v13 = vld [vmem:[#allocation14_spill] sm:$0xff] }
 0x128   :  { %8471 = vst [vmem:[#allocation6_spill] sm:$0xff] %v5341_v54  ;;  %8472 = vst [vmem:[#allocation7_spill] sm:$0xff] %v5344_v1  ;;  %v5362_v32 = vsub.f32 %v4786_v60, %v1158_v28  ;;  %v5365_v14 = vsub.f32 %v8475_v49, %v1159_v18  ;;  %v5368_v31 = vsub.f32 %v8477_v57, %v1160_v33  ;;  %v1210_v48 = vrot.slane %v5326_v3, 7  ;;  %v8484_v28 = vld [vmem:[#allocation15_spill] sm:$0xff]  ;;  %v8485_v33 = vld [vmem:[#allocation16_spill] sm:$0xff] }
 0x129   :  { %8473 = vst [vmem:[#allocation8_spill] sm:$0xff] %v5356_v26  ;;  %8474 = vst [vmem:[#allocation23_spill] sm:$0xff] %v5359_v29  ;;  %v1212_v59 = vrot.slane %v5329_v62, 6  ;;  %v1214_v0 = vrot.slane %v5332_v51, 5  ;;  %v5374_v22 = vsub.f32 %v8479_v46, %v1161_v42  ;;  %v1216_v40 = vrot.slane %v5338_v12, 4  ;;  %v8486_v57 = vld [vmem:[#allocation17_spill] sm:$0xff] }
 0x12a   :  { %8476 = vst [vmem:[#allocation3_spill] sm:$0xff] %v5365_v14  ;;  %8478 = vst [vmem:[#allocation24_spill] sm:$0xff] %v5368_v31  ;;  %v1218_v60 = vrot.slane %v5341_v54, 3  ;;  %v1224_v55 = vrot.slane %v5347_v45, 7  ;;  %v1211_v7 = vsel %vm292_vm1, %v1210_v48, %v5335_v5  ;;  %v1226_v6 = vrot.slane %v5350_v8, 6  ;;  %v8488_v46 = vld [vmem:[#allocation19_spill] sm:$0xff] }
 0x12b   :  { %8480 = vst [vmem:[#allocation12_spill] sm:$0xff] %v5374_v22  ;;  %v1228_v9 = vrot.slane %v5353_v34, 5  ;;  %v1230_v17 = vrot.slane %v5362_v32, 4  ;;  %v1213_v10 = vsel %vm295_vm2, %v1212_v59, %v1211_v7  ;;  %v1220_v11 = vrot.slane %v5344_v1, 2  ;;  %v8487_v59 = vld [vmem:[#allocation18_spill] sm:$0xff]  ;;  %v8490_v7 = vld [vmem:[#allocation21_spill] sm:$0xff] }
 0x12c   :  { %v1225_v47 = vsel %vm292_vm1, %v1224_v55, %v5359_v29  ;;  %v1232_v43 = vrot.slane %v5365_v14, 3  ;;  %v1215_v36 = vsel %vm298_vm3, %v1214_v0, %v1213_v10  ;;  %v1222_v25 = vrot.slane %v5356_v26, 1  ;;  %v8492_v10 = vld [vmem:[#allocation25_spill] sm:$0xff] }
 0x12d   :  { %v1227_v24 = vsel %vm295_vm2, %v1226_v6, %v1225_v47  ;;  %v1234_v23 = vrot.slane %v5368_v31, 2  ;;  %v1217_v35 = vsel %vm301_vm4, %v1216_v40, %v1215_v36  ;;  %v1236_v4 = vrot.slane %v5374_v22, 1  ;;  %v8493_v47 = vld [vmem:[#allocation26_spill] sm:$0xff]  ;;  %v8494_v36 = vld [vmem:[#allocation27_spill] sm:$0xff] }
 0x12e   :  { %v1229_v30 = vsel %vm298_vm3, %v1228_v9, %v1227_v24  ;;  %v1219_v56 = vsel %vm304_vm5, %v1218_v60, %v1217_v35  ;;  %v5406_v2 = vmul.f32 %v5335_v5, %v5335_v5  ;;  %v5413_v61 = vmul.f32 %v5326_v3, %v5326_v3  ;;  %v8489_v60 = vld [vmem:[#allocation20_spill] sm:$0xff]  ;;  %v8491_v9 = vld [vmem:[#allocation22_spill] sm:$0xff]  ;;  %v8496_v35 = vld [vmem:[#allocation29_spill] sm:$0xff] }
 0x12f   :  { %v1231_v20 = vsel %vm301_vm4, %v1230_v17, %v1229_v30  ;;  %v1221_v16 = vsel %vm307_vm6, %v1220_v11, %v1219_v56  ;;  %v5417_v58 = vmul.f32 %v5329_v62, %v5329_v62  ;;  %v5421_v44 = vmul.f32 %v5332_v51, %v5332_v51  ;;  %v8495_v24 = vld [vmem:[#allocation28_spill] sm:$0xff] }
 0x130   :  { %v1233_v38 = vsel %vm304_vm5, %v1232_v43, %v1231_v20  ;;  %v5401_v39 = vsel %vm310_vm7, %v1222_v25, %v1221_v16  ;;  %v5425_v53 = vmul.f32 %v5338_v12, %v5338_v12  ;;  %v5429_v21 = vmul.f32 %v5341_v54, %v5341_v54  ;;  %v8498_v20 = vld [vmem:[#allocation31_spill] sm:$0xff] }
 0x131   :  { %8481 = vst [vmem:[#allocation13_spill] sm:$0xff] %v5401_v39  ;;  %v1235_v27 = vsel %vm307_vm6, %v1234_v23, %v1233_v38  ;;  %v5433_v50 = vmul.f32 %v5344_v1, %v5344_v1  ;;  %v5437_v52 = vmul.f32 %v5356_v26, %v5356_v26  ;;  %v1240_v37 = vmul.f32 %v8483_v13, %v5401_v39  ;;  %v8499_v38 = vld [vmem:[#allocation32_spill] sm:$0xff]  ;;  %v8500_v13 = vld [vmem:[#allocation33_spill] sm:$0xff] }
 0x132   :  { %v5409_v41 = vsel %vm310_vm7, %v1236_v4, %v1235_v27  ;;  %v1242_v18 = vmul.f32 %v8484_v28, %v5401_v39  ;;  %v1244_v42 = vmul.f32 %v8485_v33, %v5401_v39  ;;  %v5447_v49 = vmul.f32 %v5359_v29, %v5359_v29  ;;  %v8497_v4 = vld [vmem:[#allocation30_spill] sm:$0xff] }
 0x133   :  { %8482 = vst [vmem:[#allocation9_spill] sm:$0xff] %v5409_v41  ;;  %v1241_v48 = vmul.f32 %v8486_v57, %v5409_v41  ;;  %v1243_v0 = vmul.f32 %v8487_v59, %v5409_v41  ;;  %v1245_v40 = vmul.f32 %v8488_v46, %v5409_v41  ;;  %v1246_v55 = vmul.f32 %v8489_v60, %v5401_v39  ;;  %v8501_v33 = vld [vmem:[#allocation34_spill] sm:$0xff]  ;;  %v8502_v59 = vld [vmem:[#allocation35_spill] sm:$0xff]  ;;  %v8503_v60 = vld [vmem:[#allocation36_spill] sm:$0xff] }
 0x134   :  { %v1247_v6 = vmul.f32 %v8490_v7, %v5409_v41  ;;  %v1248_v17 = vmul.f32 %v8491_v9, %v5401_v39  ;;  %v1249_v11 = vmul.f32 %v8492_v10, %v5409_v41  ;;  %v1250_v43 = vmul.f32 %v8493_v47, %v5401_v39  ;;  %v8504_v9 = vld [vmem:[#allocation37_spill] sm:$0xff]  ;;  %v8505_v47 = vld [vmem:[#allocation38_spill] sm:$0xff] }
 0x135   :  { %v1251_v25 = vmul.f32 %v8494_v36, %v5409_v41  ;;  %v1252_v23 = vmul.f32 %v8495_v24, %v5401_v39  ;;  %v1253_v30 = vmul.f32 %v8496_v35, %v5409_v41  ;;  %v1254_v56 = vmul.f32 %v8497_v4, %v5401_v39  ;;  %v8506_v24 = vld [vmem:[#allocation39_spill] sm:$0xff] }
 0x136   :  { %v1255_v16 = vmul.f32 %v8498_v20, %v5409_v41  ;;  %v5477_v27 = vmul.f32 %v8499_v38, %v5401_v39  ;;  %v5481_v28 = vmul.f32 %v8500_v13, %v5409_v41  ;;  %v5485_v57 = vmul.f32 %v8501_v33, %v5401_v39 }
 0x137   :  { %v5489_v46 = vmul.f32 %v8502_v59, %v5409_v41  ;;  %v5493_v7 = vmul.f32 %v8503_v60, %v5401_v39  ;;  %v5497_v10 = vmul.f32 %v8504_v9, %v5409_v41  ;;  %v5501_v36 = vmul.f32 %v8505_v47, %v5401_v39 }
 0x138   :  { %v5505_v35 = vmul.f32 %v8506_v24, %v5409_v41  ;;  %v1272_v4 = vsel %vm82_vm0, %v1240_v37, 0.0  ;;  %v1273_v20 = vsel %vm82_vm0, %v1241_v48, 0.0  ;;  %v1281_v38 = vsel %vm82_vm0, %v1242_v18, 0.0 }
 0x139   :  { %v1274_v13 = vadd.f32 %v1273_v20, %v1272_v4  ;;  %v1282_v33 = vsel %vm82_vm0, %v1243_v0, 0.0  ;;  %v1290_v59 = vsel %vm82_vm0, %v1244_v42, 0.0  ;;  %v1291_v60 = vsel %vm82_vm0, %v1245_v40, 0.0 }
 0x13a   :  { %v1283_v9 = vadd.f32 %v1282_v33, %v1281_v38  ;;  %v1292_v47 = vadd.f32 %v1291_v60, %v1290_v59  ;;  %v1299_v19 = vsel %vm82_vm0, %v1246_v55, 0.0  ;;  %v1300_v24 = vsel %vm82_vm0, %v1247_v6, 0.0 }
 0x13b   :  { %v1275_v15 = vrot.slane %v1274_v13, 4  ;;  %v1301_v63 = vadd.f32 %v1300_v24, %v1299_v19  ;;  %v1308_v37 = vsel %vm82_vm0, %v1248_v17, 0.0  ;;  %v1309_v48 = vsel %vm82_vm0, %v1249_v11, 0.0 }
 0x13c   :  { %v1284_v18 = vrot.slane %v1283_v9, 4  ;;  %v1293_v4 = vrot.slane %v1292_v47, 4  ;;  %v1310_v20 = vadd.f32 %v1309_v48, %v1308_v37  ;;  %v1317_v0 = vsel %vm82_vm0, %v1250_v43, 0.0 }
 0x13d   :  { %v1276_v42 = vadd.f32 %v1275_v15, %v1274_v13  ;;  %v1302_v29 = vrot.slane %v1301_v63, 4  ;;  %v1318_v40 = vsel %vm82_vm0, %v1251_v25, 0.0  ;;  %v1326_v38 = vsel %vm82_vm0, %v1252_v23, 0.0  ;;  %v8507_v23 = vld [vmem:[#allocation40_spill] sm:$0xff] }
 0x13e   :  { %v1285_v55 = vadd.f32 %v1284_v18, %v1283_v9  ;;  %v1294_v33 = vadd.f32 %v1293_v4, %v1292_v47  ;;  %v1311_v6 = vrot.slane %v1310_v20, 4  ;;  %v1319_v59 = vadd.f32 %v1318_v40, %v1317_v0  ;;  %v8508_v47 = vld [vmem:[#allocation41_spill] sm:$0xff]  ;;  %v8510_v40 = vld [vmem:[#allocation43_spill] sm:$0xff] }
 0x13f   :  { %v1277_v19 = vrot.slane %v1276_v42, 2  ;;  %v1303_v60 = vadd.f32 %v1302_v29, %v1301_v63  ;;  %v1327_v17 = vsel %vm82_vm0, %v1253_v30, 0.0  ;;  %v1335_v11 = vsel %vm82_vm0, %v1254_v56, 0.0 }
 0x140   :  { %v1286_v24 = vrot.slane %v1285_v55, 2  ;;  %v1295_v37 = vrot.slane %v1294_v33, 2  ;;  %v1312_v48 = vadd.f32 %v1311_v6, %v1310_v20  ;;  %v1320_v43 = vrot.slane %v1319_v59, 4  ;;  %v8509_v20 = vld [vmem:[#allocation42_spill] sm:$0xff] }
 0x141   :  { %v1278_v15 = vadd.f32 %v1277_v19, %v1276_v42  ;;  %v1304_v13 = vrot.slane %v1303_v60, 2  ;;  %v1328_v26 = vadd.f32 %v1327_v17, %v1326_v38  ;;  %v1336_v25 = vsel %vm82_vm0, %v1255_v16, 0.0  ;;  %v8511_v19 = vld [vmem:[#allocation44_spill] sm:$0xff] }
 0x142   :  { %v1264_v9 = vmul.f32 %v8507_v23, %v5401_v39  ;;  %v1265_v18 = vmul.f32 %v8508_v47, %v5409_v41  ;;  %v1287_v63 = vadd.f32 %v1286_v24, %v1285_v55  ;;  %v1321_v29 = vadd.f32 %v1320_v43, %v1319_v59  ;;  %v8514_v43 = vld [vmem:[#allocation47_spill] sm:$0xff] }
 0x143   :  { %v5527_v30 = vadd.f32 %v1295_v37, %v1294_v33  ;;  %v1313_v56 = vrot.slane %v1312_v48, 2  ;;  %v1329_v4 = vrot.slane %v1328_v26, 4  ;;  %v1337_v0 = vadd.f32 %v1336_v25, %v1335_v11  ;;  %v8512_v33 = vld [vmem:[#allocation45_spill] sm:$0xff]  ;;  %v8513_v11 = vld [vmem:[#allocation46_spill] sm:$0xff] }
 0x144   :  { %v1266_v42 = vmul.f32 %v8509_v20, %v5401_v39  ;;  %v1267_v38 = vmul.f32 %v8510_v40, %v5409_v41  ;;  %v1279_v16 = vrot.slane %v1278_v15, 1  ;;  %v5533_v6 = vadd.f32 %v1304_v13, %v1303_v60 }
 0x145   :  { %v1268_v17 = vmul.f32 %v8511_v19, %v5401_v39  ;;  %v1322_v23 = vrot.slane %v1321_v29, 2  ;;  %v1330_v55 = vadd.f32 %v1329_v4, %v1328_v26  ;;  %v1338_v59 = vrot.slane %v1337_v0, 4 }
 0x146   :  { %v1269_v24 = vmul.f32 %v8512_v33, %v5409_v41  ;;  %v1270_v37 = vmul.f32 %v8513_v11, %v5401_v39  ;;  %v1271_v25 = vmul.f32 %v8514_v43, %v5409_v41  ;;  %v1288_v47 = vrot.slane %v1287_v63, 1 }
 0x147   :  { %v1297_v20 = vrot.slane %v5527_v30, 1  ;;  %v5544_v60 = vadd.f32 %v1313_v56, %v1312_v48  ;;  %v1339_v13 = vadd.f32 %v1338_v59, %v1337_v0  ;;  %v1344_v40 = vsel %vm82_vm0, %v5477_v27, 0.0 }
 0x148   :  { %v5548_v26 = vadd.f32 %v1279_v16, %v1278_v15  ;;  %v1306_v4 = vrot.slane %v5533_v6, 1  ;;  %v1345_v19 = vsel %vm82_vm0, %v5481_v28, 0.0  ;;  %v1353_v33 = vsel %vm82_vm0, %v5485_v57, 0.0 }
 0x149   :  { %v1323_v11 = vadd.f32 %v1322_v23, %v1321_v29  ;;  %v1331_v43 = vrot.slane %v1330_v55, 2  ;;  %v1346_v41 = vadd.f32 %v1345_v19, %v1344_v40  ;;  %v1354_v48 = vsel %vm82_vm0, %v5489_v46, 0.0 }
 0x14a   :  { %8515 = vst [vmem:[#allocation10_spill] sm:$0xff] %v5548_v26  ;;  %v5557_v56 = vadd.f32 %v1288_v47, %v1287_v63  ;;  %v1355_v0 = vadd.f32 %v1354_v48, %v1353_v33  ;;  %v1362_v27 = vsel %vm82_vm0, %v5493_v7, 0.0  ;;  %v1363_v15 = vsel %vm82_vm0, %v5497_v10, 0.0 }
 0x14b   :  { %v1315_v28 = vrot.slane %v5544_v60, 1  ;;  %v1340_v16 = vrot.slane %v1339_v13, 2  ;;  %v1347_v59 = vrot.slane %v1346_v41, 4  ;;  %v1364_v57 = vadd.f32 %v1363_v15, %v1362_v27 }
 0x14c   :  { %v1356_v29 = vrot.slane %v1355_v0, 4  ;;  %v1371_v23 = vsel %vm82_vm0, %v5501_v36, 0.0  ;;  %v1372_v46 = vsel %vm82_vm0, %v5505_v35, 0.0  ;;  %v1380_v63 = vsel %vm82_vm0, %v1264_v9, 0.0 }
 0x14d   :  { %v1324_v47 = vrot.slane %v1323_v11, 1  ;;  %v1332_v40 = vadd.f32 %v1331_v43, %v1330_v55  ;;  %v1348_v7 = vadd.f32 %v1347_v59, %v1346_v41  ;;  %v1365_v19 = vrot.slane %v1364_v57, 4 }
 0x14e   :  { %v1357_v33 = vadd.f32 %v1356_v29, %v1355_v0  ;;  %v1373_v10 = vadd.f32 %v1372_v46, %v1371_v23  ;;  %v1381_v48 = vsel %vm82_vm0, %v1265_v18, 0.0  ;;  %v1389_v39 = vsel %vm82_vm0, %v1266_v42, 0.0 }
 0x14f   :  { %v1341_v27 = vadd.f32 %v1340_v16, %v1339_v13  ;;  %v1349_v15 = vrot.slane %v1348_v7, 2  ;;  %v1366_v1 = vadd.f32 %v1365_v19, %v1364_v57  ;;  %v1382_v54 = vadd.f32 %v1381_v48, %v1380_v63 }
 0x150   :  { %v1358_v36 = vrot.slane %v1357_v33, 2  ;;  %v1374_v26 = vrot.slane %v1373_v10, 4  ;;  %v1390_v35 = vsel %vm82_vm0, %v1267_v38, 0.0  ;;  %v1398_v9 = vsel %vm82_vm0, %v1268_v17, 0.0 }
 0x151   :  { %v1350_v5 = vadd.f32 %v1349_v15, %v1348_v7  ;;  %v1367_v55 = vrot.slane %v1366_v1, 2  ;;  %v1383_v41 = vrot.slane %v1382_v54, 4  ;;  %v1391_v43 = vadd.f32 %v1390_v35, %v1389_v39 }
 0x152   :  { %v1333_v0 = vrot.slane %v1332_v40, 1  ;;  %v1359_v59 = vadd.f32 %v1358_v36, %v1357_v33  ;;  %v1375_v29 = vadd.f32 %v1374_v26, %v1373_v10  ;;  %v1399_v18 = vsel %vm82_vm0, %v1269_v24, 0.0 }
 0x153   :  { %v1342_v42 = vrot.slane %v1341_v27, 1  ;;  %v1384_v13 = vadd.f32 %v1383_v41, %v1382_v54  ;;  %v1392_v16 = vrot.slane %v1391_v43, 4  ;;  %v1407_v57 = vsel %vm82_vm0, %v1270_v37, 0.0 }
 0x154   :  { %v1351_v23 = vrot.slane %v1350_v5, 1  ;;  %v1376_v46 = vrot.slane %v1375_v29, 2  ;;  %v1400_v63 = vadd.f32 %v1399_v18, %v1398_v9  ;;  %v1408_v38 = vsel %vm82_vm0, %v1271_v25, 0.0 }
 0x155   :  { %v1360_v17 = vrot.slane %v1359_v59, 1  ;;  %v1368_v7 = vadd.f32 %v1367_v55, %v1366_v1  ;;  %v1385_v19 = vrot.slane %v1384_v13, 2  ;;  %v1393_v48 = vadd.f32 %v1392_v16, %v1391_v43 }
 0x156   :  { %v5577_v39 = vadd.f32 %v1297_v20, %v5527_v30  ;;  %v5580_v26 = vadd.f32 %v1306_v4, %v5533_v6  ;;  %v1401_v24 = vrot.slane %v1400_v63, 4  ;;  %v1409_v54 = vadd.f32 %v1408_v38, %v1407_v57 }
 0x157   :  { %v5583_v33 = vadd.f32 %v1315_v28, %v5544_v60  ;;  %v1377_v37 = vadd.f32 %v1376_v46, %v1375_v29  ;;  %v1386_v10 = vadd.f32 %v1385_v19, %v1384_v13  ;;  %v1394_v15 = vrot.slane %v1393_v48, 2 }
 0x158   :  { %v5585_v36 = vadd.f32 %v1324_v47, %v1323_v11  ;;  %v5587_v25 = vadd.f32 %v1333_v0, %v1332_v40  ;;  %v1402_v1 = vadd.f32 %v1401_v24, %v1400_v63  ;;  %v1410_v35 = vrot.slane %v1409_v54, 4 }
 0x159   :  { %v5589_v9 = vadd.f32 %v1342_v42, %v1341_v27  ;;  %v5591_v30 = vadd.f32 %v1351_v23, %v1350_v5  ;;  %v5593_v6 = vadd.f32 %v1360_v17, %v1359_v59  ;;  %v1369_v20 = vrot.slane %v1368_v7, 1 }
 0x15a   :  { %v1395_v4 = vadd.f32 %v1394_v15, %v1393_v48  ;;  %v1403_v55 = vrot.slane %v1402_v1, 2  ;;  %v1411_v60 = vadd.f32 %v1410_v35, %v1409_v54  ;;  %v1425_v28 = vmul.f32 %v5347_v45, %v5347_v45 }
 0x15b   :  { %v1378_v41 = vrot.slane %v1377_v37, 1  ;;  %v1387_v11 = vrot.slane %v1386_v10, 1  ;;  %v1426_v47 = vmul.f32 %v5350_v8, %v5350_v8  ;;  %v1427_v40 = vmul.f32 %v5353_v34, %v5353_v34 }
 0x15c   :  { %v1404_v27 = vadd.f32 %v1403_v55, %v1402_v1  ;;  %v1412_v5 = vrot.slane %v1411_v60, 2  ;;  %v1448_v43 = vrot.slane %v5413_v61, 7  ;;  %v1450_v0 = vrot.slane %v5417_v58, 6 }
 0x15d   :  { %v1428_v59 = vmul.f32 %v5362_v32, %v5362_v32  ;;  %v1429_v29 = vmul.f32 %v5365_v14, %v5365_v14  ;;  %v1452_v18 = vrot.slane %v5421_v44, 5  ;;  %v1454_v42 = vrot.slane %v5425_v53, 4 }
 0x15e   :  { %v1396_v13 = vrot.slane %v1395_v4, 1  ;;  %v1413_v16 = vadd.f32 %v1412_v5, %v1411_v60  ;;  %v1449_v57 = vsel %vm292_vm1, %v1448_v43, %v5406_v2  ;;  %v1456_v23 = vrot.slane %v5429_v21, 3  ;;  %v8517_v43 = vld [vmem:[#allocation10_spill] sm:$0xff] }
 0x15f   :  { %v1430_v61 = vmul.f32 %v5368_v31, %v5368_v31  ;;  %v1451_v58 = vsel %vm295_vm2, %v1450_v0, %v1449_v57  ;;  %v1462_v46 = vrot.slane %v1425_v28, 7  ;;  %v1464_v63 = vrot.slane %v1426_v47, 6 }
 0x160   :  { %v1405_v38 = vrot.slane %v1404_v27, 1  ;;  %v1453_v17 = vsel %vm298_vm3, %v1452_v18, %v1451_v58  ;;  %v1458_v44 = vrot.slane %v5433_v50, 2  ;;  %v1466_v53 = vrot.slane %v1427_v40, 5  ;;  %v8519_v18 = vld [vmem:[#allocation7_spill] sm:$0xff] }
 0x161   :  { %v1414_v19 = vrot.slane %v1413_v16, 1  ;;  %v1455_v48 = vsel %vm301_vm4, %v1454_v42, %v1453_v17  ;;  %v1463_v2 = vsel %vm292_vm1, %v1462_v46, %v5447_v49  ;;  %v1468_v21 = vrot.slane %v1428_v59, 4  ;;  %v8518_v59 = vld [vmem:[#allocation6_spill] sm:$0xff]  ;;  %v8521_v58 = vld [vmem:[#allocation23_spill] sm:$0xff] }
 0x162   :  { %v5620_v24 = vadd.f32 %v1369_v20, %v1368_v7  ;;  %v1431_v54 = vmul.f32 %v5374_v22, %v5374_v22  ;;  %v1457_v15 = vsel %vm304_vm5, %v1456_v23, %v1455_v48  ;;  %v1465_v1 = vsel %vm295_vm2, %v1464_v63, %v1463_v2 }
 0x163   :  { %v5626_v35 = vadd.f32 %v1378_v41, %v1377_v37  ;;  %v5628_v50 = vadd.f32 %v1387_v11, %v1386_v10  ;;  %v1467_v55 = vsel %vm298_vm3, %v1466_v53, %v1465_v1  ;;  %v1470_v60 = vrot.slane %v1429_v29, 3 }
 0x164   :  { %v5631_v28 = vadd.f32 %v1396_v13, %v1395_v4  ;;  %v5633_v49 = vadd.f32 %v1405_v38, %v1404_v27  ;;  %v1460_v7 = vrot.slane %v5437_v52, 1  ;;  %v1469_v20 = vsel %vm301_vm4, %v1468_v21, %v1467_v55  ;;  %v8516_v27 = vld [vmem:[#allocation5_spill] sm:$0xff]  ;;  %v8520_v13 = vld [vmem:[#allocation8_spill] sm:$0xff] }
 0x165   :  { %v5637_v47 = vadd.f32 %v1414_v19, %v1413_v16  ;;  %v1459_v40 = vsel %vm307_vm6, %v1458_v44, %v1457_v15  ;;  %v1472_v5 = vrot.slane %v1430_v61, 2  ;;  %v1488_v37 = vmul.f32 %v5557_v56, %v5326_v3 }
 0x166   :  { %v1474_v10 = vrot.slane %v1431_v54, 1  ;;  %v1489_v41 = vmul.f32 %v5577_v39, %v5329_v62  ;;  %v1490_v4 = vmul.f32 %v5580_v26, %v5332_v51  ;;  %v1491_v52 = vmul.f32 %v5583_v33, %v5338_v12 }
 0x167   :  { %v1471_v11 = vsel %vm304_vm5, %v1470_v60, %v1469_v20  ;;  %v1487_v0 = vmul.f32 %v8517_v43, %v8516_v27  ;;  %v1492_v29 = vmul.f32 %v5585_v36, %v8518_v59  ;;  %v1493_v42 = vmul.f32 %v5587_v25, %v8519_v18 }
 0x168   :  { %v1494_v16 = vmul.f32 %v5589_v9, %v8520_v13  ;;  %v1496_v57 = vmul.f32 %v5593_v6, %v5347_v45  ;;  %v1497_v23 = vmul.f32 %v5620_v24, %v5350_v8  ;;  %v1498_v61 = vmul.f32 %v5626_v35, %v5353_v34 }
 0x169   :  { %v1495_v46 = vmul.f32 %v5591_v30, %v8521_v58  ;;  %v1499_v63 = vmul.f32 %v5628_v50, %v5362_v32  ;;  %v1500_v38 = vmul.f32 %v5631_v28, %v5365_v14  ;;  %v1519_v17 = vrot.slane %v1488_v37, 7 }
 0x16a   :  { %v1501_v44 = vmul.f32 %v5633_v49, %v5368_v31  ;;  %v1521_v53 = vrot.slane %v1489_v41, 6  ;;  %v1523_v19 = vrot.slane %v1490_v4, 5  ;;  %v1525_v48 = vrot.slane %v1491_v52, 4 }
 0x16b   :  { %v1502_v2 = vmul.f32 %v5637_v47, %v5374_v22  ;;  %v1520_v21 = vsel %vm292_vm1, %v1519_v17, %v1487_v0  ;;  %v1527_v54 = vrot.slane %v1492_v29, 3  ;;  %v1529_v15 = vrot.slane %v1493_v42, 2 }
 0x16c   :  { %v1522_v1 = vsel %vm295_vm2, %v1521_v53, %v1520_v21  ;;  %v1533_v55 = vrot.slane %v1496_v57, 7  ;;  %v1535_v60 = vrot.slane %v1497_v23, 6  ;;  %v1537_v20 = vrot.slane %v1498_v61, 5 }
 0x16d   :  { %v1473_v37 = vsel %vm307_vm6, %v1472_v5, %v1471_v11  ;;  %v1524_v14 = vsel %vm298_vm3, %v1523_v19, %v1522_v1  ;;  %v1531_v31 = vrot.slane %v1494_v16, 1  ;;  %v1539_v41 = vrot.slane %v1499_v63, 4 }
 0x16e   :  { %v1526_v4 = vsel %vm301_vm4, %v1525_v48, %v1524_v14  ;;  %v1534_v52 = vsel %vm292_vm1, %v1533_v55, %v1495_v46  ;;  %v1541_v22 = vrot.slane %v1500_v38, 3  ;;  %v1461_v0 = vsel %vm310_vm7, %v1460_v7, %v1459_v40 }
 0x16f   :  { %v1528_v29 = vsel %vm304_vm5, %v1527_v54, %v1526_v4  ;;  %v1536_v42 = vsel %vm295_vm2, %v1535_v60, %v1534_v52  ;;  %v1543_v57 = vrot.slane %v1501_v44, 2  ;;  %v1475_v23 = vsel %vm310_vm7, %v1474_v10, %v1473_v37 }
 0x170   :  { %v1530_v5 = vsel %vm307_vm6, %v1529_v15, %v1528_v29  ;;  %v1538_v11 = vsel %vm298_vm3, %v1537_v20, %v1536_v42  ;;  %v1545_v16 = vrot.slane %v1502_v2, 1  ;;  %v1478_v7 = vsel %vm82_vm0, %v1461_v0, 0.0  ;;  %v8522_v42 = vld [vmem:[#allocation2_spill] sm:$0xff] }
 0x171   :  { %v1532_v61 = vsel %vm310_vm7, %v1531_v31, %v1530_v5  ;;  %v1540_v14 = vsel %vm301_vm4, %v1539_v41, %v1538_v11  ;;  %v1479_v40 = vsel %vm82_vm0, %v1475_v23, 0.0  ;;  %v1584_v15 = vsel %vm292_vm1, %v5557_v56, %v8517_v43 }
 0x172   :  { %v1542_v46 = vsel %vm304_vm5, %v1541_v22, %v1540_v14  ;;  %v1549_v38 = vsel %vm82_vm0, %v1532_v61, 0.0  ;;  %v1480_v44 = vadd.f32 %v1479_v40, %v1478_v7  ;;  %v1591_v1 = vsel %vm292_vm1, %v5593_v6, %v5591_v30  ;;  %v5961_v14 = vld [vmem:[%s8119_s0 + $0x78] sm:$0xff] }
 0x173   :  { %v1544_v63 = vsel %vm307_vm6, %v1543_v57, %v1542_v46  ;;  %v1585_v20 = vsel %vm295_vm2, %v5577_v39, %v1584_v15  ;;  %v1592_v37 = vsel %vm295_vm2, %v5620_v24, %v1591_v1  ;;  %v8523_v57 = vld [vmem:[#allocation13_spill] sm:$0xff]  ;;  %8557 = vst [vmem:[#allocation42_spill] sm:$0xff] %v5961_v14 }
 0x174   :  { %v1546_v10 = vsel %vm310_vm7, %v1545_v16, %v1544_v63  ;;  %v1481_v31 = vrot.slane %v1480_v44, 4  ;;  %v1586_v4 = vsel %vm298_vm3, %v5580_v26, %v1585_v20  ;;  %v1593_v56 = vsel %vm298_vm3, %v5626_v35, %v1592_v37 }
 0x175   :  { %v1550_v17 = vsel %vm82_vm0, %v1546_v10, 0.0  ;;  %v1587_v30 = vsel %vm301_vm4, %v5583_v33, %v1586_v4  ;;  %v1594_v6 = vsel %vm301_vm4, %v5628_v50, %v1593_v56 }
 0x176   :  { %v1551_v53 = vadd.f32 %v1550_v17, %v1549_v38  ;;  %v1482_v21 = vadd.f32 %v1481_v31, %v1480_v44  ;;  %v1588_v39 = vsel %vm304_vm5, %v5585_v36, %v1587_v30  ;;  %v1595_v24 = vsel %vm304_vm5, %v5631_v28, %v1594_v6  ;;  %v8525_v28 = vld [vmem:[#allocation9_spill] sm:$0xff] }
 0x177   :  { %v1589_v26 = vsel %vm307_vm6, %v5587_v25, %v1588_v39  ;;  %v1596_v35 = vsel %vm307_vm6, %v5633_v49, %v1595_v24 }
 0x178   :  { %v1552_v19 = vrot.slane %v1551_v53, 4  ;;  %v1483_v55 = vrot.slane %v1482_v21, 2  ;;  %v1590_v33 = vsel %vm310_vm7, %v5589_v9, %v1589_v26  ;;  %v1597_v50 = vsel %vm310_vm7, %v5637_v47, %v1596_v35 }
 0x17a   :  { %v1553_v48 = vadd.f32 %v1552_v19, %v1551_v53  ;;  %v1484_v41 = vadd.f32 %v1483_v55, %v1482_v21 }
 0x17c   :  { %v1554_v2 = vrot.slane %v1553_v48, 2  ;;  %v1485_v43 = vrot.slane %v1484_v41, 1 }
 0x17e   :  { %v1555_v22 = vadd.f32 %v1554_v2, %v1553_v48  ;;  %v1486_v52 = vadd.f32 %v1485_v43, %v1484_v41 }
 0x180   :  { %v1556_v54 = vrot.slane %v1555_v22, 1 }
 0x182   :  { %v1557_v60 = vadd.f32 %v1556_v54, %v1555_v22 }
 0x184   :  { %3858 = vrcp.f32 %v1557_v60 }
 0x191   :  { %v3859_v0 = vpop.eup %3858 }
 0x192   :  { %v1559_v29 = vmul.f32 %v3859_v0, %v1486_v52 }
 0x194   :  { %v1563_v36 = vrot.slane %v1559_v29, %v8522_v42 }
 0x196   :  { %v5726_v23 = vmul.f32 %v1563_v36, %v8523_v57  ;;  %v5729_v5 = vmul.f32 %v1563_v36, %v8525_v28  ;;  %v1600_v25 = vmul.f32 %v1590_v33, %v1563_v36  ;;  %v1601_v11 = vmul.f32 %v1597_v50, %v1563_v36 }
 0x198   :  { %8524 = vst [vmem:[#allocation11_spill] sm:$0xff] %v5726_v23  ;;  %8526 = vst [vmem:[#allocation14_spill] sm:$0xff] %v5729_v5  ;;  %v1604_v9 = vrot.slane %v1600_v25, 1  ;;  %v1605_v46 = vrot.slane %v1600_v25, 2  ;;  %v1606_v7 = vrot.slane %v1600_v25, 3  ;;  %v1607_v47 = vrot.slane %v1600_v25, 4 }
 0x199   :  { %v1608_v40 = vrot.slane %v1600_v25, 5  ;;  %v1609_v63 = vrot.slane %v1600_v25, 6  ;;  %v1611_v38 = vrot.slane %v1601_v11, 1  ;;  %v1612_v10 = vrot.slane %v1601_v11, 2 }
 0x19a   :  { %v1613_v17 = vrot.slane %v1601_v11, 3  ;;  %v1610_v44 = vrot.slane %v1600_v25, 7  ;;  %v1614_v53 = vrot.slane %v1601_v11, 4  ;;  %v1615_v19 = vrot.slane %v1601_v11, 5 }
 0x19b   :  { %v1616_v31 = vrot.slane %v1601_v11, 6  ;;  %v5736_v48 = vsub.f32 %v5326_v3, %v1604_v9  ;;  %v5739_v2 = vsub.f32 %v5329_v62, %v1605_v46  ;;  %v5742_v21 = vsub.f32 %v5332_v51, %v1606_v7 }
 0x19c   :  { %v1617_v22 = vrot.slane %v1601_v11, 7  ;;  %v5745_v54 = vsub.f32 %v8516_v27, %v1600_v25  ;;  %v5748_v15 = vsub.f32 %v5338_v12, %v1607_v47  ;;  %v5751_v1 = vsub.f32 %v8518_v59, %v1608_v40 }
 0x19d   :  { %v5754_v55 = vsub.f32 %v8519_v18, %v1609_v63  ;;  %v5757_v3 = vsub.f32 %v5347_v45, %v1611_v38  ;;  %v5760_v62 = vsub.f32 %v5350_v8, %v1612_v10  ;;  %v5763_v51 = vsub.f32 %v5353_v34, %v1613_v17  ;;  %v8534_v18 = vld [vmem:[#allocation3_spill] sm:$0xff]  ;;  %v8536_v45 = vld [vmem:[#allocation24_spill] sm:$0xff] }
 0x19e   :  { %8529 = vst [vmem:[#allocation15_spill] sm:$0xff] %v5745_v54  ;;  %8530 = vst [vmem:[#allocation16_spill] sm:$0xff] %v5751_v1  ;;  %v5766_v27 = vsub.f32 %v8520_v13, %v1610_v44  ;;  %v5769_v12 = vsub.f32 %v8521_v58, %v1601_v11  ;;  %v5772_v59 = vsub.f32 %v5362_v32, %v1614_v53  ;;  %v1666_v8 = vrot.slane %v5736_v48, 7  ;;  %v8538_v13 = vld [vmem:[#allocation12_spill] sm:$0xff] }
 0x19f   :  { %8531 = vst [vmem:[#allocation17_spill] sm:$0xff] %v5754_v55  ;;  %v5775_v60 = vsub.f32 %v8534_v18, %v1615_v19  ;;  %v5778_v20 = vsub.f32 %v8536_v45, %v1616_v31  ;;  %v1668_v34 = vrot.slane %v5739_v2, 6  ;;  %v1670_v37 = vrot.slane %v5742_v21, 5  ;;  %v5852_v31 = vld [vmem:[%s8119_s0] sm:$0xff]  ;;  %v5859_v18 = vld [vmem:[%s8119_s0 + $0x10] sm:$0xff] }
 0x1a0   :  { %8532 = vst [vmem:[#allocation18_spill] sm:$0xff] %v5766_v27  ;;  %8533 = vst [vmem:[#allocation19_spill] sm:$0xff] %v5769_v12  ;;  %v5784_v41 = vsub.f32 %v8538_v13, %v1617_v22  ;;  %v1672_v58 = vrot.slane %v5748_v15, 4  ;;  %v1674_v32 = vrot.slane %v5751_v1, 3  ;;  %v1680_v4 = vrot.slane %v5757_v3, 7  ;;  %v5877_v13 = vld [vmem:[%s8119_s0 + $0x8] sm:$0xff] }
 0x1a1   :  { %8535 = vst [vmem:[#allocation20_spill] sm:$0xff] %v5775_v60  ;;  %8537 = vst [vmem:[#allocation21_spill] sm:$0xff] %v5778_v20  ;;  %v1667_v56 = vsel %vm292_vm1, %v1666_v8, %v5745_v54  ;;  %v1682_v43 = vrot.slane %v5760_v62, 6  ;;  %v1684_v30 = vrot.slane %v5763_v51, 5  ;;  %v1686_v6 = vrot.slane %v5772_v59, 4  ;;  %v5866_v8 = vld [vmem:[%s8119_s0 + $0x20] sm:$0xff] }
 0x1a2   :  { %8539 = vst [vmem:[#allocation22_spill] sm:$0xff] %v5784_v41  ;;  %v1669_v39 = vsel %vm295_vm2, %v1668_v34, %v1667_v56  ;;  %v1676_v24 = vrot.slane %v5754_v55, 2  ;;  %v1681_v52 = vsel %vm292_vm1, %v1680_v4, %v5769_v12  ;;  %v1688_v26 = vrot.slane %v5775_v60, 3  ;;  %8542 = vst [vmem:[#allocation27_spill] sm:$0xff] %v5852_v31  ;;  %v5891_v56 = vld [vmem:[%s8119_s0 + $0x28] sm:$0xff] }
 0x1a3   :  { %v1671_v35 = vsel %vm298_vm3, %v1670_v37, %v1669_v39  ;;  %v1678_v0 = vrot.slane %v5766_v27, 1  ;;  %v1683_v29 = vsel %vm295_vm2, %v1682_v43, %v1681_v52  ;;  %v1690_v33 = vrot.slane %v5778_v20, 2  ;;  %8543 = vst [vmem:[#allocation28_spill] sm:$0xff] %v5859_v18  ;;  %8544 = vst [vmem:[#allocation29_spill] sm:$0xff] %v5866_v8  ;;  %v5905_v39 = vld [vmem:[%s8119_s0 + $0x38] sm:$0xff]  ;;  %v5912_v52 = vld [vmem:[%s8119_s0 + $0x40] sm:$0xff] }
 0x1a4   :  { %v1673_v50 = vsel %vm301_vm4, %v1672_v58, %v1671_v35  ;;  %v1685_v36 = vsel %vm298_vm3, %v1684_v30, %v1683_v29  ;;  %v1692_v57 = vrot.slane %v5784_v41, 1  ;;  %v5816_v47 = vmul.f32 %v5745_v54, %v5745_v54  ;;  %8545 = vst [vmem:[#allocation30_spill] sm:$0xff] %v5877_v13  ;;  %8547 = vst [vmem:[#allocation32_spill] sm:$0xff] %v5891_v56  ;;  %v5898_v30 = vld [vmem:[%s8119_s0 + $0x30] sm:$0xff]  ;;  %v5919_v35 = vld [vmem:[%s8119_s0 + $0x48] sm:$0xff] }
 0x1a5   :  { %v1675_v28 = vsel %vm304_vm5, %v1674_v32, %v1673_v50  ;;  %v1687_v25 = vsel %vm301_vm4, %v1686_v6, %v1685_v36  ;;  %v5823_v63 = vmul.f32 %v5736_v48, %v5736_v48  ;;  %v5827_v38 = vmul.f32 %v5739_v2, %v5739_v2  ;;  %v5884_v32 = vld [vmem:[%s8119_s0 + $0x18] sm:$0xff]  ;;  %8548 = vst [vmem:[#allocation33_spill] sm:$0xff] %v5898_v30  ;;  %v5926_v29 = vld [vmem:[%s8119_s0 + $0x50] sm:$0xff] }
 0x1a6   :  { %v1677_v11 = vsel %vm307_vm6, %v1676_v24, %v1675_v28  ;;  %v1689_v9 = vsel %vm304_vm5, %v1688_v26, %v1687_v25  ;;  %v5831_v10 = vmul.f32 %v5742_v21, %v5742_v21  ;;  %v5835_v17 = vmul.f32 %v5748_v15, %v5748_v15  ;;  %8546 = vst [vmem:[#allocation31_spill] sm:$0xff] %v5884_v32  ;;  %v5933_v50 = vld [vmem:[%s8119_s0 + $0x58] sm:$0xff]  ;;  %v5947_v25 = vld [vmem:[%s8119_s0 + $0x68] sm:$0xff] }
 0x1a7   :  { %v5811_v46 = vsel %vm310_vm7, %v1678_v0, %v1677_v11  ;;  %v1691_v7 = vsel %vm307_vm6, %v1690_v33, %v1689_v9  ;;  %v5839_v44 = vmul.f32 %v5751_v1, %v5751_v1  ;;  %v5843_v53 = vmul.f32 %v5754_v55, %v5754_v55  ;;  %8549 = vst [vmem:[#allocation34_spill] sm:$0xff] %v5905_v39  ;;  %v5954_v9 = vld [vmem:[%s8119_s0 + $0x70] sm:$0xff] }
 0x1a8   :  { %8540 = vst [vmem:[#allocation25_spill] sm:$0xff] %v5811_v46  ;;  %v5819_v40 = vsel %vm310_vm7, %v1692_v57, %v1691_v7  ;;  %v5847_v19 = vmul.f32 %v5766_v27, %v5766_v27  ;;  %v1696_v22 = vmul.f32 %v5852_v31, %v5811_v46  ;;  %v1698_v45 = vmul.f32 %v5859_v18, %v5811_v46  ;;  %v5940_v57 = vld [vmem:[%s8119_s0 + $0x60] sm:$0xff] }
 0x1a9   :  { %8541 = vst [vmem:[#allocation26_spill] sm:$0xff] %v5819_v40  ;;  %v1700_v34 = vmul.f32 %v5866_v8, %v5811_v46  ;;  %v5872_v37 = vmul.f32 %v5769_v12, %v5769_v12  ;;  %v1697_v58 = vmul.f32 %v5877_v13, %v5819_v40  ;;  %v1699_v4 = vmul.f32 %v5884_v32, %v5819_v40 }
 0x1aa   :  { %v1701_v43 = vmul.f32 %v5891_v56, %v5819_v40  ;;  %v1702_v6 = vmul.f32 %v5898_v30, %v5811_v46  ;;  %v1703_v24 = vmul.f32 %v5905_v39, %v5819_v40  ;;  %8550 = vst [vmem:[#allocation35_spill] sm:$0xff] %v5912_v52  ;;  %v1704_v26 = vmul.f32 %v5912_v52, %v5811_v46 }
 0x1ab   :  { %8551 = vst [vmem:[#allocation36_spill] sm:$0xff] %v5919_v35  ;;  %v1705_v0 = vmul.f32 %v5919_v35, %v5819_v40  ;;  %8552 = vst [vmem:[#allocation37_spill] sm:$0xff] %v5926_v29  ;;  %v1706_v33 = vmul.f32 %v5926_v29, %v5811_v46  ;;  %v1707_v36 = vmul.f32 %v5933_v50, %v5819_v40  ;;  %v1729_v32 = vsel %vm82_vm0, %v1697_v58, 0.0 }
 0x1ac   :  { %8553 = vst [vmem:[#allocation38_spill] sm:$0xff] %v5933_v50  ;;  %8554 = vst [vmem:[#allocation39_spill] sm:$0xff] %v5940_v57  ;;  %v1708_v28 = vmul.f32 %v5940_v57, %v5811_v46  ;;  %v1709_v11 = vmul.f32 %v5947_v25, %v5819_v40  ;;  %v1710_v7 = vmul.f32 %v5954_v9, %v5811_v46  ;;  %v1737_v13 = vsel %vm82_vm0, %v1698_v45, 0.0 }
 0x1ad   :  { %8555 = vst [vmem:[#allocation40_spill] sm:$0xff] %v5947_v25  ;;  %8556 = vst [vmem:[#allocation41_spill] sm:$0xff] %v5954_v9  ;;  %v1711_v16 = vmul.f32 %v5961_v14, %v5819_v40  ;;  %v5968_v25 = vld [vmem:[%s8119_s0 + $0x80] sm:$0xff]  ;;  %v5977_v9 = vld [vmem:[%s8119_s0 + $0x88] sm:$0xff]  ;;  %v1738_v18 = vsel %vm82_vm0, %v1699_v4, 0.0  ;;  %v1747_v31 = vsel %vm82_vm0, %v1701_v43, 0.0 }
 0x1ae   :  { %8558 = vst [vmem:[#allocation43_spill] sm:$0xff] %v5968_v25  ;;  %v5972_v57 = vmul.f32 %v5968_v25, %v5811_v46  ;;  %8559 = vst [vmem:[#allocation44_spill] sm:$0xff] %v5977_v9  ;;  %v5981_v50 = vmul.f32 %v5977_v9, %v5819_v40  ;;  %v5986_v14 = vld [vmem:[%s8119_s0 + $0x90] sm:$0xff]  ;;  %v5995_v25 = vld [vmem:[%s8119_s0 + $0x98] sm:$0xff]  ;;  %v1739_v5 = vadd.f32 %v1738_v18, %v1737_v13  ;;  %v1755_v23 = vsel %vm82_vm0, %v1702_v6, 0.0 }
 0x1af   :  { %8560 = vst [vmem:[#allocation45_spill] sm:$0xff] %v5986_v14  ;;  %v5990_v29 = vmul.f32 %v5986_v14, %v5811_v46  ;;  %8561 = vst [vmem:[#allocation46_spill] sm:$0xff] %v5995_v25  ;;  %v5999_v35 = vmul.f32 %v5995_v25, %v5819_v40  ;;  %v6004_v9 = vld [vmem:[%s8119_s0 + $0xa0] sm:$0xff]  ;;  %v6013_v14 = vld [vmem:[%s8119_s0 + $0xa8] sm:$0xff]  ;;  %v1765_v58 = vsel %vm82_vm0, %v1705_v0, 0.0  ;;  %v1773_v4 = vsel %vm82_vm0, %v1706_v33, 0.0 }
 0x1b0   :  { %8562 = vst [vmem:[#allocation47_spill] sm:$0xff] %v6004_v9  ;;  %v6008_v52 = vmul.f32 %v6004_v9, %v5811_v46  ;;  %8563 = vst [vmem:[#allocation5_spill] sm:$0xff] %v6013_v14  ;;  %v6017_v39 = vmul.f32 %v6013_v14, %v5819_v40  ;;  %v6022_v25 = vld [vmem:[%s8119_s0 + $0xb0] sm:$0xff]  ;;  %v6031_v9 = vld [vmem:[%s8119_s0 + $0xb8] sm:$0xff]  ;;  %v1728_v14 = vsel %vm82_vm0, %v1696_v22, 0.0  ;;  %v1764_v22 = vsel %vm82_vm0, %v1704_v26, 0.0 }
 0x1b1   :  { %8564 = vst [vmem:[#allocation10_spill] sm:$0xff] %v6022_v25  ;;  %v6026_v30 = vmul.f32 %v6022_v25, %v5811_v46  ;;  %8565 = vst [vmem:[#allocation6_spill] sm:$0xff] %v6031_v9  ;;  %v6035_v56 = vmul.f32 %v6031_v9, %v5819_v40  ;;  %v1730_v8 = vadd.f32 %v1729_v32, %v1728_v14  ;;  %v1746_v25 = vsel %vm82_vm0, %v1700_v34, 0.0 }
 0x1b2   :  { %v1748_v61 = vadd.f32 %v1747_v31, %v1746_v25  ;;  %v1756_v9 = vsel %vm82_vm0, %v1703_v24, 0.0  ;;  %v1740_v45 = vrot.slane %v1739_v5, 4  ;;  %v1766_v32 = vadd.f32 %v1765_v58, %v1764_v22 }
 0x1b3   :  { %v1731_v49 = vrot.slane %v1730_v8, 4  ;;  %v1757_v42 = vadd.f32 %v1756_v9, %v1755_v23  ;;  %v1774_v18 = vsel %vm82_vm0, %v1707_v36, 0.0  ;;  %v1782_v31 = vsel %vm82_vm0, %v1708_v28, 0.0 }
 0x1b4   :  { %v1749_v14 = vrot.slane %v1748_v61, 4  ;;  %v1741_v13 = vadd.f32 %v1740_v45, %v1739_v5  ;;  %v1767_v6 = vrot.slane %v1766_v32, 4  ;;  %v1775_v24 = vadd.f32 %v1774_v18, %v1773_v4  ;;  %v6056_v5 = vld [vmem:[%s8119_s0 + $0xc0] sm:$0xff] }
 0x1b5   :  { %v1732_v34 = vadd.f32 %v1731_v49, %v1730_v8  ;;  %v1758_v12 = vrot.slane %v1757_v42, 4  ;;  %v1783_v26 = vsel %vm82_vm0, %v1709_v11, 0.0  ;;  %v1791_v0 = vsel %vm82_vm0, %v1710_v7, 0.0  ;;  %8566 = vst [vmem:[#allocation7_spill] sm:$0xff] %v6056_v5 }
 0x1b6   :  { %v1750_v43 = vadd.f32 %v1749_v14, %v1748_v61  ;;  %v1742_v9 = vrot.slane %v1741_v13, 2  ;;  %v1768_v58 = vadd.f32 %v1767_v6, %v1766_v32  ;;  %v1776_v33 = vrot.slane %v1775_v24, 4  ;;  %v6063_v61 = vld [vmem:[%s8119_s0 + $0xc8] sm:$0xff]  ;;  %v6072_v32 = vld [vmem:[%s8119_s0 + $0xd0] sm:$0xff] }
 0x1b7   :  { %v1733_v23 = vrot.slane %v1732_v34, 2  ;;  %v1759_v25 = vadd.f32 %v1758_v12, %v1757_v42  ;;  %v1784_v27 = vadd.f32 %v1783_v26, %v1782_v31  ;;  %v1792_v36 = vsel %vm82_vm0, %v1711_v16, 0.0  ;;  %8567 = vst [vmem:[#allocation8_spill] sm:$0xff] %v6063_v61  ;;  %8568 = vst [vmem:[#allocation23_spill] sm:$0xff] %v6072_v32 }
 0x1b8   :  { %v1751_v22 = vrot.slane %v1750_v43, 2  ;;  %v1720_v42 = vmul.f32 %v6056_v5, %v5811_v46  ;;  %v1721_v12 = vmul.f32 %v6063_v61, %v5819_v40  ;;  %v1743_v28 = vadd.f32 %v1742_v9, %v1741_v13  ;;  %v6102_v9 = vld [vmem:[%s8119_s0 + $0xf0] sm:$0xff] }
 0x1b9   :  { %v1734_v49 = vadd.f32 %v1733_v23, %v1732_v34  ;;  %v1760_v8 = vrot.slane %v1759_v25, 2  ;;  %v1777_v11 = vadd.f32 %v1776_v33, %v1775_v24  ;;  %v1769_v16 = vrot.slane %v1768_v58, 2  ;;  %v6079_v34 = vld [vmem:[%s8119_s0 + $0xd8] sm:$0xff]  ;;  %8572 = vst [vmem:[#allocation24_spill] sm:$0xff] %v6102_v9 }
 0x1ba   :  { %v6067_v7 = vadd.f32 %v1751_v22, %v1750_v43  ;;  %v1785_v45 = vrot.slane %v1784_v27, 4  ;;  %v1793_v14 = vadd.f32 %v1792_v36, %v1791_v0  ;;  %v1722_v4 = vmul.f32 %v6072_v32, %v5811_v46  ;;  %8569 = vst [vmem:[#allocation13_spill] sm:$0xff] %v6079_v34  ;;  %v6088_v43 = vld [vmem:[%s8119_s0 + $0xe0] sm:$0xff]  ;;  %v6095_v0 = vld [vmem:[%s8119_s0 + $0xe8] sm:$0xff] }
 0x1bb   :  { %v1723_v18 = vmul.f32 %v6079_v34, %v5819_v40  ;;  %v1735_v31 = vrot.slane %v1734_v49, 1  ;;  %v6083_v13 = vadd.f32 %v1760_v8, %v1759_v25  ;;  %8570 = vst [vmem:[#allocation9_spill] sm:$0xff] %v6088_v43  ;;  %v1724_v6 = vmul.f32 %v6088_v43, %v5811_v46  ;;  %8571 = vst [vmem:[#allocation3_spill] sm:$0xff] %v6095_v0 }
 0x1bc   :  { %v1778_v24 = vrot.slane %v1777_v11, 2  ;;  %v1786_v23 = vadd.f32 %v1785_v45, %v1784_v27  ;;  %v1794_v26 = vrot.slane %v1793_v14, 4  ;;  %v1725_v25 = vmul.f32 %v6095_v0, %v5819_v40  ;;  %v6109_v27 = vld [vmem:[%s8119_s0 + $0xf8] sm:$0xff] }
 0x1bd   :  { %v1726_v22 = vmul.f32 %v6102_v9, %v5811_v46  ;;  %8573 = vst [vmem:[#allocation12_spill] sm:$0xff] %v6109_v27  ;;  %v1727_v33 = vmul.f32 %v6109_v27, %v5819_v40  ;;  %v1744_v8 = vrot.slane %v1743_v28, 1  ;;  %v1753_v36 = vrot.slane %v6067_v7, 1 }
 0x1be   :  { %v6114_v45 = vadd.f32 %v1769_v16, %v1768_v58  ;;  %v1795_v0 = vadd.f32 %v1794_v26, %v1793_v14  ;;  %v1800_v43 = vsel %vm82_vm0, %v5972_v57, 0.0  ;;  %v6118_v34 = vadd.f32 %v1735_v31, %v1734_v49 }
 0x1bf   :  { %v1762_v9 = vrot.slane %v6083_v13, 1  ;;  %v1801_v32 = vsel %vm82_vm0, %v5981_v50, 0.0  ;;  %v1809_v61 = vsel %vm82_vm0, %v5990_v29, 0.0  ;;  %v1779_v27 = vadd.f32 %v1778_v24, %v1777_v11 }
 0x1c0   :  { %8574 = vst [vmem:[#allocation49_spill] sm:$0xff] %v6118_v34  ;;  %v1787_v5 = vrot.slane %v1786_v23, 2  ;;  %v1802_v40 = vadd.f32 %v1801_v32, %v1800_v43  ;;  %v1810_v58 = vsel %vm82_vm0, %v5999_v35, 0.0  ;;  %v6127_v16 = vadd.f32 %v1744_v8, %v1743_v28 }
 0x1c1   :  { %v1811_v14 = vadd.f32 %v1810_v58, %v1809_v61  ;;  %v1818_v57 = vsel %vm82_vm0, %v6008_v52, 0.0  ;;  %v1819_v49 = vsel %vm82_vm0, %v6017_v39, 0.0  ;;  %v1771_v50 = vrot.slane %v6114_v45, 1 }
 0x1c2   :  { %v1796_v31 = vrot.slane %v1795_v0, 2  ;;  %v1803_v26 = vrot.slane %v1802_v40, 4  ;;  %v1820_v29 = vadd.f32 %v1819_v49, %v1818_v57  ;;  %v1827_v32 = vsel %vm82_vm0, %v6026_v30, 0.0 }
 0x1c3   :  { %v1812_v11 = vrot.slane %v1811_v14, 4  ;;  %v1828_v35 = vsel %vm82_vm0, %v6035_v56, 0.0  ;;  %v1836_v61 = vsel %vm82_vm0, %v1720_v42, 0.0  ;;  %v1780_v28 = vrot.slane %v1779_v27, 1 }
 0x1c4   :  { %v1788_v43 = vadd.f32 %v1787_v5, %v1786_v23  ;;  %v1804_v52 = vadd.f32 %v1803_v26, %v1802_v40  ;;  %v1821_v24 = vrot.slane %v1820_v29, 4  ;;  %v1829_v39 = vadd.f32 %v1828_v35, %v1827_v32 }
 0x1c5   :  { %v1813_v8 = vadd.f32 %v1812_v11, %v1811_v14  ;;  %v1837_v58 = vsel %vm82_vm0, %v1721_v12, 0.0  ;;  %v1845_v46 = vsel %vm82_vm0, %v1722_v4, 0.0  ;;  %v1797_v57 = vadd.f32 %v1796_v31, %v1795_v0 }
 0x1c6   :  { %v1805_v49 = vrot.slane %v1804_v52, 2  ;;  %v1822_v55 = vadd.f32 %v1821_v24, %v1820_v29  ;;  %v1838_v1 = vadd.f32 %v1837_v58, %v1836_v61  ;;  %v1830_v34 = vrot.slane %v1829_v39, 4 }
 0x1c7   :  { %v1814_v30 = vrot.slane %v1813_v8, 2  ;;  %v1846_v56 = vsel %vm82_vm0, %v1723_v18, 0.0  ;;  %v1854_v42 = vsel %vm82_vm0, %v1724_v6, 0.0  ;;  %v1789_v14 = vrot.slane %v1788_v43, 1 }
 0x1c8   :  { %v1806_v54 = vadd.f32 %v1805_v49, %v1804_v52  ;;  %v1823_v5 = vrot.slane %v1822_v55, 2  ;;  %v1839_v40 = vrot.slane %v1838_v1, 4  ;;  %v1847_v23 = vadd.f32 %v1846_v56, %v1845_v46 }
 0x1c9   :  { %v1815_v26 = vadd.f32 %v1814_v30, %v1813_v8  ;;  %v1831_v11 = vadd.f32 %v1830_v34, %v1829_v39  ;;  %v1855_v12 = vsel %vm82_vm0, %v1725_v25, 0.0  ;;  %v1798_v4 = vrot.slane %v1797_v57, 1 }
 0x1ca   :  { %v1840_v0 = vadd.f32 %v1839_v40, %v1838_v1  ;;  %v1848_v31 = vrot.slane %v1847_v23, 4  ;;  %v1863_v29 = vsel %vm82_vm0, %v1726_v22, 0.0  ;;  %v1807_v32 = vrot.slane %v1806_v54, 1 }
 0x1cb   :  { %v1832_v35 = vrot.slane %v1831_v11, 2  ;;  %v1856_v61 = vadd.f32 %v1855_v12, %v1854_v42  ;;  %v1864_v18 = vsel %vm82_vm0, %v1727_v33, 0.0  ;;  %v1816_v6 = vrot.slane %v1815_v26, 1 }
 0x1cc   :  { %v1824_v52 = vadd.f32 %v1823_v5, %v1822_v55  ;;  %v1841_v24 = vrot.slane %v1840_v0, 2  ;;  %v1849_v58 = vadd.f32 %v1848_v31, %v1847_v23  ;;  %v6147_v46 = vadd.f32 %v1753_v36, %v6067_v7 }
 0x1cd   :  { %v6150_v34 = vadd.f32 %v1762_v9, %v6083_v13  ;;  %v1857_v25 = vrot.slane %v1856_v61, 4  ;;  %v1865_v1 = vadd.f32 %v1864_v18, %v1863_v29  ;;  %v6153_v8 = vadd.f32 %v1771_v50, %v6114_v45 }
 0x1ce   :  { %v1833_v22 = vadd.f32 %v1832_v35, %v1831_v11  ;;  %v1842_v39 = vadd.f32 %v1841_v24, %v1840_v0  ;;  %v1850_v49 = vrot.slane %v1849_v58, 2  ;;  %v6155_v30 = vadd.f32 %v1780_v28, %v1779_v27 }
 0x1cf   :  { %v6157_v33 = vadd.f32 %v1789_v14, %v1788_v43  ;;  %v1858_v55 = vadd.f32 %v1857_v25, %v1856_v61  ;;  %v1866_v56 = vrot.slane %v1865_v1, 4  ;;  %v6159_v42 = vadd.f32 %v1798_v4, %v1797_v57 }
 0x1d0   :  { %v6161_v7 = vadd.f32 %v1807_v32, %v1806_v54  ;;  %v6163_v13 = vadd.f32 %v1816_v6, %v1815_v26  ;;  %v1825_v9 = vrot.slane %v1824_v52, 1  ;;  %v1851_v36 = vadd.f32 %v1850_v49, %v1849_v58 }
 0x1d1   :  { %v1859_v5 = vrot.slane %v1858_v55, 2  ;;  %v1867_v45 = vadd.f32 %v1866_v56, %v1865_v1  ;;  %v1881_v50 = vmul.f32 %v5757_v3, %v5757_v3  ;;  %v1834_v40 = vrot.slane %v1833_v22, 1 }
 0x1d2   :  { %v1843_v27 = vrot.slane %v1842_v39, 1  ;;  %v1882_v28 = vmul.f32 %v5760_v62, %v5760_v62  ;;  %v1883_v43 = vmul.f32 %v5763_v51, %v5763_v51  ;;  %v1904_v23 = vrot.slane %v5823_v63, 7 }
 0x1d3   :  { %v1860_v57 = vadd.f32 %v1859_v5, %v1858_v55  ;;  %v1868_v54 = vrot.slane %v1867_v45, 2  ;;  %v1906_v14 = vrot.slane %v5827_v38, 6  ;;  %v1884_v26 = vmul.f32 %v5772_v59, %v5772_v59 }
 0x1d4   :  { %v1885_v11 = vmul.f32 %v5775_v60, %v5775_v60  ;;  %v1908_v12 = vrot.slane %v5831_v10, 5  ;;  %v1910_v4 = vrot.slane %v5835_v17, 4  ;;  %v1852_v0 = vrot.slane %v1851_v36, 1 }
 0x1d5   :  { %v1869_v31 = vadd.f32 %v1868_v54, %v1867_v45  ;;  %v1905_v29 = vsel %vm292_vm1, %v1904_v23, %v5816_v47  ;;  %v1912_v32 = vrot.slane %v5839_v44, 3  ;;  %v1886_v63 = vmul.f32 %v5778_v20, %v5778_v20  ;;  %v8576_v23 = vld [vmem:[#allocation49_spill] sm:$0xff] }
 0x1d6   :  { %v1907_v38 = vsel %vm295_vm2, %v1906_v14, %v1905_v29  ;;  %v1918_v35 = vrot.slane %v1881_v50, 7  ;;  %v1920_v61 = vrot.slane %v1882_v28, 6  ;;  %v1861_v18 = vrot.slane %v1860_v57, 1 }
 0x1d7   :  { %v1909_v6 = vsel %vm298_vm3, %v1908_v12, %v1907_v38  ;;  %v1914_v10 = vrot.slane %v5843_v53, 2  ;;  %v1922_v17 = vrot.slane %v1883_v43, 5  ;;  %v1870_v24 = vrot.slane %v1869_v31, 1  ;;  %v8578_v12 = vld [vmem:[#allocation17_spill] sm:$0xff]  ;;  %v8580_v38 = vld [vmem:[#allocation19_spill] sm:$0xff] }
 0x1d8   :  { %v1911_v58 = vsel %vm301_vm4, %v1910_v4, %v1909_v6  ;;  %v1919_v47 = vsel %vm292_vm1, %v1918_v35, %v5872_v37  ;;  %v1924_v44 = vrot.slane %v1884_v26, 4  ;;  %v6190_v25 = vadd.f32 %v1825_v9, %v1824_v52  ;;  %v8577_v26 = vld [vmem:[#allocation16_spill] sm:$0xff] }
 0x1d9   :  { %v1887_v1 = vmul.f32 %v5784_v41, %v5784_v41  ;;  %v1913_v49 = vsel %vm304_vm5, %v1912_v32, %v1911_v58  ;;  %v1921_v55 = vsel %vm295_vm2, %v1920_v61, %v1919_v47  ;;  %v6196_v56 = vadd.f32 %v1834_v40, %v1833_v22 }
 0x1da   :  { %v6198_v53 = vadd.f32 %v1843_v27, %v1842_v39  ;;  %v1923_v5 = vsel %vm298_vm3, %v1922_v17, %v1921_v55  ;;  %v1926_v45 = vrot.slane %v1885_v11, 3  ;;  %v6201_v50 = vadd.f32 %v1852_v0, %v1851_v36  ;;  %v8579_v0 = vld [vmem:[#allocation18_spill] sm:$0xff] }
 0x1db   :  { %v6203_v37 = vadd.f32 %v1861_v18, %v1860_v57  ;;  %v1916_v52 = vrot.slane %v5847_v19, 1  ;;  %v1925_v9 = vsel %vm301_vm4, %v1924_v44, %v1923_v5  ;;  %v6207_v28 = vadd.f32 %v1870_v24, %v1869_v31  ;;  %v8575_v57 = vld [vmem:[#allocation15_spill] sm:$0xff] }
 0x1dc   :  { %v1915_v43 = vsel %vm307_vm6, %v1914_v10, %v1913_v49  ;;  %v1928_v54 = vrot.slane %v1886_v63, 2  ;;  %v1944_v22 = vmul.f32 %v6127_v16, %v5736_v48  ;;  %v1930_v39 = vrot.slane %v1887_v1, 1 }
 0x1dd   :  { %v1945_v40 = vmul.f32 %v6147_v46, %v5739_v2  ;;  %v1946_v36 = vmul.f32 %v6150_v34, %v5742_v21  ;;  %v1947_v19 = vmul.f32 %v6153_v8, %v5748_v15  ;;  %v1927_v27 = vsel %vm304_vm5, %v1926_v45, %v1925_v9 }
 0x1de   :  { %v1943_v14 = vmul.f32 %v8576_v23, %v8575_v57  ;;  %v1948_v11 = vmul.f32 %v6155_v30, %v8577_v26  ;;  %v1949_v4 = vmul.f32 %v6157_v33, %v8578_v12  ;;  %v1950_v31 = vmul.f32 %v6159_v42, %v8579_v0 }
 0x1df   :  { %v1952_v29 = vmul.f32 %v6163_v13, %v5757_v3  ;;  %v1953_v32 = vmul.f32 %v6190_v25, %v5760_v62  ;;  %v1954_v63 = vmul.f32 %v6196_v56, %v5763_v51  ;;  %v1951_v35 = vmul.f32 %v6161_v7, %v8580_v38 }
 0x1e0   :  { %v1955_v61 = vmul.f32 %v6198_v53, %v5772_v59  ;;  %v1956_v18 = vmul.f32 %v6201_v50, %v5775_v60  ;;  %v1975_v6 = vrot.slane %v1944_v22, 7  ;;  %v1957_v10 = vmul.f32 %v6203_v37, %v5778_v20 }
 0x1e1   :  { %v1977_v17 = vrot.slane %v1945_v40, 6  ;;  %v1979_v24 = vrot.slane %v1946_v36, 5  ;;  %v1981_v58 = vrot.slane %v1947_v19, 4  ;;  %v1958_v47 = vmul.f32 %v6207_v28, %v5784_v41 }
 0x1e2   :  { %v1976_v44 = vsel %vm292_vm1, %v1975_v6, %v1943_v14  ;;  %v1983_v1 = vrot.slane %v1948_v11, 3  ;;  %v1985_v49 = vrot.slane %v1949_v4, 2  ;;  %v1989_v5 = vrot.slane %v1952_v29, 7 }
 0x1e3   :  { %v1978_v55 = vsel %vm295_vm2, %v1977_v17, %v1976_v44  ;;  %v1991_v45 = vrot.slane %v1953_v32, 6  ;;  %v1993_v9 = vrot.slane %v1954_v63, 5  ;;  %v1929_v22 = vsel %vm307_vm6, %v1928_v54, %v1927_v27 }
 0x1e4   :  { %v1980_v60 = vsel %vm298_vm3, %v1979_v24, %v1978_v55  ;;  %v1987_v20 = vrot.slane %v1950_v31, 1  ;;  %v1995_v40 = vrot.slane %v1955_v61, 4  ;;  %v1990_v19 = vsel %vm292_vm1, %v1989_v5, %v1951_v35 }
 0x1e5   :  { %v1982_v36 = vsel %vm301_vm4, %v1981_v58, %v1980_v60  ;;  %v1997_v41 = vrot.slane %v1956_v18, 3  ;;  %v1917_v14 = vsel %vm310_vm7, %v1916_v52, %v1915_v43  ;;  %v1992_v4 = vsel %vm295_vm2, %v1991_v45, %v1990_v19 }
 0x1e6   :  { %v1984_v11 = vsel %vm304_vm5, %v1983_v1, %v1982_v36  ;;  %v1999_v29 = vrot.slane %v1957_v10, 2  ;;  %v1931_v32 = vsel %vm310_vm7, %v1930_v39, %v1929_v22  ;;  %v1994_v27 = vsel %vm298_vm3, %v1993_v9, %v1992_v4  ;;  %v8581_v4 = vld [vmem:[#allocation2_spill] sm:$0xff] }
 0x1e7   :  { %v1986_v54 = vsel %vm307_vm6, %v1985_v49, %v1984_v11  ;;  %v2001_v31 = vrot.slane %v1958_v47, 1  ;;  %v1996_v60 = vsel %vm301_vm4, %v1995_v40, %v1994_v27  ;;  %v1934_v52 = vsel %vm82_vm0, %v1917_v14, 0.0 }
 0x1e8   :  { %v1988_v63 = vsel %vm310_vm7, %v1987_v20, %v1986_v54  ;;  %v1998_v35 = vsel %vm304_vm5, %v1997_v41, %v1996_v60  ;;  %v1935_v43 = vsel %vm82_vm0, %v1931_v32, 0.0  ;;  %v2040_v49 = vsel %vm292_vm1, %v6127_v16, %v8576_v23 }
 0x1e9   :  { %v2000_v61 = vsel %vm307_vm6, %v1999_v29, %v1998_v35  ;;  %v2005_v18 = vsel %vm82_vm0, %v1988_v63, 0.0  ;;  %v1936_v10 = vadd.f32 %v1935_v43, %v1934_v52  ;;  %v2047_v55 = vsel %vm292_vm1, %v6163_v13, %v6161_v7  ;;  %v8582_v29 = vld [vmem:[#allocation25_spill] sm:$0xff]  ;;  %v8585_v63 = vld [vmem:[#allocation11_spill] sm:$0xff]  ;;  %v8588_v35 = vld [vmem:[#allocation48_spill] sm:$0xff] }
 0x1ea   :  { %v2002_v39 = vsel %vm310_vm7, %v2001_v31, %v2000_v61  ;;  %v2041_v9 = vsel %vm295_vm2, %v6147_v46, %v2040_v49  ;;  %v2048_v22 = vsel %vm295_vm2, %v6190_v25, %v2047_v55  ;;  %v8589_v52 = vld [vmem:[#allocation14_spill] sm:$0xff] }
 0x1eb   :  { %v2006_v6 = vsel %vm82_vm0, %v2002_v39, 0.0  ;;  %v1937_v20 = vrot.slane %v1936_v10, 4  ;;  %v2042_v36 = vsel %vm298_vm3, %v6150_v34, %v2041_v9  ;;  %v2049_v16 = vsel %vm298_vm3, %v6196_v56, %v2048_v22 }
 0x1ec   :  { %v2007_v17 = vadd.f32 %v2006_v6, %v2005_v18  ;;  %v2043_v7 = vsel %vm301_vm4, %v6153_v8, %v2042_v36  ;;  %v2050_v13 = vsel %vm301_vm4, %v6198_v53, %v2049_v16  ;;  %v8590_v43 = vsub.f32 %v8588_v35, %v8589_v52 }
 0x1ed   :  { %v1938_v44 = vadd.f32 %v1937_v20, %v1936_v10  ;;  %v2044_v46 = vsel %vm304_vm5, %v6155_v30, %v2043_v7  ;;  %v2051_v25 = vsel %vm304_vm5, %v6201_v50, %v2050_v13  ;;  %v8583_v50 = vld [vmem:[#allocation26_spill] sm:$0xff] }
 0x1ee   :  { %v2008_v24 = vrot.slane %v2007_v17, 4  ;;  %v2045_v34 = vsel %vm307_vm6, %v6157_v33, %v2044_v46  ;;  %v2052_v56 = vsel %vm307_vm6, %v6203_v37, %v2051_v25  ;;  %v8584_v33 = vld [vmem:[#allocation4_spill] sm:$0xff] }
 0x1ef   :  { %v1939_v5 = vrot.slane %v1938_v44, 2  ;;  %v2046_v8 = vsel %vm310_vm7, %v6159_v42, %v2045_v34  ;;  %v2053_v53 = vsel %vm310_vm7, %v6207_v28, %v2052_v56  ;;  %v8586_v60 = vsub.f32 %v8584_v33, %v8585_v63 }
 0x1f0   :  { %v2009_v58 = vadd.f32 %v2008_v24, %v2007_v17 }
 0x1f1   :  { %v1940_v40 = vadd.f32 %v1939_v5, %v1938_v44 }
 0x1f2   :  { %v2010_v47 = vrot.slane %v2009_v58, 2 }
 0x1f3   :  { %v1941_v23 = vrot.slane %v1940_v40, 1 }
 0x1f4   :  { %v2011_v41 = vadd.f32 %v2010_v47, %v2009_v58 }
 0x1f5   :  { %v1942_v19 = vadd.f32 %v1941_v23, %v1940_v40 }
 0x1f6   :  { %v2012_v1 = vrot.slane %v2011_v41, 1 }
 0x1f8   :  { %v2013_v45 = vadd.f32 %v2012_v1, %v2011_v41 }
 0x1fa   :  { %3860 = vrcp.f32 %v2013_v45 }
 0x207   :  { %v3861_v14 = vpop.eup %3860 }
 0x208   :  { %v2015_v11 = vmul.f32 %v3861_v14, %v1942_v19 }
 0x20a   :  { %v2019_v30 = vrot.slane %v2015_v11, %v8581_v4 }
 0x20c   :  { %v2020_v32 = vmul.f32 %v2019_v30, %v8582_v29  ;;  %v2021_v54 = vmul.f32 %v2019_v30, %v8583_v50  ;;  %v2056_v27 = vmul.f32 %v2046_v8, %v2019_v30  ;;  %v2057_v31 = vmul.f32 %v2053_v53, %v2019_v30 }
 0x20e   :  { %v6300_v37 = vsub.f32 %v8586_v60, %v2020_v32  ;;  %v6305_v42 = vsub.f32 %v8590_v43, %v2021_v54  ;;  %v2060_v61 = vrot.slane %v2056_v27, 1  ;;  %v2061_v28 = vrot.slane %v2056_v27, 2 }
 0x20f   :  { %v2062_v18 = vrot.slane %v2056_v27, 3  ;;  %v2063_v39 = vrot.slane %v2056_v27, 4  ;;  %v2064_v6 = vrot.slane %v2056_v27, 5  ;;  %v2065_v10 = vrot.slane %v2056_v27, 6 }
 0x210   :  { %8587 = vst [vmem:[#allocation15_spill] sm:$0xff] %v6300_v37  ;;  %8591 = vst [vmem:[#allocation49_spill] sm:$0xff] %v6305_v42  ;;  %v2067_v17 = vrot.slane %v2057_v31, 1  ;;  %v2068_v24 = vrot.slane %v2057_v31, 2  ;;  %v2069_v20 = vrot.slane %v2057_v31, 3  ;;  %v2066_v58 = vrot.slane %v2056_v27, 7 }
 0x211   :  { %v2070_v47 = vrot.slane %v2057_v31, 4  ;;  %v2071_v44 = vrot.slane %v2057_v31, 5  ;;  %v2072_v41 = vrot.slane %v2057_v31, 6  ;;  %v6308_v1 = vsub.f32 %v5736_v48, %v2060_v61 }
 0x212   :  { %v6311_v49 = vsub.f32 %v5739_v2, %v2061_v28  ;;  %v6314_v55 = vsub.f32 %v5742_v21, %v2062_v18  ;;  %v2073_v5 = vrot.slane %v2057_v31, 7  ;;  %v6317_v45 = vsub.f32 %v8575_v57, %v2056_v27 }
 0x213   :  { %v6320_v9 = vsub.f32 %v5748_v15, %v2063_v39  ;;  %v6323_v22 = vsub.f32 %v8577_v26, %v2064_v6  ;;  %v6326_v40 = vsub.f32 %v8578_v12, %v2065_v10  ;;  %v6329_v48 = vsub.f32 %v5757_v3, %v2067_v17  ;;  %v8597_v12 = vld [vmem:[#allocation20_spill] sm:$0xff]  ;;  %v8599_v3 = vld [vmem:[#allocation21_spill] sm:$0xff] }
 0x214   :  { %8592 = vst [vmem:[#allocation16_spill] sm:$0xff] %v6317_v45  ;;  %v6332_v2 = vsub.f32 %v5760_v62, %v2068_v24  ;;  %v6335_v21 = vsub.f32 %v5763_v51, %v2069_v20  ;;  %v6338_v57 = vsub.f32 %v8579_v0, %v2066_v58  ;;  %v6341_v15 = vsub.f32 %v8580_v38, %v2057_v31  ;;  %v8601_v0 = vld [vmem:[#allocation22_spill] sm:$0xff]  ;;  %v8605_v20 = vld [vmem:[#allocation27_spill] sm:$0xff] }
 0x215   :  { %8593 = vst [vmem:[#allocation17_spill] sm:$0xff] %v6323_v22  ;;  %8594 = vst [vmem:[#allocation18_spill] sm:$0xff] %v6326_v40  ;;  %v6344_v26 = vsub.f32 %v5772_v59, %v2070_v47  ;;  %v6347_v36 = vsub.f32 %v8597_v12, %v2071_v44  ;;  %v6350_v16 = vsub.f32 %v8599_v3, %v2072_v41  ;;  %v2122_v62 = vrot.slane %v6308_v1, 7  ;;  %v8606_v47 = vld [vmem:[#allocation28_spill] sm:$0xff]  ;;  %v8607_v41 = vld [vmem:[#allocation29_spill] sm:$0xff] }
 0x216   :  { %8595 = vst [vmem:[#allocation19_spill] sm:$0xff] %v6338_v57  ;;  %8596 = vst [vmem:[#allocation25_spill] sm:$0xff] %v6341_v15  ;;  %v2124_v51 = vrot.slane %v6311_v49, 6  ;;  %v2126_v23 = vrot.slane %v6314_v55, 5  ;;  %v6356_v7 = vsub.f32 %v8601_v0, %v2073_v5  ;;  %v2128_v38 = vrot.slane %v6320_v9, 4  ;;  %v8608_v3 = vld [vmem:[#allocation30_spill] sm:$0xff] }
 0x217   :  { %8598 = vst [vmem:[#allocation26_spill] sm:$0xff] %v6347_v36  ;;  %8600 = vst [vmem:[#allocation4_spill] sm:$0xff] %v6350_v16  ;;  %v2130_v59 = vrot.slane %v6323_v22, 3  ;;  %v2136_v13 = vrot.slane %v6329_v48, 7  ;;  %v2123_v46 = vsel %vm292_vm1, %v2122_v62, %v6317_v45  ;;  %v2138_v25 = vrot.slane %v6332_v2, 6  ;;  %v8610_v0 = vld [vmem:[#allocation32_spill] sm:$0xff] }
 0x218   :  { %8602 = vst [vmem:[#allocation11_spill] sm:$0xff] %v6356_v7  ;;  %v2140_v19 = vrot.slane %v6335_v21, 5  ;;  %v2142_v34 = vrot.slane %v6344_v26, 4  ;;  %v2125_v56 = vsel %vm295_vm2, %v2124_v51, %v2123_v46  ;;  %v2132_v14 = vrot.slane %v6326_v40, 2  ;;  %v8609_v51 = vld [vmem:[#allocation31_spill] sm:$0xff]  ;;  %v8612_v46 = vld [vmem:[#allocation34_spill] sm:$0xff] }
 0x219   :  { %v2137_v11 = vsel %vm292_vm1, %v2136_v13, %v6341_v15  ;;  %v2144_v8 = vrot.slane %v6347_v36, 3  ;;  %v2127_v53 = vsel %vm298_vm3, %v2126_v23, %v2125_v56  ;;  %v2134_v30 = vrot.slane %v6338_v57, 1  ;;  %v8614_v56 = vld [vmem:[#allocation36_spill] sm:$0xff] }
 0x21a   :  { %v2139_v29 = vsel %vm295_vm2, %v2138_v25, %v2137_v11  ;;  %v2146_v32 = vrot.slane %v6350_v16, 2  ;;  %v2129_v50 = vsel %vm301_vm4, %v2128_v38, %v2127_v53  ;;  %v2148_v27 = vrot.slane %v6356_v7, 1  ;;  %v8615_v11 = vld [vmem:[#allocation37_spill] sm:$0xff]  ;;  %v8616_v53 = vld [vmem:[#allocation38_spill] sm:$0xff] }
 0x21b   :  { %v2141_v54 = vsel %vm298_vm3, %v2140_v19, %v2139_v29  ;;  %v2131_v31 = vsel %vm304_vm5, %v2130_v59, %v2129_v50  ;;  %v6388_v43 = vmul.f32 %v6317_v45, %v6317_v45  ;;  %v6395_v28 = vmul.f32 %v6308_v1, %v6308_v1  ;;  %v8611_v59 = vld [vmem:[#allocation33_spill] sm:$0xff]  ;;  %v8613_v19 = vld [vmem:[#allocation35_spill] sm:$0xff]  ;;  %v8618_v50 = vld [vmem:[#allocation40_spill] sm:$0xff] }
 0x21c   :  { %v2143_v33 = vsel %vm301_vm4, %v2142_v34, %v2141_v54  ;;  %v2133_v63 = vsel %vm307_vm6, %v2132_v14, %v2131_v31  ;;  %v6399_v18 = vmul.f32 %v6311_v49, %v6311_v49  ;;  %v6403_v39 = vmul.f32 %v6314_v55, %v6314_v55  ;;  %v8617_v29 = vld [vmem:[#allocation39_spill] sm:$0xff] }
 0x21d   :  { %v2145_v60 = vsel %vm304_vm5, %v2144_v8, %v2143_v33  ;;  %v6383_v35 = vsel %vm310_vm7, %v2134_v30, %v2133_v63  ;;  %v6407_v6 = vmul.f32 %v6320_v9, %v6320_v9  ;;  %v6411_v10 = vmul.f32 %v6323_v22, %v6323_v22  ;;  %v8620_v33 = vld [vmem:[#allocation42_spill] sm:$0xff] }
 0x21e   :  { %8603 = vst [vmem:[#allocation48_spill] sm:$0xff] %v6383_v35  ;;  %v2147_v52 = vsel %vm307_vm6, %v2146_v32, %v2145_v60  ;;  %v6415_v17 = vmul.f32 %v6326_v40, %v6326_v40  ;;  %v6419_v24 = vmul.f32 %v6338_v57, %v6338_v57  ;;  %v2152_v58 = vmul.f32 %v8605_v20, %v6383_v35  ;;  %v8621_v60 = vld [vmem:[#allocation43_spill] sm:$0xff]  ;;  %v8622_v20 = vld [vmem:[#allocation44_spill] sm:$0xff] }
 0x21f   :  { %v6391_v61 = vsel %vm310_vm7, %v2148_v27, %v2147_v52  ;;  %v2154_v44 = vmul.f32 %v8606_v47, %v6383_v35  ;;  %v2156_v5 = vmul.f32 %v8607_v41, %v6383_v35  ;;  %v6429_v12 = vmul.f32 %v6341_v15, %v6341_v15  ;;  %v8619_v27 = vld [vmem:[#allocation41_spill] sm:$0xff] }
 0x220   :  { %8604 = vst [vmem:[#allocation14_spill] sm:$0xff] %v6391_v61  ;;  %v2153_v62 = vmul.f32 %v8608_v3, %v6391_v61  ;;  %v2155_v23 = vmul.f32 %v8609_v51, %v6391_v61  ;;  %v2157_v38 = vmul.f32 %v8610_v0, %v6391_v61  ;;  %v2158_v13 = vmul.f32 %v8611_v59, %v6383_v35  ;;  %v8623_v41 = vld [vmem:[#allocation45_spill] sm:$0xff]  ;;  %v8624_v51 = vld [vmem:[#allocation46_spill] sm:$0xff]  ;;  %v8625_v59 = vld [vmem:[#allocation47_spill] sm:$0xff] }
 0x221   :  { %v2159_v25 = vmul.f32 %v8612_v46, %v6391_v61  ;;  %v2160_v34 = vmul.f32 %v8613_v19, %v6383_v35  ;;  %v2161_v14 = vmul.f32 %v8614_v56, %v6391_v61  ;;  %v2162_v8 = vmul.f32 %v8615_v11, %v6383_v35  ;;  %v8626_v19 = vld [vmem:[#allocation5_spill] sm:$0xff]  ;;  %v8627_v11 = vld [vmem:[#allocation10_spill] sm:$0xff] }
 0x222   :  { %v2163_v30 = vmul.f32 %v8616_v53, %v6391_v61  ;;  %v2164_v32 = vmul.f32 %v8617_v29, %v6383_v35  ;;  %v2165_v54 = vmul.f32 %v8618_v50, %v6391_v61  ;;  %v2166_v31 = vmul.f32 %v8619_v27, %v6383_v35  ;;  %v8628_v29 = vld [vmem:[#allocation6_spill] sm:$0xff] }
 0x223   :  { %v2167_v63 = vmul.f32 %v8620_v33, %v6391_v61  ;;  %v6459_v52 = vmul.f32 %v8621_v60, %v6383_v35  ;;  %v6463_v47 = vmul.f32 %v8622_v20, %v6391_v61  ;;  %v6467_v3 = vmul.f32 %v8623_v41, %v6383_v35 }
 0x224   :  { %v6471_v0 = vmul.f32 %v8624_v51, %v6391_v61  ;;  %v6475_v46 = vmul.f32 %v8625_v59, %v6383_v35  ;;  %v6479_v56 = vmul.f32 %v8626_v19, %v6391_v61  ;;  %v6483_v53 = vmul.f32 %v8627_v11, %v6383_v35 }
 0x225   :  { %v6487_v50 = vmul.f32 %v8628_v29, %v6391_v61  ;;  %v2184_v27 = vsel %vm82_vm0, %v2152_v58, 0.0  ;;  %v2185_v33 = vsel %vm82_vm0, %v2153_v62, 0.0  ;;  %v2193_v60 = vsel %vm82_vm0, %v2154_v44, 0.0 }
 0x226   :  { %v2186_v20 = vadd.f32 %v2185_v33, %v2184_v27  ;;  %v2194_v41 = vsel %vm82_vm0, %v2155_v23, 0.0  ;;  %v2202_v51 = vsel %vm82_vm0, %v2156_v5, 0.0  ;;  %v2203_v59 = vsel %vm82_vm0, %v2157_v38, 0.0 }
 0x227   :  { %v2195_v19 = vadd.f32 %v2194_v41, %v2193_v60  ;;  %v2204_v11 = vadd.f32 %v2203_v59, %v2202_v51  ;;  %v2211_v42 = vsel %vm82_vm0, %v2158_v13, 0.0  ;;  %v2212_v29 = vsel %vm82_vm0, %v2159_v25, 0.0 }
 0x228   :  { %v2187_v37 = vrot.slane %v2186_v20, 4  ;;  %v2213_v4 = vadd.f32 %v2212_v29, %v2211_v42  ;;  %v2220_v58 = vsel %vm82_vm0, %v2160_v34, 0.0  ;;  %v2221_v62 = vsel %vm82_vm0, %v2161_v14, 0.0 }
 0x229   :  { %v2196_v44 = vrot.slane %v2195_v19, 4  ;;  %v2205_v27 = vrot.slane %v2204_v11, 4  ;;  %v2222_v33 = vadd.f32 %v2221_v62, %v2220_v58  ;;  %v2229_v23 = vsel %vm82_vm0, %v2162_v8, 0.0 }
 0x22a   :  { %v2188_v5 = vadd.f32 %v2187_v37, %v2186_v20  ;;  %v2214_v15 = vrot.slane %v2213_v4, 4  ;;  %v2230_v38 = vsel %vm82_vm0, %v2163_v30, 0.0  ;;  %v2238_v60 = vsel %vm82_vm0, %v2164_v32, 0.0  ;;  %v8629_v32 = vld [vmem:[#allocation7_spill] sm:$0xff] }
 0x22b   :  { %v2197_v13 = vadd.f32 %v2196_v44, %v2195_v19  ;;  %v2206_v41 = vadd.f32 %v2205_v27, %v2204_v11  ;;  %v2223_v25 = vrot.slane %v2222_v33, 4  ;;  %v2231_v51 = vadd.f32 %v2230_v38, %v2229_v23  ;;  %v8630_v11 = vld [vmem:[#allocation8_spill] sm:$0xff]  ;;  %v8632_v38 = vld [vmem:[#allocation13_spill] sm:$0xff] }
 0x22c   :  { %v2189_v42 = vrot.slane %v2188_v5, 2  ;;  %v2215_v59 = vadd.f32 %v2214_v15, %v2213_v4  ;;  %v2239_v34 = vsel %vm82_vm0, %v2165_v54, 0.0  ;;  %v2247_v14 = vsel %vm82_vm0, %v2166_v31, 0.0 }
 0x22d   :  { %v2198_v29 = vrot.slane %v2197_v13, 2  ;;  %v2207_v58 = vrot.slane %v2206_v41, 2  ;;  %v2224_v62 = vadd.f32 %v2223_v25, %v2222_v33  ;;  %v2232_v8 = vrot.slane %v2231_v51, 4  ;;  %v8631_v33 = vld [vmem:[#allocation23_spill] sm:$0xff] }
 0x22e   :  { %v2190_v37 = vadd.f32 %v2189_v42, %v2188_v5  ;;  %v2216_v20 = vrot.slane %v2215_v59, 2  ;;  %v2240_v57 = vadd.f32 %v2239_v34, %v2238_v60  ;;  %v2248_v30 = vsel %vm82_vm0, %v2167_v63, 0.0  ;;  %v8633_v42 = vld [vmem:[#allocation9_spill] sm:$0xff] }
 0x22f   :  { %v2176_v19 = vmul.f32 %v8629_v32, %v6383_v35  ;;  %v2177_v44 = vmul.f32 %v8630_v11, %v6391_v61  ;;  %v2199_v4 = vadd.f32 %v2198_v29, %v2197_v13  ;;  %v2233_v15 = vadd.f32 %v2232_v8, %v2231_v51  ;;  %v8636_v8 = vld [vmem:[#allocation12_spill] sm:$0xff] }
 0x230   :  { %v6509_v54 = vadd.f32 %v2207_v58, %v2206_v41  ;;  %v2225_v31 = vrot.slane %v2224_v62, 2  ;;  %v2241_v27 = vrot.slane %v2240_v57, 4  ;;  %v2249_v23 = vadd.f32 %v2248_v30, %v2247_v14  ;;  %v8634_v41 = vld [vmem:[#allocation3_spill] sm:$0xff]  ;;  %v8635_v14 = vld [vmem:[#allocation24_spill] sm:$0xff] }
 0x231   :  { %v2178_v5 = vmul.f32 %v8631_v33, %v6383_v35  ;;  %v2179_v60 = vmul.f32 %v8632_v38, %v6391_v61  ;;  %v2191_v63 = vrot.slane %v2190_v37, 1  ;;  %v6515_v25 = vadd.f32 %v2216_v20, %v2215_v59 }
 0x232   :  { %v2180_v34 = vmul.f32 %v8633_v42, %v6383_v35  ;;  %v2234_v32 = vrot.slane %v2233_v15, 2  ;;  %v2242_v13 = vadd.f32 %v2241_v27, %v2240_v57  ;;  %v2250_v51 = vrot.slane %v2249_v23, 4 }
 0x233   :  { %v2181_v29 = vmul.f32 %v8634_v41, %v6391_v61  ;;  %v2182_v58 = vmul.f32 %v8635_v14, %v6383_v35  ;;  %v2183_v30 = vmul.f32 %v8636_v8, %v6391_v61  ;;  %v2200_v11 = vrot.slane %v2199_v4, 1 }
 0x234   :  { %v2209_v33 = vrot.slane %v6509_v54, 1  ;;  %v6526_v59 = vadd.f32 %v2225_v31, %v2224_v62  ;;  %v2251_v20 = vadd.f32 %v2250_v51, %v2249_v23  ;;  %v2256_v38 = vsel %vm82_vm0, %v6459_v52, 0.0 }
 0x235   :  { %v6530_v57 = vadd.f32 %v2191_v63, %v2190_v37  ;;  %v2218_v27 = vrot.slane %v6515_v25, 1  ;;  %v2257_v42 = vsel %vm82_vm0, %v6463_v47, 0.0  ;;  %v2265_v41 = vsel %vm82_vm0, %v6467_v3, 0.0 }
 0x236   :  { %v2235_v14 = vadd.f32 %v2234_v32, %v2233_v15  ;;  %v2243_v8 = vrot.slane %v2242_v13, 2  ;;  %v2258_v61 = vadd.f32 %v2257_v42, %v2256_v38  ;;  %v2266_v62 = vsel %vm82_vm0, %v6471_v0, 0.0 }
 0x237   :  { %8637 = vst [vmem:[#allocation20_spill] sm:$0xff] %v6530_v57  ;;  %v6539_v31 = vadd.f32 %v2200_v11, %v2199_v4  ;;  %v2267_v23 = vadd.f32 %v2266_v62, %v2265_v41  ;;  %v2274_v52 = vsel %vm82_vm0, %v6475_v46, 0.0  ;;  %v2275_v37 = vsel %vm82_vm0, %v6479_v56, 0.0 }
 0x238   :  { %v2227_v47 = vrot.slane %v6526_v59, 1  ;;  %v2252_v63 = vrot.slane %v2251_v20, 2  ;;  %v2259_v51 = vrot.slane %v2258_v61, 4  ;;  %v2276_v3 = vadd.f32 %v2275_v37, %v2274_v52 }
 0x239   :  { %v2268_v15 = vrot.slane %v2267_v23, 4  ;;  %v2283_v32 = vsel %vm82_vm0, %v6483_v53, 0.0  ;;  %v2284_v0 = vsel %vm82_vm0, %v6487_v50, 0.0  ;;  %v2292_v4 = vsel %vm82_vm0, %v2176_v19, 0.0 }
 0x23a   :  { %v2236_v11 = vrot.slane %v2235_v14, 1  ;;  %v2244_v38 = vadd.f32 %v2243_v8, %v2242_v13  ;;  %v2260_v46 = vadd.f32 %v2259_v51, %v2258_v61  ;;  %v2277_v42 = vrot.slane %v2276_v3, 4 }
 0x23b   :  { %v2269_v41 = vadd.f32 %v2268_v15, %v2267_v23  ;;  %v2285_v56 = vadd.f32 %v2284_v0, %v2283_v32  ;;  %v2293_v62 = vsel %vm82_vm0, %v2177_v44, 0.0  ;;  %v2301_v35 = vsel %vm82_vm0, %v2178_v5, 0.0 }
 0x23c   :  { %v2253_v52 = vadd.f32 %v2252_v63, %v2251_v20  ;;  %v2261_v37 = vrot.slane %v2260_v46, 2  ;;  %v2278_v40 = vadd.f32 %v2277_v42, %v2276_v3  ;;  %v2294_v22 = vadd.f32 %v2293_v62, %v2292_v4 }
 0x23d   :  { %v2270_v53 = vrot.slane %v2269_v41, 2  ;;  %v2286_v57 = vrot.slane %v2285_v56, 4  ;;  %v2302_v50 = vsel %vm82_vm0, %v2179_v60, 0.0  ;;  %v2310_v19 = vsel %vm82_vm0, %v2180_v34, 0.0 }
 0x23e   :  { %v2262_v45 = vadd.f32 %v2261_v37, %v2260_v46  ;;  %v2279_v13 = vrot.slane %v2278_v40, 2  ;;  %v2295_v61 = vrot.slane %v2294_v22, 4  ;;  %v2303_v8 = vadd.f32 %v2302_v50, %v2301_v35 }
 0x23f   :  { %v2245_v23 = vrot.slane %v2244_v38, 1  ;;  %v2271_v51 = vadd.f32 %v2270_v53, %v2269_v41  ;;  %v2287_v15 = vadd.f32 %v2286_v57, %v2285_v56  ;;  %v2311_v44 = vsel %vm82_vm0, %v2181_v29, 0.0 }
 0x240   :  { %v2254_v5 = vrot.slane %v2253_v52, 1  ;;  %v2296_v20 = vadd.f32 %v2295_v61, %v2294_v22  ;;  %v2304_v63 = vrot.slane %v2303_v8, 4  ;;  %v2319_v3 = vsel %vm82_vm0, %v2182_v58, 0.0 }
 0x241   :  { %v2263_v32 = vrot.slane %v2262_v45, 1  ;;  %v2288_v0 = vrot.slane %v2287_v15, 2  ;;  %v2312_v4 = vadd.f32 %v2311_v44, %v2310_v19  ;;  %v2320_v60 = vsel %vm82_vm0, %v2183_v30, 0.0 }
 0x242   :  { %v2272_v34 = vrot.slane %v2271_v51, 1  ;;  %v2280_v46 = vadd.f32 %v2279_v13, %v2278_v40  ;;  %v2297_v42 = vrot.slane %v2296_v20, 2  ;;  %v2305_v62 = vadd.f32 %v2304_v63, %v2303_v8 }
 0x243   :  { %v6559_v35 = vadd.f32 %v2209_v33, %v6509_v54  ;;  %v6562_v57 = vadd.f32 %v2218_v27, %v6515_v25  ;;  %v2313_v29 = vrot.slane %v2312_v4, 4  ;;  %v2321_v22 = vadd.f32 %v2320_v60, %v2319_v3 }
 0x244   :  { %v6565_v41 = vadd.f32 %v2227_v47, %v6526_v59  ;;  %v2289_v58 = vadd.f32 %v2288_v0, %v2287_v15  ;;  %v2298_v56 = vadd.f32 %v2297_v42, %v2296_v20  ;;  %v2306_v37 = vrot.slane %v2305_v62, 2 }
 0x245   :  { %v6567_v53 = vadd.f32 %v2236_v11, %v2235_v14  ;;  %v6569_v30 = vadd.f32 %v2245_v23, %v2244_v38  ;;  %v2314_v40 = vadd.f32 %v2313_v29, %v2312_v4  ;;  %v2322_v50 = vrot.slane %v2321_v22, 4 }
 0x246   :  { %v6571_v19 = vadd.f32 %v2254_v5, %v2253_v52  ;;  %v6573_v54 = vadd.f32 %v2263_v32, %v2262_v45  ;;  %v6575_v25 = vadd.f32 %v2272_v34, %v2271_v51  ;;  %v2281_v33 = vrot.slane %v2280_v46, 1 }
 0x247   :  { %v2307_v27 = vadd.f32 %v2306_v37, %v2305_v62  ;;  %v2315_v13 = vrot.slane %v2314_v40, 2  ;;  %v2323_v59 = vadd.f32 %v2322_v50, %v2321_v22  ;;  %v2337_v47 = vmul.f32 %v6329_v48, %v6329_v48 }
 0x248   :  { %v2290_v61 = vrot.slane %v2289_v58, 1  ;;  %v2299_v14 = vrot.slane %v2298_v56, 1  ;;  %v2338_v11 = vmul.f32 %v6332_v2, %v6332_v2  ;;  %v2339_v38 = vmul.f32 %v6335_v21, %v6335_v21 }
 0x249   :  { %v2316_v52 = vadd.f32 %v2315_v13, %v2314_v40  ;;  %v2324_v45 = vrot.slane %v2323_v59, 2  ;;  %v2360_v8 = vrot.slane %v6395_v28, 7  ;;  %v2362_v23 = vrot.slane %v6399_v18, 6 }
 0x24a   :  { %v2340_v51 = vmul.f32 %v6344_v26, %v6344_v26  ;;  %v2341_v15 = vmul.f32 %v6347_v36, %v6347_v36  ;;  %v2364_v44 = vrot.slane %v6403_v39, 5  ;;  %v2366_v5 = vrot.slane %v6407_v6, 4 }
 0x24b   :  { %v2308_v20 = vrot.slane %v2307_v27, 1  ;;  %v2325_v63 = vadd.f32 %v2324_v45, %v2323_v59  ;;  %v2361_v3 = vsel %vm292_vm1, %v2360_v8, %v6388_v43  ;;  %v2368_v32 = vrot.slane %v6411_v10, 3  ;;  %v8639_v8 = vld [vmem:[#allocation20_spill] sm:$0xff] }
 0x24c   :  { %v2342_v28 = vmul.f32 %v6350_v16, %v6350_v16  ;;  %v2363_v18 = vsel %vm295_vm2, %v2362_v23, %v2361_v3  ;;  %v2374_v0 = vrot.slane %v2337_v47, 7  ;;  %v2376_v4 = vrot.slane %v2338_v11, 6 }
 0x24d   :  { %v2317_v60 = vrot.slane %v2316_v52, 1  ;;  %v2365_v34 = vsel %vm298_vm3, %v2364_v44, %v2363_v18  ;;  %v2370_v39 = vrot.slane %v6415_v17, 2  ;;  %v2378_v6 = vrot.slane %v2339_v38, 5  ;;  %v8641_v44 = vld [vmem:[#allocation18_spill] sm:$0xff]  ;;  %v8643_v18 = vld [vmem:[#allocation25_spill] sm:$0xff] }
 0x24e   :  { %v2326_v42 = vrot.slane %v2325_v63, 1  ;;  %v2367_v62 = vsel %vm301_vm4, %v2366_v5, %v2365_v34  ;;  %v2375_v43 = vsel %vm292_vm1, %v2374_v0, %v6429_v12  ;;  %v2380_v10 = vrot.slane %v2340_v51, 4  ;;  %v8640_v51 = vld [vmem:[#allocation17_spill] sm:$0xff] }
 0x24f   :  { %v6602_v29 = vadd.f32 %v2281_v33, %v2280_v46  ;;  %v2343_v22 = vmul.f32 %v6356_v7, %v6356_v7  ;;  %v2369_v37 = vsel %vm304_vm5, %v2368_v32, %v2367_v62  ;;  %v2377_v40 = vsel %vm295_vm2, %v2376_v4, %v2375_v43 }
 0x250   :  { %v6608_v50 = vadd.f32 %v2290_v61, %v2289_v58  ;;  %v6610_v17 = vadd.f32 %v2299_v14, %v2298_v56  ;;  %v2379_v13 = vsel %vm298_vm3, %v2378_v6, %v2377_v40  ;;  %v2382_v59 = vrot.slane %v2341_v15, 3 }
 0x251   :  { %v6613_v47 = vadd.f32 %v2308_v20, %v2307_v27  ;;  %v6615_v12 = vadd.f32 %v2317_v60, %v2316_v52  ;;  %v2372_v46 = vrot.slane %v6419_v24, 1  ;;  %v2381_v33 = vsel %vm301_vm4, %v2380_v10, %v2379_v13  ;;  %v8638_v52 = vld [vmem:[#allocation16_spill] sm:$0xff]  ;;  %v8642_v20 = vld [vmem:[#allocation19_spill] sm:$0xff] }
 0x252   :  { %v6619_v11 = vadd.f32 %v2326_v42, %v2325_v63  ;;  %v2371_v38 = vsel %vm307_vm6, %v2370_v39, %v2369_v37  ;;  %v2384_v45 = vrot.slane %v2342_v28, 2  ;;  %v2400_v58 = vmul.f32 %v6539_v31, %v6308_v1 }
 0x253   :  { %v2386_v56 = vrot.slane %v2343_v22, 1  ;;  %v2401_v61 = vmul.f32 %v6559_v35, %v6311_v49  ;;  %v2402_v27 = vmul.f32 %v6562_v57, %v6314_v55  ;;  %v2403_v24 = vmul.f32 %v6565_v41, %v6320_v9 }
 0x254   :  { %v2383_v14 = vsel %vm304_vm5, %v2382_v59, %v2381_v33  ;;  %v2399_v23 = vmul.f32 %v8639_v8, %v8638_v52  ;;  %v2404_v15 = vmul.f32 %v6567_v53, %v8640_v51  ;;  %v2405_v5 = vmul.f32 %v6569_v30, %v8641_v44 }
 0x255   :  { %v2406_v63 = vmul.f32 %v6571_v19, %v8642_v20  ;;  %v2408_v3 = vmul.f32 %v6575_v25, %v6329_v48  ;;  %v2409_v32 = vmul.f32 %v6602_v29, %v6332_v2  ;;  %v2410_v28 = vmul.f32 %v6608_v50, %v6335_v21 }
 0x256   :  { %v2407_v0 = vmul.f32 %v6573_v54, %v8643_v18  ;;  %v2411_v4 = vmul.f32 %v6610_v17, %v6344_v26  ;;  %v2412_v60 = vmul.f32 %v6613_v47, %v6347_v36  ;;  %v2431_v34 = vrot.slane %v2400_v58, 7 }
 0x257   :  { %v2413_v39 = vmul.f32 %v6615_v12, %v6350_v16  ;;  %v2433_v6 = vrot.slane %v2401_v61, 6  ;;  %v2435_v42 = vrot.slane %v2402_v27, 5  ;;  %v2437_v62 = vrot.slane %v2403_v24, 4 }
 0x258   :  { %v2414_v43 = vmul.f32 %v6619_v11, %v6356_v7  ;;  %v2432_v10 = vsel %vm292_vm1, %v2431_v34, %v2399_v23  ;;  %v2439_v22 = vrot.slane %v2404_v15, 3  ;;  %v2441_v37 = vrot.slane %v2405_v5, 2 }
 0x259   :  { %v2434_v40 = vsel %vm295_vm2, %v2433_v6, %v2432_v10  ;;  %v2445_v13 = vrot.slane %v2408_v3, 7  ;;  %v2447_v59 = vrot.slane %v2409_v32, 6  ;;  %v2449_v33 = vrot.slane %v2410_v28, 5 }
 0x25a   :  { %v2385_v58 = vsel %vm307_vm6, %v2384_v45, %v2383_v14  ;;  %v2436_v36 = vsel %vm298_vm3, %v2435_v42, %v2434_v40  ;;  %v2443_v16 = vrot.slane %v2406_v63, 1  ;;  %v2451_v61 = vrot.slane %v2411_v4, 4 }
 0x25b   :  { %v2438_v27 = vsel %vm301_vm4, %v2437_v62, %v2436_v36  ;;  %v2446_v24 = vsel %vm292_vm1, %v2445_v13, %v2407_v0  ;;  %v2453_v7 = vrot.slane %v2412_v60, 3  ;;  %v2373_v23 = vsel %vm310_vm7, %v2372_v46, %v2371_v38 }
 0x25c   :  { %v2440_v15 = vsel %vm304_vm5, %v2439_v22, %v2438_v27  ;;  %v2448_v5 = vsel %vm295_vm2, %v2447_v59, %v2446_v24  ;;  %v2455_v3 = vrot.slane %v2413_v39, 2  ;;  %v2387_v32 = vsel %vm310_vm7, %v2386_v56, %v2385_v58 }
 0x25d   :  { %v2442_v45 = vsel %vm307_vm6, %v2441_v37, %v2440_v15  ;;  %v2450_v14 = vsel %vm298_vm3, %v2449_v33, %v2448_v5  ;;  %v2457_v63 = vrot.slane %v2414_v43, 1  ;;  %v2390_v46 = vsel %vm82_vm0, %v2373_v23, 0.0  ;;  %v8644_v5 = vld [vmem:[#allocation2_spill] sm:$0xff] }
 0x25e   :  { %v2444_v28 = vsel %vm310_vm7, %v2443_v16, %v2442_v45  ;;  %v2452_v36 = vsel %vm301_vm4, %v2451_v61, %v2450_v14  ;;  %v2391_v38 = vsel %vm82_vm0, %v2387_v32, 0.0  ;;  %v2496_v37 = vsel %vm292_vm1, %v6539_v31, %v8639_v8 }
 0x25f   :  { %v2454_v0 = vsel %vm304_vm5, %v2453_v7, %v2452_v36  ;;  %v2461_v60 = vsel %vm82_vm0, %v2444_v28, 0.0  ;;  %v2392_v39 = vadd.f32 %v2391_v38, %v2390_v46  ;;  %v2503_v40 = vsel %vm292_vm1, %v6575_v25, %v6573_v54  ;;  %v6943_v36 = vld [vmem:[%s8119_s0 + $0x78] sm:$0xff] }
 0x260   :  { %v2456_v4 = vsel %vm307_vm6, %v2455_v3, %v2454_v0  ;;  %v2497_v33 = vsel %vm295_vm2, %v6559_v35, %v2496_v37  ;;  %v2504_v58 = vsel %vm295_vm2, %v6602_v29, %v2503_v40  ;;  %v8645_v3 = vld [vmem:[#allocation48_spill] sm:$0xff]  ;;  %8679 = vst [vmem:[#allocation8_spill] sm:$0xff] %v6943_v36 }
 0x261   :  { %v2458_v56 = vsel %vm310_vm7, %v2457_v63, %v2456_v4  ;;  %v2393_v16 = vrot.slane %v2392_v39, 4  ;;  %v2498_v27 = vsel %vm298_vm3, %v6562_v57, %v2497_v33  ;;  %v2505_v31 = vsel %vm298_vm3, %v6608_v50, %v2504_v58 }
 0x262   :  { %v2462_v34 = vsel %vm82_vm0, %v2458_v56, 0.0  ;;  %v2499_v54 = vsel %vm301_vm4, %v6565_v41, %v2498_v27  ;;  %v2506_v25 = vsel %vm301_vm4, %v6610_v17, %v2505_v31 }
 0x263   :  { %v2463_v6 = vadd.f32 %v2462_v34, %v2461_v60  ;;  %v2394_v10 = vadd.f32 %v2393_v16, %v2392_v39  ;;  %v2500_v35 = vsel %vm304_vm5, %v6567_v53, %v2499_v54  ;;  %v2507_v29 = vsel %vm304_vm5, %v6613_v47, %v2506_v25  ;;  %v8647_v47 = vld [vmem:[#allocation14_spill] sm:$0xff] }
 0x264   :  { %v2501_v57 = vsel %vm307_vm6, %v6569_v30, %v2500_v35  ;;  %v2508_v50 = vsel %vm307_vm6, %v6615_v12, %v2507_v29 }
 0x265   :  { %v2464_v42 = vrot.slane %v2463_v6, 4  ;;  %v2395_v13 = vrot.slane %v2394_v10, 2  ;;  %v2502_v41 = vsel %vm310_vm7, %v6571_v19, %v2501_v57  ;;  %v2509_v17 = vsel %vm310_vm7, %v6619_v11, %v2508_v50 }
 0x267   :  { %v2465_v62 = vadd.f32 %v2464_v42, %v2463_v6  ;;  %v2396_v61 = vadd.f32 %v2395_v13, %v2394_v10 }
 0x269   :  { %v2466_v43 = vrot.slane %v2465_v62, 2  ;;  %v2397_v8 = vrot.slane %v2396_v61, 1 }
 0x26b   :  { %v2467_v7 = vadd.f32 %v2466_v43, %v2465_v62  ;;  %v2398_v24 = vadd.f32 %v2397_v8, %v2396_v61 }
 0x26d   :  { %v2468_v22 = vrot.slane %v2467_v7, 1 }
 0x26f   :  { %v2469_v59 = vadd.f32 %v2468_v22, %v2467_v7 }
 0x271   :  { %3862 = vrcp.f32 %v2469_v59 }
 0x27e   :  { %v3863_v23 = vpop.eup %3862 }
 0x27f   :  { %v2471_v15 = vmul.f32 %v3863_v23, %v2398_v24 }
 0x281   :  { %v2475_v53 = vrot.slane %v2471_v15, %v8644_v5 }
 0x283   :  { %v6708_v32 = vmul.f32 %v2475_v53, %v8645_v3  ;;  %v6711_v45 = vmul.f32 %v2475_v53, %v8647_v47  ;;  %v2512_v30 = vmul.f32 %v2502_v41, %v2475_v53  ;;  %v2513_v14 = vmul.f32 %v2509_v17, %v2475_v53 }
 0x285   :  { %8646 = vst [vmem:[#allocation21_spill] sm:$0xff] %v6708_v32  ;;  %8648 = vst [vmem:[#allocation22_spill] sm:$0xff] %v6711_v45  ;;  %v2516_v19 = vrot.slane %v2512_v30, 1  ;;  %v2517_v0 = vrot.slane %v2512_v30, 2  ;;  %v2518_v46 = vrot.slane %v2512_v30, 3  ;;  %v2519_v11 = vrot.slane %v2512_v30, 4 }
 0x286   :  { %v2520_v38 = vrot.slane %v2512_v30, 5  ;;  %v2521_v4 = vrot.slane %v2512_v30, 6  ;;  %v2523_v60 = vrot.slane %v2513_v14, 1  ;;  %v2524_v56 = vrot.slane %v2513_v14, 2 }
 0x287   :  { %v2525_v34 = vrot.slane %v2513_v14, 3  ;;  %v2522_v39 = vrot.slane %v2512_v30, 7  ;;  %v2526_v6 = vrot.slane %v2513_v14, 4  ;;  %v2527_v42 = vrot.slane %v2513_v14, 5 }
 0x288   :  { %v2528_v16 = vrot.slane %v2513_v14, 6  ;;  %v6718_v62 = vsub.f32 %v6308_v1, %v2516_v19  ;;  %v6721_v43 = vsub.f32 %v6311_v49, %v2517_v0  ;;  %v6724_v10 = vsub.f32 %v6314_v55, %v2518_v46 }
 0x289   :  { %v2529_v7 = vrot.slane %v2513_v14, 7  ;;  %v6727_v22 = vsub.f32 %v8638_v52, %v2512_v30  ;;  %v6730_v37 = vsub.f32 %v6320_v9, %v2519_v11  ;;  %v6733_v40 = vsub.f32 %v8640_v51, %v2520_v38 }
 0x28a   :  { %v6736_v13 = vsub.f32 %v8641_v44, %v2521_v4  ;;  %v6739_v1 = vsub.f32 %v6329_v48, %v2523_v60  ;;  %v6742_v49 = vsub.f32 %v6332_v2, %v2524_v56  ;;  %v6745_v55 = vsub.f32 %v6335_v21, %v2525_v34  ;;  %v8656_v44 = vld [vmem:[#allocation26_spill] sm:$0xff]  ;;  %v8658_v48 = vld [vmem:[#allocation4_spill] sm:$0xff] }
 0x28b   :  { %8651 = vst [vmem:[#allocation27_spill] sm:$0xff] %v6727_v22  ;;  %8652 = vst [vmem:[#allocation28_spill] sm:$0xff] %v6733_v40  ;;  %v6748_v52 = vsub.f32 %v8642_v20, %v2522_v39  ;;  %v6751_v9 = vsub.f32 %v8643_v18, %v2513_v14  ;;  %v6754_v51 = vsub.f32 %v6344_v26, %v2526_v6  ;;  %v2578_v2 = vrot.slane %v6718_v62, 7  ;;  %v8660_v20 = vld [vmem:[#allocation11_spill] sm:$0xff] }
 0x28c   :  { %8653 = vst [vmem:[#allocation29_spill] sm:$0xff] %v6736_v13  ;;  %v6757_v59 = vsub.f32 %v8656_v44, %v2527_v42  ;;  %v6760_v33 = vsub.f32 %v8658_v48, %v2528_v16  ;;  %v2580_v21 = vrot.slane %v6721_v43, 6  ;;  %v2582_v58 = vrot.slane %v6724_v10, 5  ;;  %v6834_v16 = vld [vmem:[%s8119_s0] sm:$0xff]  ;;  %v6841_v44 = vld [vmem:[%s8119_s0 + $0x10] sm:$0xff] }
 0x28d   :  { %8654 = vst [vmem:[#allocation30_spill] sm:$0xff] %v6748_v52  ;;  %8655 = vst [vmem:[#allocation31_spill] sm:$0xff] %v6751_v9  ;;  %v6766_v61 = vsub.f32 %v8660_v20, %v2529_v7  ;;  %v2584_v18 = vrot.slane %v6730_v37, 4  ;;  %v2586_v26 = vrot.slane %v6733_v40, 3  ;;  %v2592_v27 = vrot.slane %v6739_v1, 7  ;;  %v6859_v20 = vld [vmem:[%s8119_s0 + $0x8] sm:$0xff] }
 0x28e   :  { %8657 = vst [vmem:[#allocation32_spill] sm:$0xff] %v6757_v59  ;;  %8659 = vst [vmem:[#allocation33_spill] sm:$0xff] %v6760_v33  ;;  %v2579_v31 = vsel %vm292_vm1, %v2578_v2, %v6727_v22  ;;  %v2594_v8 = vrot.slane %v6742_v49, 6  ;;  %v2596_v54 = vrot.slane %v6745_v55, 5  ;;  %v2598_v25 = vrot.slane %v6754_v51, 4  ;;  %v6848_v2 = vld [vmem:[%s8119_s0 + $0x20] sm:$0xff] }
 0x28f   :  { %8661 = vst [vmem:[#allocation34_spill] sm:$0xff] %v6766_v61  ;;  %v2581_v35 = vsel %vm295_vm2, %v2580_v21, %v2579_v31  ;;  %v2588_v29 = vrot.slane %v6736_v13, 2  ;;  %v2593_v24 = vsel %vm292_vm1, %v2592_v27, %v6751_v9  ;;  %v2600_v57 = vrot.slane %v6757_v59, 3  ;;  %8664 = vst [vmem:[#allocation37_spill] sm:$0xff] %v6834_v16  ;;  %v6873_v31 = vld [vmem:[%s8119_s0 + $0x28] sm:$0xff] }
 0x290   :  { %v2583_v50 = vsel %vm298_vm3, %v2582_v58, %v2581_v35  ;;  %v2590_v23 = vrot.slane %v6748_v52, 1  ;;  %v2595_v15 = vsel %vm295_vm2, %v2594_v8, %v2593_v24  ;;  %v2602_v41 = vrot.slane %v6760_v33, 2  ;;  %8665 = vst [vmem:[#allocation38_spill] sm:$0xff] %v6841_v44  ;;  %8666 = vst [vmem:[#allocation39_spill] sm:$0xff] %v6848_v2  ;;  %v6887_v35 = vld [vmem:[%s8119_s0 + $0x38] sm:$0xff]  ;;  %v6894_v24 = vld [vmem:[%s8119_s0 + $0x40] sm:$0xff] }
 0x291   :  { %v2585_v17 = vsel %vm301_vm4, %v2584_v18, %v2583_v50  ;;  %v2597_v53 = vsel %vm298_vm3, %v2596_v54, %v2595_v15  ;;  %v2604_v3 = vrot.slane %v6766_v61, 1  ;;  %v6798_v11 = vmul.f32 %v6727_v22, %v6727_v22  ;;  %8667 = vst [vmem:[#allocation40_spill] sm:$0xff] %v6859_v20  ;;  %8669 = vst [vmem:[#allocation42_spill] sm:$0xff] %v6873_v31  ;;  %v6880_v54 = vld [vmem:[%s8119_s0 + $0x30] sm:$0xff]  ;;  %v6901_v50 = vld [vmem:[%s8119_s0 + $0x48] sm:$0xff] }
 0x292   :  { %v2587_v47 = vsel %vm304_vm5, %v2586_v26, %v2585_v17  ;;  %v2599_v30 = vsel %vm301_vm4, %v2598_v25, %v2597_v53  ;;  %v6805_v4 = vmul.f32 %v6718_v62, %v6718_v62  ;;  %v6809_v60 = vmul.f32 %v6721_v43, %v6721_v43  ;;  %v6866_v26 = vld [vmem:[%s8119_s0 + $0x18] sm:$0xff]  ;;  %8670 = vst [vmem:[#allocation43_spill] sm:$0xff] %v6880_v54  ;;  %v6908_v15 = vld [vmem:[%s8119_s0 + $0x50] sm:$0xff] }
 0x293   :  { %v2589_v14 = vsel %vm307_vm6, %v2588_v29, %v2587_v47  ;;  %v2601_v19 = vsel %vm304_vm5, %v2600_v57, %v2599_v30  ;;  %v6813_v56 = vmul.f32 %v6724_v10, %v6724_v10  ;;  %v6817_v34 = vmul.f32 %v6730_v37, %v6730_v37  ;;  %8668 = vst [vmem:[#allocation41_spill] sm:$0xff] %v6866_v26  ;;  %v6915_v17 = vld [vmem:[%s8119_s0 + $0x58] sm:$0xff]  ;;  %v6929_v30 = vld [vmem:[%s8119_s0 + $0x68] sm:$0xff] }
 0x294   :  { %v6793_v0 = vsel %vm310_vm7, %v2590_v23, %v2589_v14  ;;  %v2603_v46 = vsel %vm307_vm6, %v2602_v41, %v2601_v19  ;;  %v6821_v39 = vmul.f32 %v6733_v40, %v6733_v40  ;;  %v6825_v6 = vmul.f32 %v6736_v13, %v6736_v13  ;;  %8671 = vst [vmem:[#allocation44_spill] sm:$0xff] %v6887_v35  ;;  %v6936_v19 = vld [vmem:[%s8119_s0 + $0x70] sm:$0xff] }
 0x295   :  { %8662 = vst [vmem:[#allocation35_spill] sm:$0xff] %v6793_v0  ;;  %v6801_v38 = vsel %vm310_vm7, %v2604_v3, %v2603_v46  ;;  %v6829_v42 = vmul.f32 %v6748_v52, %v6748_v52  ;;  %v2608_v7 = vmul.f32 %v6834_v16, %v6793_v0  ;;  %v2610_v48 = vmul.f32 %v6841_v44, %v6793_v0  ;;  %v6922_v3 = vld [vmem:[%s8119_s0 + $0x60] sm:$0xff] }
 0x296   :  { %8663 = vst [vmem:[#allocation36_spill] sm:$0xff] %v6801_v38  ;;  %v2612_v21 = vmul.f32 %v6848_v2, %v6793_v0  ;;  %v6854_v58 = vmul.f32 %v6751_v9, %v6751_v9  ;;  %v2609_v18 = vmul.f32 %v6859_v20, %v6801_v38  ;;  %v2611_v27 = vmul.f32 %v6866_v26, %v6801_v38 }
 0x297   :  { %v2613_v8 = vmul.f32 %v6873_v31, %v6801_v38  ;;  %v2614_v25 = vmul.f32 %v6880_v54, %v6793_v0  ;;  %v2615_v29 = vmul.f32 %v6887_v35, %v6801_v38  ;;  %8672 = vst [vmem:[#allocation45_spill] sm:$0xff] %v6894_v24  ;;  %v2616_v57 = vmul.f32 %v6894_v24, %v6793_v0 }
 0x298   :  { %8673 = vst [vmem:[#allocation46_spill] sm:$0xff] %v6901_v50  ;;  %v2617_v23 = vmul.f32 %v6901_v50, %v6801_v38  ;;  %8674 = vst [vmem:[#allocation47_spill] sm:$0xff] %v6908_v15  ;;  %v2618_v41 = vmul.f32 %v6908_v15, %v6793_v0  ;;  %v2619_v53 = vmul.f32 %v6915_v17, %v6801_v38  ;;  %v2641_v26 = vsel %vm82_vm0, %v2609_v18, 0.0 }
 0x299   :  { %8675 = vst [vmem:[#allocation5_spill] sm:$0xff] %v6915_v17  ;;  %8676 = vst [vmem:[#allocation10_spill] sm:$0xff] %v6922_v3  ;;  %v2620_v47 = vmul.f32 %v6922_v3, %v6793_v0  ;;  %v2621_v14 = vmul.f32 %v6929_v30, %v6801_v38  ;;  %v2622_v46 = vmul.f32 %v6936_v19, %v6793_v0  ;;  %v2649_v20 = vsel %vm82_vm0, %v2610_v48, 0.0 }
 0x29a   :  { %8677 = vst [vmem:[#allocation6_spill] sm:$0xff] %v6929_v30  ;;  %8678 = vst [vmem:[#allocation7_spill] sm:$0xff] %v6936_v19  ;;  %v2623_v63 = vmul.f32 %v6943_v36, %v6801_v38  ;;  %v6950_v30 = vld [vmem:[%s8119_s0 + $0x80] sm:$0xff]  ;;  %v6959_v19 = vld [vmem:[%s8119_s0 + $0x88] sm:$0xff]  ;;  %v2650_v44 = vsel %vm82_vm0, %v2611_v27, 0.0  ;;  %v2659_v16 = vsel %vm82_vm0, %v2613_v8, 0.0 }
 0x29b   :  { %8680 = vst [vmem:[#allocation23_spill] sm:$0xff] %v6950_v30  ;;  %v6954_v3 = vmul.f32 %v6950_v30, %v6793_v0  ;;  %8681 = vst [vmem:[#allocation13_spill] sm:$0xff] %v6959_v19  ;;  %v6963_v17 = vmul.f32 %v6959_v19, %v6801_v38  ;;  %v6968_v36 = vld [vmem:[%s8119_s0 + $0x90] sm:$0xff]  ;;  %v6977_v30 = vld [vmem:[%s8119_s0 + $0x98] sm:$0xff]  ;;  %v2651_v45 = vadd.f32 %v2650_v44, %v2649_v20  ;;  %v2667_v32 = vsel %vm82_vm0, %v2614_v25, 0.0 }
 0x29c   :  { %8682 = vst [vmem:[#allocation9_spill] sm:$0xff] %v6968_v36  ;;  %v6972_v15 = vmul.f32 %v6968_v36, %v6793_v0  ;;  %8683 = vst [vmem:[#allocation3_spill] sm:$0xff] %v6977_v30  ;;  %v6981_v50 = vmul.f32 %v6977_v30, %v6801_v38  ;;  %v6986_v19 = vld [vmem:[%s8119_s0 + $0xa0] sm:$0xff]  ;;  %v6995_v36 = vld [vmem:[%s8119_s0 + $0xa8] sm:$0xff]  ;;  %v2677_v18 = vsel %vm82_vm0, %v2617_v23, 0.0  ;;  %v2685_v27 = vsel %vm82_vm0, %v2618_v41, 0.0 }
 0x29d   :  { %8684 = vst [vmem:[#allocation24_spill] sm:$0xff] %v6986_v19  ;;  %v6990_v24 = vmul.f32 %v6986_v19, %v6793_v0  ;;  %8685 = vst [vmem:[#allocation12_spill] sm:$0xff] %v6995_v36  ;;  %v6999_v35 = vmul.f32 %v6995_v36, %v6801_v38  ;;  %v7004_v30 = vld [vmem:[%s8119_s0 + $0xb0] sm:$0xff]  ;;  %v7013_v19 = vld [vmem:[%s8119_s0 + $0xb8] sm:$0xff]  ;;  %v2640_v36 = vsel %vm82_vm0, %v2608_v7, 0.0  ;;  %v2676_v7 = vsel %vm82_vm0, %v2616_v57, 0.0 }
 0x29e   :  { %8686 = vst [vmem:[#allocation16_spill] sm:$0xff] %v7004_v30  ;;  %v7008_v54 = vmul.f32 %v7004_v30, %v6793_v0  ;;  %8687 = vst [vmem:[#allocation20_spill] sm:$0xff] %v7013_v19  ;;  %v7017_v31 = vmul.f32 %v7013_v19, %v6801_v38  ;;  %v2642_v2 = vadd.f32 %v2641_v26, %v2640_v36  ;;  %v2658_v30 = vsel %vm82_vm0, %v2612_v21, 0.0 }
 0x29f   :  { %v2660_v28 = vadd.f32 %v2659_v16, %v2658_v30  ;;  %v2668_v19 = vsel %vm82_vm0, %v2615_v29, 0.0  ;;  %v2652_v48 = vrot.slane %v2651_v45, 4  ;;  %v2678_v26 = vadd.f32 %v2677_v18, %v2676_v7 }
 0x2a0   :  { %v2643_v12 = vrot.slane %v2642_v2, 4  ;;  %v2669_v5 = vadd.f32 %v2668_v19, %v2667_v32  ;;  %v2686_v44 = vsel %vm82_vm0, %v2619_v53, 0.0  ;;  %v2694_v16 = vsel %vm82_vm0, %v2620_v47, 0.0 }
 0x2a1   :  { %v2661_v36 = vrot.slane %v2660_v28, 4  ;;  %v2653_v20 = vadd.f32 %v2652_v48, %v2651_v45  ;;  %v2679_v25 = vrot.slane %v2678_v26, 4  ;;  %v2687_v29 = vadd.f32 %v2686_v44, %v2685_v27  ;;  %v7038_v45 = vld [vmem:[%s8119_s0 + $0xc0] sm:$0xff] }
 0x2a2   :  { %v2644_v21 = vadd.f32 %v2643_v12, %v2642_v2  ;;  %v2670_v9 = vrot.slane %v2669_v5, 4  ;;  %v2695_v57 = vsel %vm82_vm0, %v2621_v14, 0.0  ;;  %v2703_v23 = vsel %vm82_vm0, %v2622_v46, 0.0  ;;  %8688 = vst [vmem:[#allocation17_spill] sm:$0xff] %v7038_v45 }
 0x2a3   :  { %v2662_v8 = vadd.f32 %v2661_v36, %v2660_v28  ;;  %v2654_v19 = vrot.slane %v2653_v20, 2  ;;  %v2680_v18 = vadd.f32 %v2679_v25, %v2678_v26  ;;  %v2688_v41 = vrot.slane %v2687_v29, 4  ;;  %v7045_v28 = vld [vmem:[%s8119_s0 + $0xc8] sm:$0xff]  ;;  %v7054_v26 = vld [vmem:[%s8119_s0 + $0xd0] sm:$0xff] }
 0x2a4   :  { %v2645_v32 = vrot.slane %v2644_v21, 2  ;;  %v2671_v30 = vadd.f32 %v2670_v9, %v2669_v5  ;;  %v2696_v52 = vadd.f32 %v2695_v57, %v2694_v16  ;;  %v2704_v53 = vsel %vm82_vm0, %v2623_v63, 0.0  ;;  %8689 = vst [vmem:[#allocation18_spill] sm:$0xff] %v7045_v28  ;;  %8690 = vst [vmem:[#allocation19_spill] sm:$0xff] %v7054_v26 }
 0x2a5   :  { %v2663_v7 = vrot.slane %v2662_v8, 2  ;;  %v2632_v5 = vmul.f32 %v7038_v45, %v6793_v0  ;;  %v2633_v9 = vmul.f32 %v7045_v28, %v6801_v38  ;;  %v2655_v47 = vadd.f32 %v2654_v19, %v2653_v20  ;;  %v7084_v19 = vld [vmem:[%s8119_s0 + $0xf0] sm:$0xff] }
 0x2a6   :  { %v2646_v12 = vadd.f32 %v2645_v32, %v2644_v21  ;;  %v2672_v2 = vrot.slane %v2671_v30, 2  ;;  %v2689_v14 = vadd.f32 %v2688_v41, %v2687_v29  ;;  %v2681_v63 = vrot.slane %v2680_v18, 2  ;;  %v7061_v21 = vld [vmem:[%s8119_s0 + $0xd8] sm:$0xff]  ;;  %8694 = vst [vmem:[#allocation26_spill] sm:$0xff] %v7084_v19 }
 0x2a7   :  { %v7049_v46 = vadd.f32 %v2663_v7, %v2662_v8  ;;  %v2697_v48 = vrot.slane %v2696_v52, 4  ;;  %v2705_v36 = vadd.f32 %v2704_v53, %v2703_v23  ;;  %v2634_v27 = vmul.f32 %v7054_v26, %v6793_v0  ;;  %8691 = vst [vmem:[#allocation25_spill] sm:$0xff] %v7061_v21  ;;  %v7070_v8 = vld [vmem:[%s8119_s0 + $0xe0] sm:$0xff]  ;;  %v7077_v23 = vld [vmem:[%s8119_s0 + $0xe8] sm:$0xff] }
 0x2a8   :  { %v2635_v44 = vmul.f32 %v7061_v21, %v6801_v38  ;;  %v2647_v16 = vrot.slane %v2646_v12, 1  ;;  %v7065_v20 = vadd.f32 %v2672_v2, %v2671_v30  ;;  %8692 = vst [vmem:[#allocation48_spill] sm:$0xff] %v7070_v8  ;;  %v2636_v25 = vmul.f32 %v7070_v8, %v6793_v0  ;;  %8693 = vst [vmem:[#allocation14_spill] sm:$0xff] %v7077_v23 }
 0x2a9   :  { %v2690_v29 = vrot.slane %v2689_v14, 2  ;;  %v2698_v32 = vadd.f32 %v2697_v48, %v2696_v52  ;;  %v2706_v57 = vrot.slane %v2705_v36, 4  ;;  %v2637_v30 = vmul.f32 %v7077_v23, %v6801_v38  ;;  %v7091_v52 = vld [vmem:[%s8119_s0 + $0xf8] sm:$0xff] }
 0x2aa   :  { %v2638_v7 = vmul.f32 %v7084_v19, %v6793_v0  ;;  %8695 = vst [vmem:[#allocation4_spill] sm:$0xff] %v7091_v52  ;;  %v2639_v41 = vmul.f32 %v7091_v52, %v6801_v38  ;;  %v2656_v2 = vrot.slane %v2655_v47, 1  ;;  %v2665_v53 = vrot.slane %v7049_v46, 1 }
 0x2ab   :  { %v7096_v48 = vadd.f32 %v2681_v63, %v2680_v18  ;;  %v2707_v23 = vadd.f32 %v2706_v57, %v2705_v36  ;;  %v2712_v8 = vsel %vm82_vm0, %v6954_v3, 0.0  ;;  %v7100_v21 = vadd.f32 %v2647_v16, %v2646_v12 }
 0x2ac   :  { %v2674_v19 = vrot.slane %v7065_v20, 1  ;;  %v2713_v26 = vsel %vm82_vm0, %v6963_v17, 0.0  ;;  %v2721_v28 = vsel %vm82_vm0, %v6972_v15, 0.0  ;;  %v2691_v52 = vadd.f32 %v2690_v29, %v2689_v14 }
 0x2ad   :  { %8696 = vst [vmem:[#allocation11_spill] sm:$0xff] %v7100_v21  ;;  %v2699_v45 = vrot.slane %v2698_v32, 2  ;;  %v2714_v38 = vadd.f32 %v2713_v26, %v2712_v8  ;;  %v2722_v18 = vsel %vm82_vm0, %v6981_v50, 0.0  ;;  %v7109_v63 = vadd.f32 %v2656_v2, %v2655_v47 }
 0x2ae   :  { %v2723_v36 = vadd.f32 %v2722_v18, %v2721_v28  ;;  %v2730_v3 = vsel %vm82_vm0, %v6990_v24, 0.0  ;;  %v2731_v12 = vsel %vm82_vm0, %v6999_v35, 0.0  ;;  %v2683_v17 = vrot.slane %v7096_v48, 1 }
 0x2af   :  { %v2708_v16 = vrot.slane %v2707_v23, 2  ;;  %v2715_v57 = vrot.slane %v2714_v38, 4  ;;  %v2732_v15 = vadd.f32 %v2731_v12, %v2730_v3  ;;  %v2739_v26 = vsel %vm82_vm0, %v7008_v54, 0.0 }
 0x2b0   :  { %v2724_v14 = vrot.slane %v2723_v36, 4  ;;  %v2740_v50 = vsel %vm82_vm0, %v7017_v31, 0.0  ;;  %v2748_v28 = vsel %vm82_vm0, %v2632_v5, 0.0  ;;  %v2692_v47 = vrot.slane %v2691_v52, 1 }
 0x2b1   :  { %v2700_v8 = vadd.f32 %v2699_v45, %v2698_v32  ;;  %v2716_v24 = vadd.f32 %v2715_v57, %v2714_v38  ;;  %v2733_v29 = vrot.slane %v2732_v15, 4  ;;  %v2741_v35 = vadd.f32 %v2740_v50, %v2739_v26 }
 0x2b2   :  { %v2725_v2 = vadd.f32 %v2724_v14, %v2723_v36  ;;  %v2749_v18 = vsel %vm82_vm0, %v2633_v9, 0.0  ;;  %v2757_v0 = vsel %vm82_vm0, %v2634_v27, 0.0  ;;  %v2709_v3 = vadd.f32 %v2708_v16, %v2707_v23 }
 0x2b3   :  { %v2717_v12 = vrot.slane %v2716_v24, 2  ;;  %v2734_v13 = vadd.f32 %v2733_v29, %v2732_v15  ;;  %v2750_v40 = vadd.f32 %v2749_v18, %v2748_v28  ;;  %v2742_v21 = vrot.slane %v2741_v35, 4 }
 0x2b4   :  { %v2726_v54 = vrot.slane %v2725_v2, 2  ;;  %v2758_v31 = vsel %vm82_vm0, %v2635_v44, 0.0  ;;  %v2766_v5 = vsel %vm82_vm0, %v2636_v25, 0.0  ;;  %v2701_v36 = vrot.slane %v2700_v8, 1 }
 0x2b5   :  { %v2718_v22 = vadd.f32 %v2717_v12, %v2716_v24  ;;  %v2735_v45 = vrot.slane %v2734_v13, 2  ;;  %v2751_v38 = vrot.slane %v2750_v40, 4  ;;  %v2759_v32 = vadd.f32 %v2758_v31, %v2757_v0 }
 0x2b6   :  { %v2727_v57 = vadd.f32 %v2726_v54, %v2725_v2  ;;  %v2743_v14 = vadd.f32 %v2742_v21, %v2741_v35  ;;  %v2767_v9 = vsel %vm82_vm0, %v2637_v30, 0.0  ;;  %v2710_v27 = vrot.slane %v2709_v3, 1 }
 0x2b7   :  { %v2752_v23 = vadd.f32 %v2751_v38, %v2750_v40  ;;  %v2760_v16 = vrot.slane %v2759_v32, 4  ;;  %v2775_v15 = vsel %vm82_vm0, %v2638_v7, 0.0  ;;  %v2719_v26 = vrot.slane %v2718_v22, 1 }
 0x2b8   :  { %v2744_v50 = vrot.slane %v2743_v14, 2  ;;  %v2768_v28 = vadd.f32 %v2767_v9, %v2766_v5  ;;  %v2776_v44 = vsel %vm82_vm0, %v2639_v41, 0.0  ;;  %v2728_v25 = vrot.slane %v2727_v57, 1 }
 0x2b9   :  { %v2736_v24 = vadd.f32 %v2735_v45, %v2734_v13  ;;  %v2753_v29 = vrot.slane %v2752_v23, 2  ;;  %v2761_v18 = vadd.f32 %v2760_v16, %v2759_v32  ;;  %v7129_v0 = vadd.f32 %v2665_v53, %v7049_v46 }
 0x2ba   :  { %v7132_v21 = vadd.f32 %v2674_v19, %v7065_v20  ;;  %v2769_v30 = vrot.slane %v2768_v28, 4  ;;  %v2777_v40 = vadd.f32 %v2776_v44, %v2775_v15  ;;  %v7135_v2 = vadd.f32 %v2683_v17, %v7096_v48 }
 0x2bb   :  { %v2745_v7 = vadd.f32 %v2744_v50, %v2743_v14  ;;  %v2754_v35 = vadd.f32 %v2753_v29, %v2752_v23  ;;  %v2762_v12 = vrot.slane %v2761_v18, 2  ;;  %v7137_v54 = vadd.f32 %v2692_v47, %v2691_v52 }
 0x2bc   :  { %v7139_v41 = vadd.f32 %v2701_v36, %v2700_v8  ;;  %v2770_v13 = vadd.f32 %v2769_v30, %v2768_v28  ;;  %v2778_v31 = vrot.slane %v2777_v40, 4  ;;  %v7141_v5 = vadd.f32 %v2710_v27, %v2709_v3 }
 0x2bd   :  { %v7143_v46 = vadd.f32 %v2719_v26, %v2718_v22  ;;  %v7145_v20 = vadd.f32 %v2728_v25, %v2727_v57  ;;  %v2737_v19 = vrot.slane %v2736_v24, 1  ;;  %v2763_v53 = vadd.f32 %v2762_v12, %v2761_v18 }
 0x2be   :  { %v2771_v45 = vrot.slane %v2770_v13, 2  ;;  %v2779_v48 = vadd.f32 %v2778_v31, %v2777_v40  ;;  %v2793_v17 = vmul.f32 %v6739_v1, %v6739_v1  ;;  %v2746_v38 = vrot.slane %v2745_v7, 1 }
 0x2bf   :  { %v2755_v52 = vrot.slane %v2754_v35, 1  ;;  %v2794_v47 = vmul.f32 %v6742_v49, %v6742_v49  ;;  %v2795_v8 = vmul.f32 %v6745_v55, %v6745_v55  ;;  %v2816_v32 = vrot.slane %v6805_v4, 7 }
 0x2c0   :  { %v2772_v3 = vadd.f32 %v2771_v45, %v2770_v13  ;;  %v2780_v22 = vrot.slane %v2779_v48, 2  ;;  %v2818_v36 = vrot.slane %v6809_v60, 6  ;;  %v2796_v57 = vmul.f32 %v6754_v51, %v6754_v51 }
 0x2c1   :  { %v2797_v14 = vmul.f32 %v6757_v59, %v6757_v59  ;;  %v2820_v9 = vrot.slane %v6813_v56, 5  ;;  %v2822_v27 = vrot.slane %v6817_v34, 4  ;;  %v2764_v23 = vrot.slane %v2763_v53, 1 }
 0x2c2   :  { %v2781_v16 = vadd.f32 %v2780_v22, %v2779_v48  ;;  %v2817_v15 = vsel %vm292_vm1, %v2816_v32, %v6798_v11  ;;  %v2824_v26 = vrot.slane %v6821_v39, 3  ;;  %v2798_v4 = vmul.f32 %v6760_v33, %v6760_v33  ;;  %v8698_v32 = vld [vmem:[#allocation11_spill] sm:$0xff] }
 0x2c3   :  { %v2819_v60 = vsel %vm295_vm2, %v2818_v36, %v2817_v15  ;;  %v2830_v50 = vrot.slane %v2793_v17, 7  ;;  %v2832_v28 = vrot.slane %v2794_v47, 6  ;;  %v2773_v44 = vrot.slane %v2772_v3, 1 }
 0x2c4   :  { %v2821_v25 = vsel %vm298_vm3, %v2820_v9, %v2819_v60  ;;  %v2826_v56 = vrot.slane %v6825_v6, 2  ;;  %v2834_v34 = vrot.slane %v2795_v8, 5  ;;  %v2782_v29 = vrot.slane %v2781_v16, 1  ;;  %v8700_v9 = vld [vmem:[#allocation29_spill] sm:$0xff]  ;;  %v8702_v60 = vld [vmem:[#allocation31_spill] sm:$0xff] }
 0x2c5   :  { %v2823_v18 = vsel %vm301_vm4, %v2822_v27, %v2821_v25  ;;  %v2831_v11 = vsel %vm292_vm1, %v2830_v50, %v6854_v58  ;;  %v2836_v39 = vrot.slane %v2796_v57, 4  ;;  %v7172_v30 = vadd.f32 %v2737_v19, %v2736_v24  ;;  %v8699_v57 = vld [vmem:[#allocation28_spill] sm:$0xff] }
 0x2c6   :  { %v2799_v40 = vmul.f32 %v6766_v61, %v6766_v61  ;;  %v2825_v12 = vsel %vm304_vm5, %v2824_v26, %v2823_v18  ;;  %v2833_v13 = vsel %vm295_vm2, %v2832_v28, %v2831_v11  ;;  %v7178_v31 = vadd.f32 %v2746_v38, %v2745_v7 }
 0x2c7   :  { %v7180_v6 = vadd.f32 %v2755_v52, %v2754_v35  ;;  %v2835_v45 = vsel %vm298_vm3, %v2834_v34, %v2833_v13  ;;  %v2838_v48 = vrot.slane %v2797_v14, 3  ;;  %v7183_v17 = vadd.f32 %v2764_v23, %v2763_v53  ;;  %v8701_v23 = vld [vmem:[#allocation30_spill] sm:$0xff] }
 0x2c8   :  { %v7185_v58 = vadd.f32 %v2773_v44, %v2772_v3  ;;  %v2828_v24 = vrot.slane %v6829_v42, 1  ;;  %v2837_v19 = vsel %vm301_vm4, %v2836_v39, %v2835_v45  ;;  %v7189_v47 = vadd.f32 %v2782_v29, %v2781_v16  ;;  %v8697_v3 = vld [vmem:[#allocation27_spill] sm:$0xff] }
 0x2c9   :  { %v2827_v8 = vsel %vm307_vm6, %v2826_v56, %v2825_v12  ;;  %v2840_v22 = vrot.slane %v2798_v4, 2  ;;  %v2856_v7 = vmul.f32 %v7109_v63, %v6718_v62  ;;  %v2842_v35 = vrot.slane %v2799_v40, 1 }
 0x2ca   :  { %v2857_v38 = vmul.f32 %v7129_v0, %v6721_v43  ;;  %v2858_v53 = vmul.f32 %v7132_v21, %v6724_v10  ;;  %v2859_v42 = vmul.f32 %v7135_v2, %v6730_v37  ;;  %v2839_v52 = vsel %vm304_vm5, %v2838_v48, %v2837_v19 }
 0x2cb   :  { %v2855_v36 = vmul.f32 %v8698_v32, %v8697_v3  ;;  %v2860_v14 = vmul.f32 %v7137_v54, %v8699_v57  ;;  %v2861_v27 = vmul.f32 %v7139_v41, %v8700_v9  ;;  %v2862_v16 = vmul.f32 %v7141_v5, %v8701_v23 }
 0x2cc   :  { %v2864_v15 = vmul.f32 %v7145_v20, %v6739_v1  ;;  %v2865_v26 = vmul.f32 %v7172_v30, %v6742_v49  ;;  %v2866_v4 = vmul.f32 %v7178_v31, %v6745_v55  ;;  %v2863_v50 = vmul.f32 %v7143_v46, %v8702_v60 }
 0x2cd   :  { %v2867_v28 = vmul.f32 %v7180_v6, %v6754_v51  ;;  %v2868_v44 = vmul.f32 %v7183_v17, %v6757_v59  ;;  %v2887_v25 = vrot.slane %v2856_v7, 7  ;;  %v2869_v56 = vmul.f32 %v7185_v58, %v6760_v33 }
 0x2ce   :  { %v2889_v34 = vrot.slane %v2857_v38, 6  ;;  %v2891_v29 = vrot.slane %v2858_v53, 5  ;;  %v2893_v18 = vrot.slane %v2859_v42, 4  ;;  %v2870_v11 = vmul.f32 %v7189_v47, %v6766_v61 }
 0x2cf   :  { %v2888_v39 = vsel %vm292_vm1, %v2887_v25, %v2855_v36  ;;  %v2895_v40 = vrot.slane %v2860_v14, 3  ;;  %v2897_v12 = vrot.slane %v2861_v27, 2  ;;  %v2901_v45 = vrot.slane %v2864_v15, 7 }
 0x2d0   :  { %v2890_v13 = vsel %vm295_vm2, %v2889_v34, %v2888_v39  ;;  %v2903_v48 = vrot.slane %v2865_v26, 6  ;;  %v2905_v19 = vrot.slane %v2866_v4, 5  ;;  %v2841_v7 = vsel %vm307_vm6, %v2840_v22, %v2839_v52 }
 0x2d1   :  { %v2892_v59 = vsel %vm298_vm3, %v2891_v29, %v2890_v13  ;;  %v2899_v33 = vrot.slane %v2862_v16, 1  ;;  %v2907_v38 = vrot.slane %v2867_v28, 4  ;;  %v2902_v42 = vsel %vm292_vm1, %v2901_v45, %v2863_v50 }
 0x2d2   :  { %v2894_v53 = vsel %vm301_vm4, %v2893_v18, %v2892_v59  ;;  %v2909_v61 = vrot.slane %v2868_v44, 3  ;;  %v2829_v36 = vsel %vm310_vm7, %v2828_v24, %v2827_v8  ;;  %v2904_v27 = vsel %vm295_vm2, %v2903_v48, %v2902_v42 }
 0x2d3   :  { %v2896_v14 = vsel %vm304_vm5, %v2895_v40, %v2894_v53  ;;  %v2911_v15 = vrot.slane %v2869_v56, 2  ;;  %v2843_v26 = vsel %vm310_vm7, %v2842_v35, %v2841_v7  ;;  %v2906_v52 = vsel %vm298_vm3, %v2905_v19, %v2904_v27  ;;  %v8703_v27 = vld [vmem:[#allocation2_spill] sm:$0xff] }
 0x2d4   :  { %v2898_v22 = vsel %vm307_vm6, %v2897_v12, %v2896_v14  ;;  %v2913_v16 = vrot.slane %v2870_v11, 1  ;;  %v2908_v59 = vsel %vm301_vm4, %v2907_v38, %v2906_v52  ;;  %v2846_v24 = vsel %vm82_vm0, %v2829_v36, 0.0 }
 0x2d5   :  { %v2900_v4 = vsel %vm310_vm7, %v2899_v33, %v2898_v22  ;;  %v2910_v50 = vsel %vm304_vm5, %v2909_v61, %v2908_v59  ;;  %v2847_v8 = vsel %vm82_vm0, %v2843_v26, 0.0  ;;  %v2952_v12 = vsel %vm292_vm1, %v7109_v63, %v8698_v32 }
 0x2d6   :  { %v2912_v28 = vsel %vm307_vm6, %v2911_v15, %v2910_v50  ;;  %v2917_v44 = vsel %vm82_vm0, %v2900_v4, 0.0  ;;  %v2848_v56 = vadd.f32 %v2847_v8, %v2846_v24  ;;  %v2959_v13 = vsel %vm292_vm1, %v7145_v20, %v7143_v46  ;;  %v8704_v15 = vld [vmem:[#allocation35_spill] sm:$0xff]  ;;  %v8707_v4 = vld [vmem:[#allocation21_spill] sm:$0xff]  ;;  %v8711_v24 = vld [vmem:[#allocation22_spill] sm:$0xff] }
 0x2d7   :  { %v2914_v35 = vsel %vm310_vm7, %v2913_v16, %v2912_v28  ;;  %v2953_v19 = vsel %vm295_vm2, %v7129_v0, %v2952_v12  ;;  %v2960_v7 = vsel %vm295_vm2, %v7172_v30, %v2959_v13  ;;  %v8710_v50 = vld [vmem:[#allocation49_spill] sm:$0xff] }
 0x2d8   :  { %v2918_v25 = vsel %vm82_vm0, %v2914_v35, 0.0  ;;  %v2849_v33 = vrot.slane %v2848_v56, 4  ;;  %v2954_v53 = vsel %vm298_vm3, %v7132_v21, %v2953_v19  ;;  %v2961_v63 = vsel %vm298_vm3, %v7178_v31, %v2960_v7 }
 0x2d9   :  { %v2919_v34 = vadd.f32 %v2918_v25, %v2917_v44  ;;  %v2955_v46 = vsel %vm301_vm4, %v7135_v2, %v2954_v53  ;;  %v2962_v20 = vsel %vm301_vm4, %v7180_v6, %v2961_v63  ;;  %v8712_v8 = vsub.f32 %v8710_v50, %v8711_v24 }
 0x2da   :  { %v2850_v39 = vadd.f32 %v2849_v33, %v2848_v56  ;;  %v2956_v0 = vsel %vm304_vm5, %v7137_v54, %v2955_v46  ;;  %v2963_v30 = vsel %vm304_vm5, %v7183_v17, %v2962_v20  ;;  %v8705_v17 = vld [vmem:[#allocation36_spill] sm:$0xff] }
 0x2db   :  { %v2920_v29 = vrot.slane %v2919_v34, 4  ;;  %v2957_v21 = vsel %vm307_vm6, %v7139_v41, %v2956_v0  ;;  %v2964_v31 = vsel %vm307_vm6, %v7185_v58, %v2963_v30  ;;  %v8706_v41 = vld [vmem:[#allocation15_spill] sm:$0xff] }
 0x2dc   :  { %v2851_v45 = vrot.slane %v2850_v39, 2  ;;  %v2958_v2 = vsel %vm310_vm7, %v7141_v5, %v2957_v21  ;;  %v2965_v6 = vsel %vm310_vm7, %v7189_v47, %v2964_v31  ;;  %v8708_v59 = vsub.f32 %v8706_v41, %v8707_v4 }
 0x2dd   :  { %v2921_v18 = vadd.f32 %v2920_v29, %v2919_v34 }
 0x2de   :  { %v2852_v38 = vadd.f32 %v2851_v45, %v2850_v39 }
 0x2df   :  { %v2922_v11 = vrot.slane %v2921_v18, 2 }
 0x2e0   :  { %v2853_v32 = vrot.slane %v2852_v38, 1 }
 0x2e1   :  { %v2923_v61 = vadd.f32 %v2922_v11, %v2921_v18 }
 0x2e2   :  { %v2854_v42 = vadd.f32 %v2853_v32, %v2852_v38 }
 0x2e3   :  { %v2924_v40 = vrot.slane %v2923_v61, 1 }
 0x2e5   :  { %v2925_v48 = vadd.f32 %v2924_v40, %v2923_v61 }
 0x2e7   :  { %3864 = vrcp.f32 %v2925_v48 }
 0x2f4   :  { %v3865_v36 = vpop.eup %3864 }
 0x2f5   :  { %v2927_v14 = vmul.f32 %v3865_v36, %v2854_v42 }
 0x2f7   :  { %v2931_v54 = vrot.slane %v2927_v14, %v8703_v27 }
 0x2f9   :  { %v2932_v26 = vmul.f32 %v2931_v54, %v8704_v15  ;;  %v2933_v22 = vmul.f32 %v2931_v54, %v8705_v17  ;;  %v2968_v52 = vmul.f32 %v2958_v2, %v2931_v54  ;;  %v2969_v16 = vmul.f32 %v2965_v6, %v2931_v54 }
 0x2fb   :  { %v7282_v58 = vsub.f32 %v8708_v59, %v2932_v26  ;;  %v7287_v5 = vsub.f32 %v8712_v8, %v2933_v22  ;;  %v2972_v28 = vrot.slane %v2968_v52, 1  ;;  %v2973_v47 = vrot.slane %v2968_v52, 2 }
 0x2fc   :  { %v2974_v44 = vrot.slane %v2968_v52, 3  ;;  %v2975_v35 = vrot.slane %v2968_v52, 4  ;;  %v2976_v25 = vrot.slane %v2968_v52, 5  ;;  %v2977_v56 = vrot.slane %v2968_v52, 6 }
 0x2fd   :  { %8709 = vst [vmem:[#allocation27_spill] sm:$0xff] %v7282_v58  ;;  %8713 = vst [vmem:[#allocation11_spill] sm:$0xff] %v7287_v5  ;;  %v2979_v34 = vrot.slane %v2969_v16, 1  ;;  %v2980_v29 = vrot.slane %v2969_v16, 2  ;;  %v2981_v33 = vrot.slane %v2969_v16, 3  ;;  %v2978_v18 = vrot.slane %v2968_v52, 7 }
 0x2fe   :  { %v2982_v11 = vrot.slane %v2969_v16, 4  ;;  %v2983_v39 = vrot.slane %v2969_v16, 5  ;;  %v2984_v61 = vrot.slane %v2969_v16, 6  ;;  %v7290_v40 = vsub.f32 %v6718_v62, %v2972_v28 }
 0x2ff   :  { %v7293_v12 = vsub.f32 %v6721_v43, %v2973_v47  ;;  %v7296_v13 = vsub.f32 %v6724_v10, %v2974_v44  ;;  %v2985_v45 = vrot.slane %v2969_v16, 7  ;;  %v7299_v48 = vsub.f32 %v8697_v3, %v2968_v52 }
 0x300   :  { %v7302_v19 = vsub.f32 %v6730_v37, %v2975_v35  ;;  %v7305_v7 = vsub.f32 %v8699_v57, %v2976_v25  ;;  %v7308_v38 = vsub.f32 %v8700_v9, %v2977_v56  ;;  %v7311_v62 = vsub.f32 %v6739_v1, %v2979_v34  ;;  %v8719_v9 = vld [vmem:[#allocation32_spill] sm:$0xff]  ;;  %v8721_v1 = vld [vmem:[#allocation33_spill] sm:$0xff] }
 0x301   :  { %8714 = vst [vmem:[#allocation28_spill] sm:$0xff] %v7299_v48  ;;  %v7314_v43 = vsub.f32 %v6742_v49, %v2980_v29  ;;  %v7317_v10 = vsub.f32 %v6745_v55, %v2981_v33  ;;  %v7320_v3 = vsub.f32 %v8701_v23, %v2978_v18  ;;  %v7323_v37 = vsub.f32 %v8702_v60, %v2969_v16  ;;  %v8723_v23 = vld [vmem:[#allocation34_spill] sm:$0xff]  ;;  %v8727_v33 = vld [vmem:[#allocation37_spill] sm:$0xff] }
 0x302   :  { %8715 = vst [vmem:[#allocation29_spill] sm:$0xff] %v7305_v7  ;;  %8716 = vst [vmem:[#allocation30_spill] sm:$0xff] %v7308_v38  ;;  %v7326_v57 = vsub.f32 %v6754_v51, %v2982_v11  ;;  %v7329_v53 = vsub.f32 %v8719_v9, %v2983_v39  ;;  %v7332_v63 = vsub.f32 %v8721_v1, %v2984_v61  ;;  %v3034_v49 = vrot.slane %v7290_v40, 7  ;;  %v8728_v11 = vld [vmem:[#allocation38_spill] sm:$0xff]  ;;  %v8729_v61 = vld [vmem:[#allocation39_spill] sm:$0xff] }
 0x303   :  { %8717 = vst [vmem:[#allocation31_spill] sm:$0xff] %v7320_v3  ;;  %8718 = vst [vmem:[#allocation35_spill] sm:$0xff] %v7323_v37  ;;  %v3036_v55 = vrot.slane %v7293_v12, 6  ;;  %v3038_v32 = vrot.slane %v7296_v13, 5  ;;  %v7338_v46 = vsub.f32 %v8723_v23, %v2985_v45  ;;  %v3040_v60 = vrot.slane %v7302_v19, 4  ;;  %v8730_v1 = vld [vmem:[#allocation40_spill] sm:$0xff] }
 0x304   :  { %8720 = vst [vmem:[#allocation36_spill] sm:$0xff] %v7329_v53  ;;  %8722 = vst [vmem:[#allocation15_spill] sm:$0xff] %v7332_v63  ;;  %v3042_v51 = vrot.slane %v7305_v7, 3  ;;  %v3048_v20 = vrot.slane %v7311_v62, 7  ;;  %v3035_v0 = vsel %vm292_vm1, %v3034_v49, %v7299_v48  ;;  %v3050_v30 = vrot.slane %v7314_v43, 6  ;;  %v8732_v23 = vld [vmem:[#allocation42_spill] sm:$0xff] }
 0x305   :  { %8724 = vst [vmem:[#allocation21_spill] sm:$0xff] %v7338_v46  ;;  %v3052_v42 = vrot.slane %v7317_v10, 5  ;;  %v3054_v21 = vrot.slane %v7326_v57, 4  ;;  %v3037_v31 = vsel %vm295_vm2, %v3036_v55, %v3035_v0  ;;  %v3044_v36 = vrot.slane %v7308_v38, 2  ;;  %v8731_v55 = vld [vmem:[#allocation41_spill] sm:$0xff]  ;;  %v8734_v0 = vld [vmem:[#allocation44_spill] sm:$0xff] }
 0x306   :  { %v3049_v14 = vsel %vm292_vm1, %v3048_v20, %v7323_v37  ;;  %v3056_v2 = vrot.slane %v7329_v53, 3  ;;  %v3039_v6 = vsel %vm298_vm3, %v3038_v32, %v3037_v31  ;;  %v3046_v54 = vrot.slane %v7320_v3, 1  ;;  %v8736_v31 = vld [vmem:[#allocation46_spill] sm:$0xff] }
 0x307   :  { %v3051_v15 = vsel %vm295_vm2, %v3050_v30, %v3049_v14  ;;  %v3058_v26 = vrot.slane %v7332_v63, 2  ;;  %v3041_v17 = vsel %vm301_vm4, %v3040_v60, %v3039_v6  ;;  %v3060_v52 = vrot.slane %v7338_v46, 1  ;;  %v8737_v14 = vld [vmem:[#allocation47_spill] sm:$0xff]  ;;  %v8738_v6 = vld [vmem:[#allocation5_spill] sm:$0xff] }
 0x308   :  { %v3053_v22 = vsel %vm298_vm3, %v3052_v42, %v3051_v15  ;;  %v3043_v16 = vsel %vm304_vm5, %v3042_v51, %v3041_v17  ;;  %v7370_v8 = vmul.f32 %v7299_v48, %v7299_v48  ;;  %v7377_v47 = vmul.f32 %v7290_v40, %v7290_v40  ;;  %v8733_v51 = vld [vmem:[#allocation43_spill] sm:$0xff]  ;;  %v8735_v42 = vld [vmem:[#allocation45_spill] sm:$0xff]  ;;  %v8739_v15 = vld [vmem:[#allocation10_spill] sm:$0xff] }
 0x309   :  { %v3055_v41 = vsel %vm301_vm4, %v3054_v21, %v3053_v22  ;;  %v3045_v4 = vsel %vm307_vm6, %v3044_v36, %v3043_v16  ;;  %v7381_v44 = vmul.f32 %v7293_v12, %v7293_v12  ;;  %v7385_v35 = vmul.f32 %v7296_v13, %v7296_v13  ;;  %v8740_v17 = vld [vmem:[#allocation6_spill] sm:$0xff] }
 0x30a   :  { %v3057_v59 = vsel %vm304_vm5, %v3056_v2, %v3055_v41  ;;  %v7365_v50 = vsel %vm310_vm7, %v3046_v54, %v3045_v4  ;;  %v7389_v25 = vmul.f32 %v7302_v19, %v7302_v19  ;;  %v7393_v56 = vmul.f32 %v7305_v7, %v7305_v7  ;;  %v8742_v41 = vld [vmem:[#allocation8_spill] sm:$0xff] }
 0x30b   :  { %8725 = vst [vmem:[#allocation49_spill] sm:$0xff] %v7365_v50  ;;  %v3059_v24 = vsel %vm307_vm6, %v3058_v26, %v3057_v59  ;;  %v7397_v34 = vmul.f32 %v7308_v38, %v7308_v38  ;;  %v7401_v29 = vmul.f32 %v7320_v3, %v7320_v3  ;;  %v3064_v18 = vmul.f32 %v8727_v33, %v7365_v50  ;;  %v8743_v59 = vld [vmem:[#allocation23_spill] sm:$0xff]  ;;  %v8744_v33 = vld [vmem:[#allocation13_spill] sm:$0xff] }
 0x30c   :  { %v7373_v28 = vsel %vm310_vm7, %v3060_v52, %v3059_v24  ;;  %v3066_v39 = vmul.f32 %v8728_v11, %v7365_v50  ;;  %v3068_v45 = vmul.f32 %v8729_v61, %v7365_v50  ;;  %v7411_v9 = vmul.f32 %v7323_v37, %v7323_v37  ;;  %v8741_v52 = vld [vmem:[#allocation7_spill] sm:$0xff]  ;;  %v8745_v61 = vld [vmem:[#allocation9_spill] sm:$0xff] }
 0x30d   :  { %8726 = vst [vmem:[#allocation22_spill] sm:$0xff] %v7373_v28  ;;  %v3065_v49 = vmul.f32 %v8730_v1, %v7373_v28  ;;  %v3067_v32 = vmul.f32 %v8731_v55, %v7373_v28  ;;  %v3069_v60 = vmul.f32 %v8732_v23, %v7373_v28  ;;  %v3070_v20 = vmul.f32 %v8733_v51, %v7365_v50  ;;  %v8746_v55 = vld [vmem:[#allocation3_spill] sm:$0xff]  ;;  %v8747_v51 = vld [vmem:[#allocation24_spill] sm:$0xff] }
 0x30e   :  { %v3071_v30 = vmul.f32 %v8734_v0, %v7373_v28  ;;  %v3072_v21 = vmul.f32 %v8735_v42, %v7365_v50  ;;  %v3073_v36 = vmul.f32 %v8736_v31, %v7373_v28  ;;  %v3074_v2 = vmul.f32 %v8737_v14, %v7365_v50  ;;  %v8748_v42 = vld [vmem:[#allocation12_spill] sm:$0xff] }
 0x30f   :  { %v3075_v54 = vmul.f32 %v8738_v6, %v7373_v28  ;;  %v3076_v26 = vmul.f32 %v8739_v15, %v7365_v50  ;;  %v3077_v22 = vmul.f32 %v8740_v17, %v7373_v28  ;;  %v3078_v16 = vmul.f32 %v8741_v52, %v7365_v50  ;;  %v8749_v14 = vld [vmem:[#allocation16_spill] sm:$0xff] }
 0x310   :  { %v3079_v4 = vmul.f32 %v8742_v41, %v7373_v28  ;;  %v7441_v24 = vmul.f32 %v8743_v59, %v7365_v50  ;;  %v7445_v11 = vmul.f32 %v8744_v33, %v7373_v28  ;;  %v7449_v1 = vmul.f32 %v8745_v61, %v7365_v50  ;;  %v8750_v15 = vld [vmem:[#allocation20_spill] sm:$0xff] }
 0x311   :  { %v7453_v23 = vmul.f32 %v8746_v55, %v7373_v28  ;;  %v7457_v0 = vmul.f32 %v8747_v51, %v7365_v50  ;;  %v7461_v31 = vmul.f32 %v8748_v42, %v7373_v28  ;;  %v7465_v6 = vmul.f32 %v8749_v14, %v7365_v50 }
 0x312   :  { %v7469_v17 = vmul.f32 %v8750_v15, %v7373_v28  ;;  %v3096_v52 = vsel %vm82_vm0, %v3064_v18, 0.0  ;;  %v3097_v41 = vsel %vm82_vm0, %v3065_v49, 0.0  ;;  %v3105_v59 = vsel %vm82_vm0, %v3066_v39, 0.0 }
 0x313   :  { %v3098_v33 = vadd.f32 %v3097_v41, %v3096_v52  ;;  %v3106_v61 = vsel %vm82_vm0, %v3067_v32, 0.0  ;;  %v3114_v55 = vsel %vm82_vm0, %v3068_v45, 0.0  ;;  %v3115_v51 = vsel %vm82_vm0, %v3069_v60, 0.0 }
 0x314   :  { %v3107_v42 = vadd.f32 %v3106_v61, %v3105_v59  ;;  %v3116_v14 = vadd.f32 %v3115_v51, %v3114_v55  ;;  %v3123_v5 = vsel %vm82_vm0, %v3070_v20, 0.0  ;;  %v3124_v15 = vsel %vm82_vm0, %v3071_v30, 0.0 }
 0x315   :  { %v3099_v58 = vrot.slane %v3098_v33, 4  ;;  %v3125_v27 = vadd.f32 %v3124_v15, %v3123_v5  ;;  %v3132_v18 = vsel %vm82_vm0, %v3072_v21, 0.0  ;;  %v3133_v49 = vsel %vm82_vm0, %v3073_v36, 0.0 }
 0x316   :  { %v3108_v39 = vrot.slane %v3107_v42, 4  ;;  %v3117_v52 = vrot.slane %v3116_v14, 4  ;;  %v3134_v41 = vadd.f32 %v3133_v49, %v3132_v18  ;;  %v3141_v32 = vsel %vm82_vm0, %v3074_v2, 0.0 }
 0x317   :  { %v3100_v45 = vadd.f32 %v3099_v58, %v3098_v33  ;;  %v3126_v37 = vrot.slane %v3125_v27, 4  ;;  %v3142_v60 = vsel %vm82_vm0, %v3075_v54, 0.0  ;;  %v3150_v59 = vsel %vm82_vm0, %v3076_v26, 0.0  ;;  %v8751_v26 = vld [vmem:[#allocation17_spill] sm:$0xff] }
 0x318   :  { %v3109_v20 = vadd.f32 %v3108_v39, %v3107_v42  ;;  %v3118_v61 = vadd.f32 %v3117_v52, %v3116_v14  ;;  %v3135_v30 = vrot.slane %v3134_v41, 4  ;;  %v3143_v55 = vadd.f32 %v3142_v60, %v3141_v32  ;;  %v8752_v14 = vld [vmem:[#allocation18_spill] sm:$0xff]  ;;  %v8754_v60 = vld [vmem:[#allocation25_spill] sm:$0xff] }
 0x319   :  { %v3101_v5 = vrot.slane %v3100_v45, 2  ;;  %v3127_v51 = vadd.f32 %v3126_v37, %v3125_v27  ;;  %v3151_v21 = vsel %vm82_vm0, %v3077_v22, 0.0  ;;  %v3159_v36 = vsel %vm82_vm0, %v3078_v16, 0.0 }
 0x31a   :  { %v3110_v15 = vrot.slane %v3109_v20, 2  ;;  %v3119_v18 = vrot.slane %v3118_v61, 2  ;;  %v3136_v49 = vadd.f32 %v3135_v30, %v3134_v41  ;;  %v3144_v2 = vrot.slane %v3143_v55, 4  ;;  %v8753_v41 = vld [vmem:[#allocation19_spill] sm:$0xff] }
 0x31b   :  { %v3102_v58 = vadd.f32 %v3101_v5, %v3100_v45  ;;  %v3128_v33 = vrot.slane %v3127_v51, 2  ;;  %v3152_v3 = vadd.f32 %v3151_v21, %v3150_v59  ;;  %v3160_v54 = vsel %vm82_vm0, %v3079_v4, 0.0  ;;  %v8755_v5 = vld [vmem:[#allocation48_spill] sm:$0xff] }
 0x31c   :  { %v3088_v42 = vmul.f32 %v8751_v26, %v7365_v50  ;;  %v3089_v39 = vmul.f32 %v8752_v14, %v7373_v28  ;;  %v3111_v27 = vadd.f32 %v3110_v15, %v3109_v20  ;;  %v3145_v37 = vadd.f32 %v3144_v2, %v3143_v55  ;;  %v8758_v2 = vld [vmem:[#allocation4_spill] sm:$0xff] }
 0x31d   :  { %v7491_v22 = vadd.f32 %v3119_v18, %v3118_v61  ;;  %v3137_v16 = vrot.slane %v3136_v49, 2  ;;  %v3153_v52 = vrot.slane %v3152_v3, 4  ;;  %v3161_v32 = vadd.f32 %v3160_v54, %v3159_v36  ;;  %v8756_v61 = vld [vmem:[#allocation14_spill] sm:$0xff] }
 0x31e   :  { %v3090_v45 = vmul.f32 %v8753_v41, %v7365_v50  ;;  %v3091_v59 = vmul.f32 %v8754_v60, %v7373_v28  ;;  %v3103_v4 = vrot.slane %v3102_v58, 1  ;;  %v7497_v30 = vadd.f32 %v3128_v33, %v3127_v51  ;;  %v8757_v36 = vld [vmem:[#allocation26_spill] sm:$0xff] }
 0x31f   :  { %v3092_v21 = vmul.f32 %v8755_v5, %v7365_v50  ;;  %v3146_v26 = vrot.slane %v3145_v37, 2  ;;  %v3154_v20 = vadd.f32 %v3153_v52, %v3152_v3  ;;  %v3162_v55 = vrot.slane %v3161_v32, 4 }
 0x320   :  { %v3093_v15 = vmul.f32 %v8756_v61, %v7373_v28  ;;  %v3094_v18 = vmul.f32 %v8757_v36, %v7365_v50  ;;  %v3095_v54 = vmul.f32 %v8758_v2, %v7373_v28  ;;  %v3112_v14 = vrot.slane %v3111_v27, 1 }
 0x321   :  { %v3121_v41 = vrot.slane %v7491_v22, 1  ;;  %v7508_v51 = vadd.f32 %v3137_v16, %v3136_v49  ;;  %v3163_v33 = vadd.f32 %v3162_v55, %v3161_v32  ;;  %v3168_v60 = vsel %vm82_vm0, %v7441_v24, 0.0 }
 0x322   :  { %v7512_v3 = vadd.f32 %v3103_v4, %v3102_v58  ;;  %v3130_v52 = vrot.slane %v7497_v30, 1  ;;  %v3169_v5 = vsel %vm82_vm0, %v7445_v11, 0.0  ;;  %v3177_v61 = vsel %vm82_vm0, %v7449_v1, 0.0 }
 0x323   :  { %v3147_v36 = vadd.f32 %v3146_v26, %v3145_v37  ;;  %v3155_v2 = vrot.slane %v3154_v20, 2  ;;  %v3170_v28 = vadd.f32 %v3169_v5, %v3168_v60  ;;  %v3178_v49 = vsel %vm82_vm0, %v7453_v23, 0.0 }
 0x324   :  { %8759 = vst [vmem:[#allocation32_spill] sm:$0xff] %v7512_v3  ;;  %v7521_v16 = vadd.f32 %v3112_v14, %v3111_v27  ;;  %v3179_v32 = vadd.f32 %v3178_v49, %v3177_v61  ;;  %v3186_v24 = vsel %vm82_vm0, %v7457_v0, 0.0  ;;  %v3187_v58 = vsel %vm82_vm0, %v7461_v31, 0.0 }
 0x325   :  { %v3139_v11 = vrot.slane %v7508_v51, 1  ;;  %v3164_v4 = vrot.slane %v3163_v33, 2  ;;  %v3171_v55 = vrot.slane %v3170_v28, 4  ;;  %v3188_v1 = vadd.f32 %v3187_v58, %v3186_v24 }
 0x326   :  { %v3180_v37 = vrot.slane %v3179_v32, 4  ;;  %v3195_v26 = vsel %vm82_vm0, %v7465_v6, 0.0  ;;  %v3196_v23 = vsel %vm82_vm0, %v7469_v17, 0.0  ;;  %v3204_v27 = vsel %vm82_vm0, %v3088_v42, 0.0 }
 0x327   :  { %v3148_v14 = vrot.slane %v3147_v36, 1  ;;  %v3156_v60 = vadd.f32 %v3155_v2, %v3154_v20  ;;  %v3172_v0 = vadd.f32 %v3171_v55, %v3170_v28  ;;  %v3189_v5 = vrot.slane %v3188_v1, 4 }
 0x328   :  { %v3181_v61 = vadd.f32 %v3180_v37, %v3179_v32  ;;  %v3197_v31 = vadd.f32 %v3196_v23, %v3195_v26  ;;  %v3205_v49 = vsel %vm82_vm0, %v3089_v39, 0.0  ;;  %v3213_v50 = vsel %vm82_vm0, %v3090_v45, 0.0 }
 0x329   :  { %v3165_v24 = vadd.f32 %v3164_v4, %v3163_v33  ;;  %v3173_v58 = vrot.slane %v3172_v0, 2  ;;  %v3190_v38 = vadd.f32 %v3189_v5, %v3188_v1  ;;  %v3206_v7 = vadd.f32 %v3205_v49, %v3204_v27 }
 0x32a   :  { %v3182_v6 = vrot.slane %v3181_v61, 2  ;;  %v3198_v3 = vrot.slane %v3197_v31, 4  ;;  %v3214_v17 = vsel %vm82_vm0, %v3091_v59, 0.0  ;;  %v3222_v42 = vsel %vm82_vm0, %v3092_v21, 0.0 }
 0x32b   :  { %v3174_v48 = vadd.f32 %v3173_v58, %v3172_v0  ;;  %v3191_v20 = vrot.slane %v3190_v38, 2  ;;  %v3207_v28 = vrot.slane %v3206_v7, 4  ;;  %v3215_v2 = vadd.f32 %v3214_v17, %v3213_v50 }
 0x32c   :  { %v3157_v32 = vrot.slane %v3156_v60, 1  ;;  %v3183_v55 = vadd.f32 %v3182_v6, %v3181_v61  ;;  %v3199_v37 = vadd.f32 %v3198_v3, %v3197_v31  ;;  %v3223_v39 = vsel %vm82_vm0, %v3093_v15, 0.0 }
 0x32d   :  { %v3166_v45 = vrot.slane %v3165_v24, 1  ;;  %v3208_v33 = vadd.f32 %v3207_v28, %v3206_v7  ;;  %v3216_v4 = vrot.slane %v3215_v2, 4  ;;  %v3231_v1 = vsel %vm82_vm0, %v3094_v18, 0.0 }
 0x32e   :  { %v3175_v26 = vrot.slane %v3174_v48, 1  ;;  %v3200_v23 = vrot.slane %v3199_v37, 2  ;;  %v3224_v27 = vadd.f32 %v3223_v39, %v3222_v42  ;;  %v3232_v59 = vsel %vm82_vm0, %v3095_v54, 0.0 }
 0x32f   :  { %v3184_v21 = vrot.slane %v3183_v55, 1  ;;  %v3192_v0 = vadd.f32 %v3191_v20, %v3190_v38  ;;  %v3209_v5 = vrot.slane %v3208_v33, 2  ;;  %v3217_v49 = vadd.f32 %v3216_v4, %v3215_v2 }
 0x330   :  { %v7541_v50 = vadd.f32 %v3121_v41, %v7491_v22  ;;  %v7544_v3 = vadd.f32 %v3130_v52, %v7497_v30  ;;  %v3225_v15 = vrot.slane %v3224_v27, 4  ;;  %v3233_v7 = vadd.f32 %v3232_v59, %v3231_v1 }
 0x331   :  { %v7547_v61 = vadd.f32 %v3139_v11, %v7508_v51  ;;  %v3201_v18 = vadd.f32 %v3200_v23, %v3199_v37  ;;  %v3210_v31 = vadd.f32 %v3209_v5, %v3208_v33  ;;  %v3218_v58 = vrot.slane %v3217_v49, 2 }
 0x332   :  { %v7549_v6 = vadd.f32 %v3148_v14, %v3147_v36  ;;  %v7551_v54 = vadd.f32 %v3157_v32, %v3156_v60  ;;  %v3226_v38 = vadd.f32 %v3225_v15, %v3224_v27  ;;  %v3234_v17 = vrot.slane %v3233_v7, 4 }
 0x333   :  { %v7553_v42 = vadd.f32 %v3166_v45, %v3165_v24  ;;  %v7555_v22 = vadd.f32 %v3175_v26, %v3174_v48  ;;  %v7557_v30 = vadd.f32 %v3184_v21, %v3183_v55  ;;  %v3193_v41 = vrot.slane %v3192_v0, 1 }
 0x334   :  { %v3219_v52 = vadd.f32 %v3218_v58, %v3217_v49  ;;  %v3227_v20 = vrot.slane %v3226_v38, 2  ;;  %v3235_v51 = vadd.f32 %v3234_v17, %v3233_v7  ;;  %v3249_v11 = vmul.f32 %v7311_v62, %v7311_v62 }
 0x335   :  { %v3202_v28 = vrot.slane %v3201_v18, 1  ;;  %v3211_v36 = vrot.slane %v3210_v31, 1  ;;  %v3250_v14 = vmul.f32 %v7314_v43, %v7314_v43  ;;  %v3251_v60 = vmul.f32 %v7317_v10, %v7317_v10 }
 0x336   :  { %v3228_v24 = vadd.f32 %v3227_v20, %v3226_v38  ;;  %v3236_v48 = vrot.slane %v3235_v51, 2  ;;  %v3272_v2 = vrot.slane %v7377_v47, 7  ;;  %v3274_v32 = vrot.slane %v7381_v44, 6 }
 0x337   :  { %v3252_v55 = vmul.f32 %v7326_v57, %v7326_v57  ;;  %v3253_v37 = vmul.f32 %v7329_v53, %v7329_v53  ;;  %v3276_v39 = vrot.slane %v7385_v35, 5  ;;  %v3278_v45 = vrot.slane %v7389_v25, 4 }
 0x338   :  { %v3220_v33 = vrot.slane %v3219_v52, 1  ;;  %v3237_v4 = vadd.f32 %v3236_v48, %v3235_v51  ;;  %v3273_v1 = vsel %vm292_vm1, %v3272_v2, %v7370_v8  ;;  %v3280_v26 = vrot.slane %v7393_v56, 3  ;;  %v8761_v2 = vld [vmem:[#allocation32_spill] sm:$0xff] }
 0x339   :  { %v3254_v47 = vmul.f32 %v7332_v63, %v7332_v63  ;;  %v3275_v44 = vsel %vm295_vm2, %v3274_v32, %v3273_v1  ;;  %v3286_v23 = vrot.slane %v3249_v11, 7  ;;  %v3288_v27 = vrot.slane %v3250_v14, 6 }
 0x33a   :  { %v3229_v59 = vrot.slane %v3228_v24, 1  ;;  %v3277_v21 = vsel %vm298_vm3, %v3276_v39, %v3275_v44  ;;  %v3282_v35 = vrot.slane %v7397_v34, 2  ;;  %v3290_v25 = vrot.slane %v3251_v60, 5  ;;  %v8763_v39 = vld [vmem:[#allocation30_spill] sm:$0xff]  ;;  %v8765_v44 = vld [vmem:[#allocation35_spill] sm:$0xff] }
 0x33b   :  { %v3238_v5 = vrot.slane %v3237_v4, 1  ;;  %v3279_v49 = vsel %vm301_vm4, %v3278_v45, %v3277_v21  ;;  %v3287_v8 = vsel %vm292_vm1, %v3286_v23, %v7411_v9  ;;  %v3292_v56 = vrot.slane %v3252_v55, 4  ;;  %v8762_v55 = vld [vmem:[#allocation29_spill] sm:$0xff] }
 0x33c   :  { %v7584_v15 = vadd.f32 %v3193_v41, %v3192_v0  ;;  %v3255_v7 = vmul.f32 %v7338_v46, %v7338_v46  ;;  %v3281_v58 = vsel %vm304_vm5, %v3280_v26, %v3279_v49  ;;  %v3289_v38 = vsel %vm295_vm2, %v3288_v27, %v3287_v8 }
 0x33d   :  { %v7590_v17 = vadd.f32 %v3202_v28, %v3201_v18  ;;  %v7592_v34 = vadd.f32 %v3211_v36, %v3210_v31  ;;  %v3291_v20 = vsel %vm298_vm3, %v3290_v25, %v3289_v38  ;;  %v3294_v51 = vrot.slane %v3253_v37, 3 }
 0x33e   :  { %v7595_v11 = vadd.f32 %v3220_v33, %v3219_v52  ;;  %v7597_v9 = vadd.f32 %v3229_v59, %v3228_v24  ;;  %v3284_v0 = vrot.slane %v7401_v29, 1  ;;  %v3293_v41 = vsel %vm301_vm4, %v3292_v56, %v3291_v20  ;;  %v8760_v24 = vld [vmem:[#allocation28_spill] sm:$0xff]  ;;  %v8764_v33 = vld [vmem:[#allocation31_spill] sm:$0xff] }
 0x33f   :  { %v7601_v14 = vadd.f32 %v3238_v5, %v3237_v4  ;;  %v3283_v60 = vsel %vm307_vm6, %v3282_v35, %v3281_v58  ;;  %v3296_v48 = vrot.slane %v3254_v47, 2  ;;  %v3312_v18 = vmul.f32 %v7521_v16, %v7290_v40 }
 0x340   :  { %v3298_v31 = vrot.slane %v3255_v7, 1  ;;  %v3313_v28 = vmul.f32 %v7541_v50, %v7293_v12  ;;  %v3314_v52 = vmul.f32 %v7544_v3, %v7296_v13  ;;  %v3315_v29 = vmul.f32 %v7547_v61, %v7302_v19 }
 0x341   :  { %v3295_v36 = vsel %vm304_vm5, %v3294_v51, %v3293_v41  ;;  %v3311_v32 = vmul.f32 %v8761_v2, %v8760_v24  ;;  %v3316_v37 = vmul.f32 %v7549_v6, %v8762_v55  ;;  %v3317_v45 = vmul.f32 %v7551_v54, %v8763_v39 }
 0x342   :  { %v3318_v4 = vmul.f32 %v7553_v42, %v8764_v33  ;;  %v3320_v1 = vmul.f32 %v7557_v30, %v7311_v62  ;;  %v3321_v26 = vmul.f32 %v7584_v15, %v7314_v43  ;;  %v3322_v47 = vmul.f32 %v7590_v17, %v7317_v10 }
 0x343   :  { %v3319_v23 = vmul.f32 %v7555_v22, %v8765_v44  ;;  %v3323_v27 = vmul.f32 %v7592_v34, %v7326_v57  ;;  %v3324_v59 = vmul.f32 %v7595_v11, %v7329_v53  ;;  %v3343_v21 = vrot.slane %v3312_v18, 7 }
 0x344   :  { %v3325_v35 = vmul.f32 %v7597_v9, %v7332_v63  ;;  %v3345_v25 = vrot.slane %v3313_v28, 6  ;;  %v3347_v5 = vrot.slane %v3314_v52, 5  ;;  %v3349_v49 = vrot.slane %v3315_v29, 4 }
 0x345   :  { %v3326_v8 = vmul.f32 %v7601_v14, %v7338_v46  ;;  %v3344_v56 = vsel %vm292_vm1, %v3343_v21, %v3311_v32  ;;  %v3351_v7 = vrot.slane %v3316_v37, 3  ;;  %v3353_v58 = vrot.slane %v3317_v45, 2 }
 0x346   :  { %v3346_v38 = vsel %vm295_vm2, %v3345_v25, %v3344_v56  ;;  %v3357_v20 = vrot.slane %v3320_v1, 7  ;;  %v3359_v51 = vrot.slane %v3321_v26, 6  ;;  %v3361_v41 = vrot.slane %v3322_v47, 5 }
 0x347   :  { %v3297_v18 = vsel %vm307_vm6, %v3296_v48, %v3295_v36  ;;  %v3348_v53 = vsel %vm298_vm3, %v3347_v5, %v3346_v38  ;;  %v3355_v63 = vrot.slane %v3318_v4, 1  ;;  %v3363_v28 = vrot.slane %v3323_v27, 4 }
 0x348   :  { %v3350_v52 = vsel %vm301_vm4, %v3349_v49, %v3348_v53  ;;  %v3358_v29 = vsel %vm292_vm1, %v3357_v20, %v3319_v23  ;;  %v3365_v46 = vrot.slane %v3324_v59, 3  ;;  %v3285_v32 = vsel %vm310_vm7, %v3284_v0, %v3283_v60 }
 0x349   :  { %v3352_v37 = vsel %vm304_vm5, %v3351_v7, %v3350_v52  ;;  %v3360_v45 = vsel %vm295_vm2, %v3359_v51, %v3358_v29  ;;  %v3367_v1 = vrot.slane %v3325_v35, 2  ;;  %v3299_v26 = vsel %vm310_vm7, %v3298_v31, %v3297_v18 }
 0x34a   :  { %v3354_v48 = vsel %vm307_vm6, %v3353_v58, %v3352_v37  ;;  %v3362_v36 = vsel %vm298_vm3, %v3361_v41, %v3360_v45  ;;  %v3369_v4 = vrot.slane %v3326_v8, 1  ;;  %v3302_v0 = vsel %vm82_vm0, %v3285_v32, 0.0  ;;  %v8766_v45 = vld [vmem:[#allocation2_spill] sm:$0xff] }
 0x34b   :  { %v3356_v47 = vsel %vm310_vm7, %v3355_v63, %v3354_v48  ;;  %v3364_v53 = vsel %vm301_vm4, %v3363_v28, %v3362_v36  ;;  %v3303_v60 = vsel %vm82_vm0, %v3299_v26, 0.0  ;;  %v3408_v58 = vsel %vm292_vm1, %v7521_v16, %v8761_v2 }
 0x34c   :  { %v3366_v23 = vsel %vm304_vm5, %v3365_v46, %v3364_v53  ;;  %v3373_v59 = vsel %vm82_vm0, %v3356_v47, 0.0  ;;  %v3304_v35 = vadd.f32 %v3303_v60, %v3302_v0  ;;  %v3415_v38 = vsel %vm292_vm1, %v7557_v30, %v7555_v22 }
 0x34d   :  { %v3368_v27 = vsel %vm307_vm6, %v3367_v1, %v3366_v23  ;;  %v3409_v41 = vsel %vm295_vm2, %v7541_v50, %v3408_v58  ;;  %v3416_v18 = vsel %vm295_vm2, %v7584_v15, %v3415_v38  ;;  %v8767_v1 = vld [vmem:[#allocation49_spill] sm:$0xff] }
 0x34e   :  { %v3370_v31 = vsel %vm310_vm7, %v3369_v4, %v3368_v27  ;;  %v3305_v63 = vrot.slane %v3304_v35, 4  ;;  %v3410_v52 = vsel %vm298_vm3, %v7544_v3, %v3409_v41  ;;  %v3417_v16 = vsel %vm298_vm3, %v7590_v17, %v3416_v18 }
 0x34f   :  { %v3374_v21 = vsel %vm82_vm0, %v3370_v31, 0.0  ;;  %v3411_v22 = vsel %vm301_vm4, %v7547_v61, %v3410_v52  ;;  %v3418_v30 = vsel %vm301_vm4, %v7592_v34, %v3417_v16 }
 0x350   :  { %v3375_v25 = vadd.f32 %v3374_v21, %v3373_v59  ;;  %v3306_v56 = vadd.f32 %v3305_v63, %v3304_v35  ;;  %v3412_v50 = vsel %vm304_vm5, %v7549_v6, %v3411_v22  ;;  %v3419_v15 = vsel %vm304_vm5, %v7595_v11, %v3418_v30  ;;  %v8769_v11 = vld [vmem:[#allocation22_spill] sm:$0xff] }
 0x351   :  { %v3413_v3 = vsel %vm307_vm6, %v7551_v54, %v3412_v50  ;;  %v3420_v17 = vsel %vm307_vm6, %v7597_v9, %v3419_v15 }
 0x352   :  { %v3376_v5 = vrot.slane %v3375_v25, 4  ;;  %v3307_v20 = vrot.slane %v3306_v56, 2  ;;  %v3414_v61 = vsel %vm310_vm7, %v7553_v42, %v3413_v3  ;;  %v3421_v34 = vsel %vm310_vm7, %v7601_v14, %v3420_v17 }
 0x354   :  { %v3377_v49 = vadd.f32 %v3376_v5, %v3375_v25  ;;  %v3308_v28 = vadd.f32 %v3307_v20, %v3306_v56 }
 0x356   :  { %v3378_v8 = vrot.slane %v3377_v49, 2  ;;  %v3309_v2 = vrot.slane %v3308_v28, 1 }
 0x358   :  { %v3379_v46 = vadd.f32 %v3378_v8, %v3377_v49  ;;  %v3310_v29 = vadd.f32 %v3309_v2, %v3308_v28 }
 0x35a   :  { %v3380_v7 = vrot.slane %v3379_v46, 1 }
 0x35c   :  { %v3381_v51 = vadd.f32 %v3380_v7, %v3379_v46 }
 0x35e   :  { %3866 = vrcp.f32 %v3381_v51 }
 0x36b   :  { %v3867_v32 = vpop.eup %3866 }
 0x36c   :  { %v3383_v37 = vmul.f32 %v3867_v32, %v3310_v29 }
 0x36e   :  { %v3387_v6 = vrot.slane %v3383_v37, %v8766_v45 }
 0x370   :  { %v7690_v26 = vmul.f32 %v3387_v6, %v8767_v1  ;;  %v7693_v48 = vmul.f32 %v3387_v6, %v8769_v11  ;;  %v3424_v54 = vmul.f32 %v3414_v61, %v3387_v6  ;;  %v3425_v36 = vmul.f32 %v3421_v34, %v3387_v6 }
 0x372   :  { %8768 = vst [vmem:[#allocation33_spill] sm:$0xff] %v7690_v26  ;;  %8770 = vst [vmem:[#allocation34_spill] sm:$0xff] %v7693_v48  ;;  %v3428_v42 = vrot.slane %v3424_v54, 1  ;;  %v3429_v23 = vrot.slane %v3424_v54, 2  ;;  %v3430_v0 = vrot.slane %v3424_v54, 3  ;;  %v3431_v14 = vrot.slane %v3424_v54, 4 }
 0x373   :  { %v3432_v60 = vrot.slane %v3424_v54, 5  ;;  %v3433_v27 = vrot.slane %v3424_v54, 6  ;;  %v3435_v59 = vrot.slane %v3425_v36, 1  ;;  %v3436_v31 = vrot.slane %v3425_v36, 2 }
 0x374   :  { %v3437_v21 = vrot.slane %v3425_v36, 3  ;;  %v3434_v35 = vrot.slane %v3424_v54, 7  ;;  %v3438_v25 = vrot.slane %v3425_v36, 4  ;;  %v3439_v5 = vrot.slane %v3425_v36, 5 }
 0x375   :  { %v3440_v63 = vrot.slane %v3425_v36, 6  ;;  %v7700_v49 = vsub.f32 %v7290_v40, %v3428_v42  ;;  %v7703_v8 = vsub.f32 %v7293_v12, %v3429_v23  ;;  %v7706_v56 = vsub.f32 %v7296_v13, %v3430_v0 }
 0x376   :  { %v3441_v46 = vrot.slane %v3425_v36, 7  ;;  %v7709_v7 = vsub.f32 %v8760_v24, %v3424_v54  ;;  %v7712_v58 = vsub.f32 %v7302_v19, %v3431_v14  ;;  %v7715_v38 = vsub.f32 %v8762_v55, %v3432_v60 }
 0x377   :  { %v7718_v20 = vsub.f32 %v8763_v39, %v3433_v27  ;;  %v7721_v40 = vsub.f32 %v7311_v62, %v3435_v59  ;;  %v7724_v12 = vsub.f32 %v7314_v43, %v3436_v31  ;;  %v7727_v13 = vsub.f32 %v7317_v10, %v3437_v21  ;;  %v8778_v39 = vld [vmem:[#allocation36_spill] sm:$0xff]  ;;  %v8779_v62 = vld [vmem:[#allocation15_spill] sm:$0xff] }
 0x378   :  { %8773 = vst [vmem:[#allocation37_spill] sm:$0xff] %v7709_v7  ;;  %8774 = vst [vmem:[#allocation38_spill] sm:$0xff] %v7715_v38  ;;  %v7730_v24 = vsub.f32 %v8764_v33, %v3434_v35  ;;  %v7733_v19 = vsub.f32 %v8765_v44, %v3425_v36  ;;  %v7736_v55 = vsub.f32 %v7326_v57, %v3438_v25  ;;  %v3490_v43 = vrot.slane %v7700_v49, 7  ;;  %v8780_v33 = vld [vmem:[#allocation21_spill] sm:$0xff] }
 0x379   :  { %8775 = vst [vmem:[#allocation39_spill] sm:$0xff] %v7718_v20  ;;  %v7739_v51 = vsub.f32 %v8778_v39, %v3439_v5  ;;  %v7742_v41 = vsub.f32 %v8779_v62, %v3440_v63  ;;  %v3492_v10 = vrot.slane %v7703_v8, 6  ;;  %v3494_v18 = vrot.slane %v7706_v56, 5  ;;  %v3968_v63 = vld [vmem:[%s8119_s0] sm:$0xff]  ;;  %v3969_v39 = vld [vmem:[%s8119_s0 + $0x10] sm:$0xff] }
 0x37a   :  { %8776 = vst [vmem:[#allocation40_spill] sm:$0xff] %v7730_v24  ;;  %8777 = vst [vmem:[#allocation41_spill] sm:$0xff] %v7733_v19  ;;  %v7748_v28 = vsub.f32 %v8780_v33, %v3441_v46  ;;  %v3496_v44 = vrot.slane %v7712_v58, 4  ;;  %v3498_v57 = vrot.slane %v7715_v38, 3  ;;  %v3504_v52 = vrot.slane %v7721_v40, 7  ;;  %v3971_v33 = vld [vmem:[%s8119_s0 + $0x8] sm:$0xff] }
 0x37b   :  { %v3491_v16 = vsel %vm292_vm1, %v3490_v43, %v7709_v7  ;;  %v3506_v2 = vrot.slane %v7724_v12, 6  ;;  %v3508_v22 = vrot.slane %v7727_v13, 5  ;;  %v3510_v30 = vrot.slane %v7736_v55, 4  ;;  %v3970_v43 = vld [vmem:[%s8119_s0 + $0x20] sm:$0xff] }
 0x37c   :  { %v3493_v50 = vsel %vm295_vm2, %v3492_v10, %v3491_v16  ;;  %v3500_v15 = vrot.slane %v7718_v20, 2  ;;  %v3505_v29 = vsel %vm292_vm1, %v3504_v52, %v7733_v19  ;;  %v3512_v3 = vrot.slane %v7739_v51, 3  ;;  %v3973_v16 = vld [vmem:[%s8119_s0 + $0x28] sm:$0xff] }
 0x37d   :  { %v3495_v17 = vsel %vm298_vm3, %v3494_v18, %v3493_v50  ;;  %v3502_v32 = vrot.slane %v7730_v24, 1  ;;  %v3507_v37 = vsel %vm295_vm2, %v3506_v2, %v3505_v29  ;;  %v3514_v61 = vrot.slane %v7742_v41, 2  ;;  %v3975_v50 = vld [vmem:[%s8119_s0 + $0x38] sm:$0xff]  ;;  %v3976_v29 = vld [vmem:[%s8119_s0 + $0x40] sm:$0xff] }
 0x37e   :  { %v3497_v34 = vsel %vm301_vm4, %v3496_v44, %v3495_v17  ;;  %v3509_v6 = vsel %vm298_vm3, %v3508_v22, %v3507_v37  ;;  %v3516_v1 = vrot.slane %v7748_v28, 1  ;;  %v7780_v14 = vmul.f32 %v7709_v7, %v7709_v7  ;;  %v3974_v22 = vld [vmem:[%s8119_s0 + $0x30] sm:$0xff]  ;;  %v3977_v17 = vld [vmem:[%s8119_s0 + $0x48] sm:$0xff] }
 0x37f   :  { %v3499_v11 = vsel %vm304_vm5, %v3498_v57, %v3497_v34  ;;  %v3511_v54 = vsel %vm301_vm4, %v3510_v30, %v3509_v6  ;;  %v7787_v27 = vmul.f32 %v7700_v49, %v7700_v49  ;;  %v7791_v59 = vmul.f32 %v7703_v8, %v7703_v8  ;;  %v3972_v57 = vld [vmem:[%s8119_s0 + $0x18] sm:$0xff]  ;;  %v3978_v37 = vld [vmem:[%s8119_s0 + $0x50] sm:$0xff] }
 0x380   :  { %v3501_v36 = vsel %vm307_vm6, %v3500_v15, %v3499_v11  ;;  %v3513_v42 = vsel %vm304_vm5, %v3512_v3, %v3511_v54  ;;  %v7795_v31 = vmul.f32 %v7706_v56, %v7706_v56  ;;  %v7799_v21 = vmul.f32 %v7712_v58, %v7712_v58  ;;  %v3979_v34 = vld [vmem:[%s8119_s0 + $0x58] sm:$0xff]  ;;  %v3981_v54 = vld [vmem:[%s8119_s0 + $0x68] sm:$0xff] }
 0x381   :  { %v7775_v23 = vsel %vm310_vm7, %v3502_v32, %v3501_v36  ;;  %v3515_v0 = vsel %vm307_vm6, %v3514_v61, %v3513_v42  ;;  %v7803_v35 = vmul.f32 %v7715_v38, %v7715_v38  ;;  %v7807_v25 = vmul.f32 %v7718_v20, %v7718_v20  ;;  %v3982_v42 = vld [vmem:[%s8119_s0 + $0x70] sm:$0xff] }
 0x382   :  { %8781 = vst [vmem:[#allocation42_spill] sm:$0xff] %v7775_v23  ;;  %v7783_v60 = vsel %vm310_vm7, %v3516_v1, %v3515_v0  ;;  %v7811_v5 = vmul.f32 %v7730_v24, %v7730_v24  ;;  %v3520_v46 = vmul.f32 %v3968_v63, %v7775_v23  ;;  %v3522_v62 = vmul.f32 %v3969_v39, %v7775_v23  ;;  %v3980_v1 = vld [vmem:[%s8119_s0 + $0x60] sm:$0xff]  ;;  %v3983_v63 = vld [vmem:[%s8119_s0 + $0x78] sm:$0xff] }
 0x383   :  { %8782 = vst [vmem:[#allocation43_spill] sm:$0xff] %v7783_v60  ;;  %v3524_v10 = vmul.f32 %v3970_v43, %v7775_v23  ;;  %v7827_v18 = vmul.f32 %v7733_v19, %v7733_v19  ;;  %v3521_v44 = vmul.f32 %v3971_v33, %v7783_v60  ;;  %v3523_v52 = vmul.f32 %v3972_v57, %v7783_v60  ;;  %v3984_v43 = vld [vmem:[%s8119_s0 + $0x80] sm:$0xff]  ;;  %v3985_v57 = vld [vmem:[%s8119_s0 + $0x88] sm:$0xff] }
 0x384   :  { %v3525_v2 = vmul.f32 %v3973_v16, %v7783_v60  ;;  %v3526_v30 = vmul.f32 %v3974_v22, %v7775_v23  ;;  %v3527_v15 = vmul.f32 %v3975_v50, %v7783_v60  ;;  %v3528_v3 = vmul.f32 %v3976_v29, %v7775_v23  ;;  %v3986_v22 = vld [vmem:[%s8119_s0 + $0x90] sm:$0xff]  ;;  %v3987_v29 = vld [vmem:[%s8119_s0 + $0x98] sm:$0xff] }
 0x385   :  { %v3529_v32 = vmul.f32 %v3977_v17, %v7783_v60  ;;  %v3530_v61 = vmul.f32 %v3978_v37, %v7775_v23  ;;  %v3531_v6 = vmul.f32 %v3979_v34, %v7783_v60  ;;  %v3532_v11 = vmul.f32 %v3980_v1, %v7775_v23  ;;  %v3988_v37 = vld [vmem:[%s8119_s0 + $0xa0] sm:$0xff]  ;;  %v3989_v1 = vld [vmem:[%s8119_s0 + $0xa8] sm:$0xff] }
 0x386   :  { %v3533_v36 = vmul.f32 %v3981_v54, %v7783_v60  ;;  %v3534_v0 = vmul.f32 %v3982_v42, %v7775_v23  ;;  %v3535_v39 = vmul.f32 %v3983_v63, %v7783_v60  ;;  %v7885_v33 = vmul.f32 %v3984_v43, %v7775_v23  ;;  %v3990_v42 = vld [vmem:[%s8119_s0 + $0xb0] sm:$0xff]  ;;  %v3991_v43 = vld [vmem:[%s8119_s0 + $0xb8] sm:$0xff] }
 0x387   :  { %v7891_v16 = vmul.f32 %v3985_v57, %v7783_v60  ;;  %v7897_v50 = vmul.f32 %v3986_v22, %v7775_v23  ;;  %v7903_v17 = vmul.f32 %v3987_v29, %v7783_v60  ;;  %v7909_v34 = vmul.f32 %v3988_v37, %v7775_v23 }
 0x388   :  { %v7915_v54 = vmul.f32 %v3989_v1, %v7783_v60  ;;  %v7921_v63 = vmul.f32 %v3990_v42, %v7775_v23  ;;  %v7927_v57 = vmul.f32 %v3991_v43, %v7783_v60  ;;  %v3552_v22 = vsel %vm82_vm0, %v3520_v46, 0.0 }
 0x389   :  { %v3553_v29 = vsel %vm82_vm0, %v3521_v44, 0.0  ;;  %v3561_v37 = vsel %vm82_vm0, %v3522_v62, 0.0  ;;  %v3562_v53 = vsel %vm82_vm0, %v3523_v52, 0.0  ;;  %v3570_v4 = vsel %vm82_vm0, %v3524_v10, 0.0 }
 0x38a   :  { %v3554_v1 = vadd.f32 %v3553_v29, %v3552_v22  ;;  %v3571_v42 = vsel %vm82_vm0, %v3525_v2, 0.0  ;;  %v3563_v48 = vadd.f32 %v3562_v53, %v3561_v37  ;;  %v3579_v26 = vsel %vm82_vm0, %v3526_v30, 0.0 }
 0x38b   :  { %v3572_v47 = vadd.f32 %v3571_v42, %v3570_v4  ;;  %v3580_v43 = vsel %vm82_vm0, %v3527_v15, 0.0  ;;  %v3588_v46 = vsel %vm82_vm0, %v3528_v3, 0.0  ;;  %v3589_v44 = vsel %vm82_vm0, %v3529_v32, 0.0 }
 0x38c   :  { %v3555_v9 = vrot.slane %v3554_v1, 4  ;;  %v3581_v45 = vadd.f32 %v3580_v43, %v3579_v26  ;;  %v3564_v62 = vrot.slane %v3563_v48, 4  ;;  %v3590_v29 = vadd.f32 %v3589_v44, %v3588_v46 }
 0x38d   :  { %v3573_v22 = vrot.slane %v3572_v47, 4  ;;  %v3597_v52 = vsel %vm82_vm0, %v3530_v61, 0.0  ;;  %v3598_v53 = vsel %vm82_vm0, %v3531_v6, 0.0  ;;  %v3606_v4 = vsel %vm82_vm0, %v3532_v11, 0.0 }
 0x38e   :  { %v3556_v10 = vadd.f32 %v3555_v9, %v3554_v1  ;;  %v3582_v19 = vrot.slane %v3581_v45, 4  ;;  %v3565_v2 = vadd.f32 %v3564_v62, %v3563_v48  ;;  %v3591_v15 = vrot.slane %v3590_v29, 4  ;;  %v3992_v48 = vld [vmem:[%s8119_s0 + $0xc0] sm:$0xff] }
 0x38f   :  { %v3574_v30 = vadd.f32 %v3573_v22, %v3572_v47  ;;  %v3599_v37 = vadd.f32 %v3598_v53, %v3597_v52  ;;  %v3607_v3 = vsel %vm82_vm0, %v3533_v36, 0.0  ;;  %v3615_v32 = vsel %vm82_vm0, %v3534_v0, 0.0 }
 0x390   :  { %v3557_v26 = vrot.slane %v3556_v10, 2  ;;  %v3583_v42 = vadd.f32 %v3582_v19, %v3581_v45  ;;  %v3566_v43 = vrot.slane %v3565_v2, 2  ;;  %v3592_v44 = vadd.f32 %v3591_v15, %v3590_v29  ;;  %v3993_v45 = vld [vmem:[%s8119_s0 + $0xc8] sm:$0xff] }
 0x391   :  { %v3575_v46 = vrot.slane %v3574_v30, 2  ;;  %v3600_v61 = vrot.slane %v3599_v37, 4  ;;  %v3608_v24 = vadd.f32 %v3607_v3, %v3606_v4  ;;  %v3616_v6 = vsel %vm82_vm0, %v3535_v39, 0.0  ;;  %v3994_v39 = vld [vmem:[%s8119_s0 + $0xd0] sm:$0xff] }
 0x392   :  { %v3558_v9 = vadd.f32 %v3557_v26, %v3556_v10  ;;  %v3584_v1 = vrot.slane %v3583_v42, 2  ;;  %v3544_v47 = vmul.f32 %v3992_v48, %v7775_v23  ;;  %v3545_v19 = vmul.f32 %v3993_v45, %v7783_v60  ;;  %v3995_v10 = vld [vmem:[%s8119_s0 + $0xd8] sm:$0xff] }
 0x393   :  { %v3567_v11 = vadd.f32 %v3566_v43, %v3565_v2  ;;  %v3601_v36 = vadd.f32 %v3600_v61, %v3599_v37  ;;  %v7953_v0 = vadd.f32 %v3575_v46, %v3574_v30  ;;  %v3593_v62 = vrot.slane %v3592_v44, 2  ;;  %v3996_v30 = vld [vmem:[%s8119_s0 + $0xe0] sm:$0xff]  ;;  %v3999_v61 = vld [vmem:[%s8119_s0 + $0xf8] sm:$0xff] }
 0x394   :  { %v3609_v22 = vrot.slane %v3608_v24, 4  ;;  %v3617_v29 = vadd.f32 %v3616_v6, %v3615_v32  ;;  %v3546_v52 = vmul.f32 %v3994_v39, %v7775_v23  ;;  %v3547_v53 = vmul.f32 %v3995_v10, %v7783_v60  ;;  %v3997_v32 = vld [vmem:[%s8119_s0 + $0xe8] sm:$0xff] }
 0x395   :  { %v3559_v4 = vrot.slane %v3558_v9, 1  ;;  %v7963_v2 = vadd.f32 %v3584_v1, %v3583_v42  ;;  %v3548_v15 = vmul.f32 %v3996_v30, %v7775_v23  ;;  %v3602_v37 = vrot.slane %v3601_v36, 2  ;;  %v3998_v42 = vld [vmem:[%s8119_s0 + $0xf0] sm:$0xff] }
 0x396   :  { %v3610_v26 = vadd.f32 %v3609_v22, %v3608_v24  ;;  %v3618_v3 = vrot.slane %v3617_v29, 4  ;;  %v3549_v43 = vmul.f32 %v3997_v32, %v7783_v60  ;;  %v3550_v46 = vmul.f32 %v3998_v42, %v7775_v23 }
 0x397   :  { %v3551_v1 = vmul.f32 %v3999_v61, %v7783_v60  ;;  %v3568_v24 = vrot.slane %v3567_v11, 1  ;;  %v3577_v6 = vrot.slane %v7953_v0, 1  ;;  %v7982_v48 = vadd.f32 %v3593_v62, %v3592_v44 }
 0x398   :  { %v3619_v45 = vadd.f32 %v3618_v3, %v3617_v29  ;;  %v3624_v22 = vsel %vm82_vm0, %v7885_v33, 0.0  ;;  %v7986_v39 = vadd.f32 %v3559_v4, %v3558_v9  ;;  %v3586_v10 = vrot.slane %v7963_v2, 1 }
 0x399   :  { %v3625_v30 = vsel %vm82_vm0, %v7891_v16, 0.0  ;;  %v3633_v32 = vsel %vm82_vm0, %v7897_v50, 0.0  ;;  %v3603_v42 = vadd.f32 %v3602_v37, %v3601_v36  ;;  %v3611_v61 = vrot.slane %v3610_v26, 2 }
 0x39a   :  { %8783 = vst [vmem:[#allocation44_spill] sm:$0xff] %v7986_v39  ;;  %v3626_v60 = vadd.f32 %v3625_v30, %v3624_v22  ;;  %v3634_v44 = vsel %vm82_vm0, %v7903_v17, 0.0  ;;  %v7995_v62 = vadd.f32 %v3568_v24, %v3567_v11  ;;  %v3642_v33 = vsel %vm82_vm0, %v7909_v34, 0.0 }
 0x39b   :  { %v3635_v29 = vadd.f32 %v3634_v44, %v3633_v32  ;;  %v3643_v9 = vsel %vm82_vm0, %v7915_v54, 0.0  ;;  %v3595_v16 = vrot.slane %v7982_v48, 1  ;;  %v3620_v4 = vrot.slane %v3619_v45, 2 }
 0x39c   :  { %v3627_v3 = vrot.slane %v3626_v60, 4  ;;  %v3644_v50 = vadd.f32 %v3643_v9, %v3642_v33  ;;  %v3651_v37 = vsel %vm82_vm0, %v7921_v63, 0.0  ;;  %v3652_v17 = vsel %vm82_vm0, %v7927_v57, 0.0 }
 0x39d   :  { %v3636_v36 = vrot.slane %v3635_v29, 4  ;;  %v3660_v11 = vsel %vm82_vm0, %v3544_v47, 0.0  ;;  %v3604_v24 = vrot.slane %v3603_v42, 1  ;;  %v3612_v22 = vadd.f32 %v3611_v61, %v3610_v26 }
 0x39e   :  { %v3628_v34 = vadd.f32 %v3627_v3, %v3626_v60  ;;  %v3645_v30 = vrot.slane %v3644_v50, 4  ;;  %v3653_v54 = vadd.f32 %v3652_v17, %v3651_v37  ;;  %v3661_v44 = vsel %vm82_vm0, %v3545_v19, 0.0 }
 0x39f   :  { %v3637_v32 = vadd.f32 %v3636_v36, %v3635_v29  ;;  %v3669_v23 = vsel %vm82_vm0, %v3546_v52, 0.0  ;;  %v3621_v33 = vadd.f32 %v3620_v4, %v3619_v45  ;;  %v3662_v38 = vadd.f32 %v3661_v44, %v3660_v11 }
 0x3a0   :  { %v3629_v9 = vrot.slane %v3628_v34, 2  ;;  %v3646_v20 = vadd.f32 %v3645_v30, %v3644_v50  ;;  %v3654_v39 = vrot.slane %v3653_v54, 4  ;;  %v3670_v57 = vsel %vm82_vm0, %v3547_v53, 0.0 }
 0x3a1   :  { %v3638_v63 = vrot.slane %v3637_v32, 2  ;;  %v3678_v47 = vsel %vm82_vm0, %v3548_v15, 0.0  ;;  %v3663_v60 = vrot.slane %v3662_v38, 4  ;;  %v3671_v61 = vadd.f32 %v3670_v57, %v3669_v23 }
 0x3a2   :  { %v3630_v7 = vadd.f32 %v3629_v9, %v3628_v34  ;;  %v3647_v26 = vrot.slane %v3646_v20, 2  ;;  %v3613_v29 = vrot.slane %v3612_v22, 1  ;;  %v3655_v36 = vadd.f32 %v3654_v39, %v3653_v54 }
 0x3a3   :  { %v3639_v3 = vadd.f32 %v3638_v63, %v3637_v32  ;;  %v3679_v19 = vsel %vm82_vm0, %v3549_v43, 0.0  ;;  %v3622_v52 = vrot.slane %v3621_v33, 1  ;;  %v3664_v45 = vadd.f32 %v3663_v60, %v3662_v38 }
 0x3a4   :  { %v3672_v4 = vrot.slane %v3671_v61, 4  ;;  %v3687_v50 = vsel %vm82_vm0, %v3550_v46, 0.0  ;;  %v3631_v37 = vrot.slane %v3630_v7, 1  ;;  %v3656_v17 = vrot.slane %v3655_v36, 2 }
 0x3a5   :  { %v3680_v11 = vadd.f32 %v3679_v19, %v3678_v47  ;;  %v3688_v53 = vsel %vm82_vm0, %v3551_v1, 0.0  ;;  %v3640_v15 = vrot.slane %v3639_v3, 1  ;;  %v3648_v34 = vadd.f32 %v3647_v26, %v3646_v20 }
 0x3a6   :  { %v3665_v30 = vrot.slane %v3664_v45, 2  ;;  %v3673_v44 = vadd.f32 %v3672_v4, %v3671_v61  ;;  %v8015_v23 = vadd.f32 %v3577_v6, %v7953_v0  ;;  %v8018_v39 = vadd.f32 %v3586_v10, %v7963_v2 }
 0x3a7   :  { %v3681_v43 = vrot.slane %v3680_v11, 4  ;;  %v3689_v38 = vadd.f32 %v3688_v53, %v3687_v50  ;;  %v8021_v32 = vadd.f32 %v3595_v16, %v7982_v48  ;;  %v3657_v46 = vadd.f32 %v3656_v17, %v3655_v36 }
 0x3a8   :  { %v3666_v54 = vadd.f32 %v3665_v30, %v3664_v45  ;;  %v3674_v9 = vrot.slane %v3673_v44, 2  ;;  %v3605_v63 = vadd.f32 %v3604_v24, %v3603_v42  ;;  %v3614_v1 = vadd.f32 %v3613_v29, %v3612_v22 }
 0x3a9   :  { %v3682_v57 = vadd.f32 %v3681_v43, %v3680_v11  ;;  %v3690_v20 = vrot.slane %v3689_v38, 4  ;;  %v3623_v47 = vadd.f32 %v3622_v52, %v3621_v33  ;;  %v8023_v26 = vadd.f32 %v3631_v37, %v3630_v7 }
 0x3aa   :  { %v3641_v0 = vadd.f32 %v3640_v15, %v3639_v3  ;;  %v3649_v6 = vrot.slane %v3648_v34, 1  ;;  %v3675_v60 = vadd.f32 %v3674_v9, %v3673_v44  ;;  %v3705_v61 = vmul.f32 %v7721_v40, %v7721_v40 }
 0x3ab   :  { %v3683_v2 = vrot.slane %v3682_v57, 2  ;;  %v3691_v10 = vadd.f32 %v3690_v20, %v3689_v38  ;;  %v3658_v48 = vrot.slane %v3657_v46, 1  ;;  %v3667_v16 = vrot.slane %v3666_v54, 1 }
 0x3ac   :  { %v3706_v36 = vmul.f32 %v7724_v12, %v7724_v12  ;;  %v3707_v42 = vmul.f32 %v7727_v13, %v7727_v13  ;;  %v3728_v7 = vrot.slane %v7787_v27, 7  ;;  %v3730_v33 = vrot.slane %v7791_v59, 6 }
 0x3ad   :  { %v3684_v24 = vadd.f32 %v3683_v2, %v3682_v57  ;;  %v3692_v22 = vrot.slane %v3691_v10, 2  ;;  %v3708_v29 = vmul.f32 %v7736_v55, %v7736_v55  ;;  %v3709_v3 = vmul.f32 %v7739_v51, %v7739_v51 }
 0x3ae   :  { %v3732_v19 = vrot.slane %v7795_v31, 5  ;;  %v3734_v52 = vrot.slane %v7799_v21, 4  ;;  %v3676_v45 = vrot.slane %v3675_v60, 1  ;;  %v3729_v50 = vsel %vm292_vm1, %v3728_v7, %v7780_v14 }
 0x3af   :  { %v3693_v4 = vadd.f32 %v3692_v22, %v3691_v10  ;;  %v3736_v37 = vrot.slane %v7803_v35, 3  ;;  %v3710_v27 = vmul.f32 %v7742_v41, %v7742_v41  ;;  %v3731_v59 = vsel %vm295_vm2, %v3730_v33, %v3729_v50 }
 0x3b0   :  { %v3742_v17 = vrot.slane %v3705_v61, 7  ;;  %v3744_v11 = vrot.slane %v3706_v36, 6  ;;  %v3685_v53 = vrot.slane %v3684_v24, 1  ;;  %v3733_v15 = vsel %vm298_vm3, %v3732_v19, %v3731_v59  ;;  %v8787_v19 = vld [vmem:[#allocation39_spill] sm:$0xff] }
 0x3b1   :  { %v3738_v31 = vrot.slane %v7807_v25, 2  ;;  %v3746_v21 = vrot.slane %v3707_v42, 5  ;;  %v3694_v30 = vrot.slane %v3693_v4, 1  ;;  %v3735_v44 = vsel %vm301_vm4, %v3734_v52, %v3733_v15 }
 0x3b2   :  { %v3743_v14 = vsel %vm292_vm1, %v3742_v17, %v7827_v18  ;;  %v3748_v35 = vrot.slane %v3708_v29, 4  ;;  %v3650_v43 = vadd.f32 %v3649_v6, %v3648_v34  ;;  %v3711_v38 = vmul.f32 %v7748_v28, %v7748_v28  ;;  %v8786_v29 = vld [vmem:[#allocation38_spill] sm:$0xff] }
 0x3b3   :  { %v3737_v9 = vsel %vm304_vm5, %v3736_v37, %v3735_v44  ;;  %v3745_v57 = vsel %vm295_vm2, %v3744_v11, %v3743_v14  ;;  %v3659_v20 = vadd.f32 %v3658_v48, %v3657_v46  ;;  %v3668_v2 = vadd.f32 %v3667_v16, %v3666_v54  ;;  %v8784_v48 = vld [vmem:[#allocation37_spill] sm:$0xff]  ;;  %v8785_v16 = vld [vmem:[#allocation44_spill] sm:$0xff] }
 0x3b4   :  { %v3747_v25 = vsel %vm298_vm3, %v3746_v21, %v3745_v57  ;;  %v3750_v10 = vrot.slane %v3709_v3, 3  ;;  %v3677_v61 = vadd.f32 %v3676_v45, %v3675_v60  ;;  %v3686_v36 = vadd.f32 %v3685_v53, %v3684_v24 }
 0x3b5   :  { %v3740_v42 = vrot.slane %v7811_v5, 1  ;;  %v3749_v18 = vsel %vm301_vm4, %v3748_v35, %v3747_v25  ;;  %v3695_v22 = vadd.f32 %v3694_v30, %v3693_v4  ;;  %v3739_v34 = vsel %vm307_vm6, %v3738_v31, %v3737_v9 }
 0x3b6   :  { %v3752_v6 = vrot.slane %v3710_v27, 2  ;;  %v3768_v7 = vmul.f32 %v7995_v62, %v7700_v49  ;;  %v3754_v33 = vrot.slane %v3711_v38, 1  ;;  %v3769_v46 = vmul.f32 %v8015_v23, %v7703_v8  ;;  %v8788_v49 = vld [vmem:[#allocation40_spill] sm:$0xff]  ;;  %v8789_v23 = vld [vmem:[#allocation41_spill] sm:$0xff] }
 0x3b7   :  { %v3770_v54 = vmul.f32 %v8018_v39, %v7706_v56  ;;  %v3771_v60 = vmul.f32 %v8021_v32, %v7712_v58  ;;  %v3751_v5 = vsel %vm304_vm5, %v3750_v10, %v3749_v18  ;;  %v3767_v24 = vmul.f32 %v8785_v16, %v8784_v48 }
 0x3b8   :  { %v3772_v3 = vmul.f32 %v3605_v63, %v8786_v29  ;;  %v3773_v52 = vmul.f32 %v3614_v1, %v8787_v19  ;;  %v3774_v62 = vmul.f32 %v3623_v47, %v8788_v49  ;;  %v3776_v45 = vmul.f32 %v3641_v0, %v7721_v40  ;;  %v8790_v19 = vld [vmem:[#allocation2_spill] sm:$0xff] }
 0x3b9   :  { %v3777_v8 = vmul.f32 %v3650_v43, %v7724_v12  ;;  %v3778_v56 = vmul.f32 %v3659_v20, %v7727_v13  ;;  %v3775_v58 = vmul.f32 %v8023_v26, %v8789_v23  ;;  %v3779_v39 = vmul.f32 %v3668_v2, %v7736_v55  ;;  %v8791_v49 = vld [vmem:[#allocation42_spill] sm:$0xff]  ;;  %v8794_v23 = vld [vmem:[#allocation33_spill] sm:$0xff] }
 0x3ba   :  { %v3780_v32 = vmul.f32 %v3677_v61, %v7739_v51  ;;  %v3799_v4 = vrot.slane %v3768_v7, 7  ;;  %v3781_v63 = vmul.f32 %v3686_v36, %v7742_v41  ;;  %v3801_v50 = vrot.slane %v3769_v46, 6 }
 0x3bb   :  { %v3803_v1 = vrot.slane %v3770_v54, 5  ;;  %v3805_v37 = vrot.slane %v3771_v60, 4  ;;  %v3782_v47 = vmul.f32 %v3695_v22, %v7748_v28  ;;  %v3807_v12 = vrot.slane %v3772_v3, 3 }
 0x3bc   :  { %v3800_v40 = vsel %vm292_vm1, %v3799_v4, %v3767_v24  ;;  %v3809_v0 = vrot.slane %v3773_v52, 2  ;;  %v3813_v27 = vrot.slane %v3776_v45, 7  ;;  %v3815_v26 = vrot.slane %v3777_v8, 6  ;;  %v8792_v45 = vld [vmem:[#allocation43_spill] sm:$0xff]  ;;  %v8797_v4 = vld [vmem:[#allocation34_spill] sm:$0xff] }
 0x3bd   :  { %v3802_v13 = vsel %vm295_vm2, %v3801_v50, %v3800_v40  ;;  %v3817_v59 = vrot.slane %v3778_v56, 5  ;;  %v3753_v55 = vsel %vm307_vm6, %v3752_v6, %v3751_v5  ;;  %v3811_v17 = vrot.slane %v3774_v62, 1  ;;  %v8793_v56 = vld [vmem:[#allocation27_spill] sm:$0xff] }
 0x3be   :  { %v3804_v51 = vsel %vm298_vm3, %v3803_v1, %v3802_v13  ;;  %v3819_v41 = vrot.slane %v3779_v39, 4  ;;  %v3814_v53 = vsel %vm292_vm1, %v3813_v27, %v3775_v58  ;;  %v3821_v28 = vrot.slane %v3780_v32, 3  ;;  %v8796_v32 = vld [vmem:[#allocation11_spill] sm:$0xff] }
 0x3bf   :  { %v3806_v11 = vsel %vm301_vm4, %v3805_v37, %v3804_v51  ;;  %v3741_v15 = vsel %vm310_vm7, %v3740_v42, %v3739_v34  ;;  %v3816_v21 = vsel %vm295_vm2, %v3815_v26, %v3814_v53  ;;  %v3823_v30 = vrot.slane %v3781_v63, 2 }
 0x3c0   :  { %v3808_v31 = vsel %vm304_vm5, %v3807_v12, %v3806_v11  ;;  %v3755_v44 = vsel %vm310_vm7, %v3754_v33, %v3753_v55  ;;  %v3818_v35 = vsel %vm298_vm3, %v3817_v59, %v3816_v21  ;;  %v3825_v43 = vrot.slane %v3782_v47, 1 }
 0x3c1   :  { %v3810_v14 = vsel %vm307_vm6, %v3809_v0, %v3808_v31  ;;  %v3820_v9 = vsel %vm301_vm4, %v3819_v41, %v3818_v35  ;;  %v3758_v20 = vsel %vm82_vm0, %v3741_v15, 0.0  ;;  %v3759_v2 = vsel %vm82_vm0, %v3755_v44, 0.0 }
 0x3c2   :  { %v3812_v38 = vsel %vm310_vm7, %v3811_v17, %v3810_v14  ;;  %v3822_v57 = vsel %vm304_vm5, %v3821_v28, %v3820_v9  ;;  %v3760_v42 = vadd.f32 %v3759_v2, %v3758_v20  ;;  %v8795_v58 = vsub.f32 %v8793_v56, %v8794_v23 }
 0x3c3   :  { %v3824_v25 = vsel %vm307_vm6, %v3823_v30, %v3822_v57  ;;  %v3829_v10 = vsel %vm82_vm0, %v3812_v38, 0.0  ;;  %v8798_v63 = vsub.f32 %v8796_v32, %v8797_v4 }
 0x3c4   :  { %v3826_v61 = vsel %vm310_vm7, %v3825_v43, %v3824_v25  ;;  %v3761_v34 = vrot.slane %v3760_v42, 4 }
 0x3c5   :  { %v3830_v36 = vsel %vm82_vm0, %v3826_v61, 0.0 }
 0x3c6   :  { %v3831_v18 = vadd.f32 %v3830_v36, %v3829_v10  ;;  %v3762_v33 = vadd.f32 %v3761_v34, %v3760_v42 }
 0x3c8   :  { %v3832_v22 = vrot.slane %v3831_v18, 4  ;;  %v3763_v60 = vrot.slane %v3762_v33, 2 }
 0x3ca   :  { %v3833_v6 = vadd.f32 %v3832_v22, %v3831_v18  ;;  %v3764_v48 = vadd.f32 %v3763_v60, %v3762_v33 }
 0x3cc   :  { %v3834_v7 = vrot.slane %v3833_v6, 2  ;;  %v3765_v16 = vrot.slane %v3764_v48, 1 }
 0x3ce   :  { %v3835_v46 = vadd.f32 %v3834_v7, %v3833_v6  ;;  %v3766_v24 = vadd.f32 %v3765_v16, %v3764_v48 }
 0x3d0   :  { %v3836_v54 = vrot.slane %v3835_v46, 1 }
 0x3d2   :  { %v3837_v5 = vadd.f32 %v3836_v54, %v3835_v46 }
 0x3d4   :  { %3868 = vrcp.f32 %v3837_v5 }
 0x3e1   :  { %v3869_v29 = vpop.eup %3868 }
 0x3e2   :  { %v3839_v3 = vmul.f32 %v3869_v29, %v3766_v24 }
 0x3e4   :  { %v3843_v52 = vrot.slane %v3839_v3, %v8790_v19 }
 0x3e6   :  { %v3844_v62 = vmul.f32 %v3843_v52, %v8791_v49  ;;  %v3845_v8 = vmul.f32 %v3843_v52, %v8792_v45 }
 0x3e8   :  { %v3846_v39 = vsub.f32 %v8795_v58, %v3844_v62  ;;  %v3847_v50 = vsub.f32 %v8798_v63, %v3845_v8 }
 0x3ea   :  { %3848 = vst.msk [vmem:[%s8122_s3] sm:$0xff] %vm82_vm0, %v3846_v39  ;;  %3849 = vst.msk [vmem:[%s8122_s3 + $0x8] sm:$0xff] %vm82_vm0, %v3847_v50 }

</bundles_post_ra>
